<compile_context>
chip_gen: v6e
topology: v6e:2x2x1
jax: 0.10.0
libtpu: 0.0.40
codegen_flags: <defaults>
</compile_context>

<pallas_src>
import functools

import jax
import jax.numpy as jnp
from jax import lax
from jax.experimental import pallas as pl
from jax.experimental.pallas import tpu as pltpu

N_STEPS = 16  # fixed RK4 steps over [0, T]


def _cnf_rk4_kernel(*refs, t0, t1, n_steps, compute_logp):
    if compute_logp:
        (t_ref, logpt_ref, h_ref,
         w1z_ref, w1s_ref, w1h_ref, b1_ref, w2_ref, b2_ref,
         z_out_ref, lp_out_ref) = refs
    else:
        (t_ref, h_ref,
         w1z_ref, w1s_ref, w1h_ref, b1_ref, w2_ref, b2_ref,
         z_out_ref) = refs
        logpt_ref = None
        lp_out_ref = None

    w1z = w1z_ref[...]          # (1, D)
    w1s = w1s_ref[...]          # (1, D)
    b1 = b1_ref[...]            # (1, D)
    w2_row = w2_ref[...]        # (1, D)  (W2 pre-reshaped in wrapper)
    b2 = b2_ref[...]            # (1, 1)

    # history conditioning is constant along the integration -> compute once.
    # MXU dot is off the per-stage chain so it is fine here.
    pre0 = jnp.dot(h_ref[...], w1h_ref[...],
                   preferred_element_type=jnp.float32) + b1        # (TB, D)

    TB = pre0.shape[0]
    D = pre0.shape[1]

    # Hoist all loop-invariant broadcasts (JAX does not CSE broadcast_in_dim
    # inside traced loops).
    w1zb = jnp.broadcast_to(w1z, (TB, D))                          # (TB, D)
    w2b = jnp.broadcast_to(w2_row, (TB, D))                        # (TB, D)
    b2b = jnp.broadcast_to(b2, (TB, 1))                            # (TB, 1)
    if compute_logp:
        # Fold w1z into w2 once:  div = sum_d (1 - a^2) * w1z_d * w2_d
        #                             = S - sum_d a^2 * (w1z_d * w2_d)
        w2_div = w1z * w2_row                                      # (1, D)
        w2db = jnp.broadcast_to(w2_div, (TB, D))                   # (TB, D)
        s_div = jnp.broadcast_to(
            jnp.sum(w2_div, axis=-1, keepdims=True), (TB, 1))      # (TB, 1)
    else:
        w2db = None
        s_div = None

    def F(z, pre_s):
        # z: (TB, 1), pre_s: (TB, D) = pre0 + s * w1s  (stage-time bias hoisted)
        a = jnp.tanh(pre_s + z * w1zb)                             # (TB, D)
        # Single-column projections done on VPU + lane reduce (no MXU trip).
        f = jnp.sum(a * w2b, axis=-1, keepdims=True) + b2b         # (TB, 1)
        if compute_logp:
            div = s_div - jnp.sum((a * a) * w2db, axis=-1, keepdims=True)
            return f, -div   # (dz/ds, dlogp/ds)
        return f, None

    dt = (t1 - t0) / float(n_steps)
    half_dt = 0.5 * dt

    def step(i, carry):
        z, lp = carry
        s = t0 + i.astype(jnp.float32) * dt
        # k2 and k3 share the same stage time -> 3 distinct biases per step.
        pre_a = pre0 + s * w1s
        pre_b = pre0 + (s + half_dt) * w1s
        pre_c = pre0 + (s + dt) * w1s
        k1z, k1l = F(z, pre_a)
        k2z, k2l = F(z + half_dt * k1z, pre_b)
        k3z, k3l = F(z + half_dt * k2z, pre_b)
        k4z, k4l = F(z + dt * k3z, pre_c)
        z = z + (dt / 6.0) * (k1z + 2.0 * (k2z + k3z) + k4z)
        if compute_logp:
            lp = lp + (dt / 6.0) * (k1l + 2.0 * (k2l + k3l) + k4l)
        return z, lp

    z0 = t_ref[...]
    lp0 = logpt_ref[...] if compute_logp else None
    zT, lpT = lax.fori_loop(0, n_steps, step, (z0, lp0), unroll=True)

    z_out_ref[...] = zT
    if compute_logp:
        lp_out_ref[...] = lpT


def init_cnf_params(key, hidden_dim, mlp_dim):
    ks = jax.random.split(key, 6)
    scale = 0.1
    return {
        "w1z": scale * jax.random.normal(ks[0], (1, mlp_dim), jnp.float32),
        "w1s": scale * jax.random.normal(ks[1], (1, mlp_dim), jnp.float32),
        "w1h": scale * jax.random.normal(ks[2], (hidden_dim, mlp_dim), jnp.float32),
        "b1":  scale * jax.random.normal(ks[3], (1, mlp_dim), jnp.float32),
        "w2":  scale * jax.random.normal(ks[4], (mlp_dim, 1), jnp.float32),
        "b2":  scale * jax.random.normal(ks[5], (1, 1), jnp.float32),
    }


def cnf_forward(params, t, history_embedding, logpt=None, reverse=False,
                T=1.0, block_b=512):
    """Mirrors CNF.forward: returns z_t if logpt is None else (z_t, logpz_t)."""
    B = t.shape[0]
    H = history_embedding.shape[-1]
    D = params["w1z"].shape[-1]
    compute_logp = logpt is not None

    # integration_times = [0, T] (flipped when reverse=True)
    t0, t1 = (float(T), 0.0) if reverse else (0.0, float(T))

    # Weights reshaped once on the host side so the kernel sees (1, D) rows.
    w2_row = params["w2"].reshape(1, D)

    TB = min(B, block_b)
    grid = (pl.cdiv(B, TB),)

    vec_spec = pl.BlockSpec((TB, 1), lambda i: (i, 0))
    h_spec = pl.BlockSpec((TB, H), lambda i: (i, 0))

    def wspec(shape):
        return pl.BlockSpec(shape, lambda i: (0, 0))

    weight_inputs = (params["w1z"], params["w1s"], params["w1h"],
                     params["b1"], w2_row, params["b2"])
    weight_specs = [wspec((1, D)), wspec((1, D)), wspec((H, D)),
                    wspec((1, D)), wspec((1, D)), wspec((1, 1))]

    n_evals = 4 * N_STEPS
    cost = pl.CostEstimate(
        flops=int(n_evals * B * 8 * D + 2 * B * H * D),
        transcendentals=int(n_evals * B * D),
        bytes_accessed=int(4 * (B * (H + 4) + H * D + 5 * D + 1)),
    )

    kern = functools.partial(_cnf_rk4_kernel, t0=t0, t1=t1,
                             n_steps=N_STEPS, compute_logp=compute_logp)

    if compute_logp:
        inputs = (t, logpt, history_embedding) + weight_inputs
        in_specs = [vec_spec, vec_spec, h_spec] + weight_specs
        out_shape = (jax.ShapeDtypeStruct((B, 1), jnp.float32),
                     jax.ShapeDtypeStruct((B, 1), jnp.float32))
        out_specs = (vec_spec, vec_spec)
    else:
        inputs = (t, history_embedding) + weight_inputs
        in_specs = [vec_spec, h_spec] + weight_specs
        out_shape = jax.ShapeDtypeStruct((B, 1), jnp.float32)
        out_specs = vec_spec

    out = pl.pallas_call(
        kern,
        grid=grid,
        in_specs=in_specs,
        out_specs=out_specs,
        out_shape=out_shape,
        compiler_params=pltpu.CompilerParams(
            dimension_semantics=("parallel",)),
        cost_estimate=cost,
    )(*inputs)

    if compute_logp:
        z_t, logpz_t = out
        return z_t, logpz_t
    return out


if __name__ == "__main__":
    B, H, D = 8, 32, 32  # batch, history-embedding dim, odefunc MLP width

    key = jax.random.PRNGKey(0)
    k_t, k_h, k_lp, k_p = jax.random.split(key, 4)

    t = jnp.abs(jax.random.normal(k_t, (B, 1), jnp.float32))        # event "times"
    history_embedding = jax.random.normal(k_h, (B, H), jnp.float32)
    logpt = jax.random.normal(k_lp, (B, 1), jnp.float32)

    params = init_cnf_params(k_p, H, D)

    # path 1: logpt is None -> returns z_t only (no divergence work done)
    z_only = cnf_forward(params, t, history_embedding, logpt=None)
    # path 2: logpt provided -> returns (z_t, logpz_t)
    z_t, logpz_t = cnf_forward(params, t, history_embedding, logpt=logpt)
    # path 3: reverse integration
    z_rev, logpz_rev = cnf_forward(params, t, history_embedding, logpt=logpt,
                                   reverse=True)

    jax.block_until_ready((z_only, z_t, logpz_t, z_rev, logpz_rev))

    assert z_only.shape == (B, 1) and z_t.shape == (B, 1) and logpz_t.shape == (B, 1)
    assert z_rev.shape == (B, 1) and logpz_rev.shape == (B, 1)
    assert jnp.all(jnp.isfinite(z_only))
    assert jnp.all(jnp.isfinite(z_t)) and jnp.all(jnp.isfinite(logpz_t))
    assert jnp.all(jnp.isfinite(z_rev)) and jnp.all(jnp.isfinite(logpz_rev))
    # z-only path must agree with the full path's z output
    assert jnp.allclose(z_only, z_t, atol=1e-5)

    print("KERNEL_OK")
</pallas_src>

<mosaic_0001>
module attributes {stable_mosaic.version = 11 : i64} {
  func.func @_cnf_rk4_kernel(%arg0: i32, %arg1: memref<8x1xf32, #tpu.memory_space<vmem>>, %arg2: memref<8x32xf32, #tpu.memory_space<vmem>>, %arg3: memref<1x32xf32, #tpu.memory_space<vmem>>, %arg4: memref<1x32xf32, #tpu.memory_space<vmem>>, %arg5: memref<32x32xf32, #tpu.memory_space<vmem>>, %arg6: memref<1x32xf32, #tpu.memory_space<vmem>>, %arg7: memref<1x32xf32, #tpu.memory_space<vmem>>, %arg8: memref<1x1xf32, #tpu.memory_space<vmem>>, %arg9: memref<8x1xf32, #tpu.memory_space<vmem>>) attributes {dimension_semantics = [#tpu.dimension_semantics<parallel>], iteration_bounds = array<i64: 1>, scalar_prefetch = 0 : i64, scratch_operands = 0 : i64, tpu.core_type = #tpu.core_type<tc>, window_params = [{transform_indices = @transform_0, window_bounds = array<i64: 8, 1>}, {transform_indices = @transform_1, window_bounds = array<i64: 8, 32>}, {pipeline_mode = #tpu.pipeline_mode<synchronous>, transform_indices = @transform_2, window_bounds = array<i64: 1, 32>}, {pipeline_mode = #tpu.pipeline_mode<synchronous>, transform_indices = @transform_3, window_bounds = array<i64: 1, 32>}, {pipeline_mode = #tpu.pipeline_mode<synchronous>, transform_indices = @transform_4, window_bounds = array<i64: 32, 32>}, {pipeline_mode = #tpu.pipeline_mode<synchronous>, transform_indices = @transform_5, window_bounds = array<i64: 1, 32>}, {pipeline_mode = #tpu.pipeline_mode<synchronous>, transform_indices = @transform_6, window_bounds = array<i64: 1, 32>}, {pipeline_mode = #tpu.pipeline_mode<synchronous>, transform_indices = @transform_7, window_bounds = array<i64: 1, 1>}, {transform_indices = @transform_8, window_bounds = array<i64: 8, 1>}]} {
    %c0 = arith.constant 0 : index
    %c0_0 = arith.constant 0 : index
    %0 = vector.load %arg3[%c0, %c0_0] : memref<1x32xf32, #tpu.memory_space<vmem>>, vector<1x32xf32>
    %c0_1 = arith.constant 0 : index
    %c0_2 = arith.constant 0 : index
    %1 = vector.load %arg4[%c0_1, %c0_2] : memref<1x32xf32, #tpu.memory_space<vmem>>, vector<1x32xf32>
    %c0_3 = arith.constant 0 : index
    %c0_4 = arith.constant 0 : index
    %2 = vector.load %arg6[%c0_3, %c0_4] : memref<1x32xf32, #tpu.memory_space<vmem>>, vector<1x32xf32>
    %c0_5 = arith.constant 0 : index
    %c0_6 = arith.constant 0 : index
    %3 = vector.load %arg7[%c0_5, %c0_6] : memref<1x32xf32, #tpu.memory_space<vmem>>, vector<1x32xf32>
    %c0_7 = arith.constant 0 : index
    %c0_8 = arith.constant 0 : index
    %4 = vector.load %arg8[%c0_7, %c0_8] : memref<1x1xf32, #tpu.memory_space<vmem>>, vector<1x1xf32>
    %c0_9 = arith.constant 0 : index
    %c0_10 = arith.constant 0 : index
    %5 = vector.load %arg2[%c0_9, %c0_10] : memref<8x32xf32, #tpu.memory_space<vmem>>, vector<8x32xf32>
    %c0_11 = arith.constant 0 : index
    %c0_12 = arith.constant 0 : index
    %6 = vector.load %arg5[%c0_11, %c0_12] : memref<32x32xf32, #tpu.memory_space<vmem>>, vector<32x32xf32>
    %cst = arith.constant dense<0.000000e+00> : vector<8x32xf32>
    %7 = tpu.matmul %5, %6, %cst {dimension_numbers = #tpu.dot_dimension_numbers<[1], [0], [0], [1], [0, 0, 1, 1], [], []>} : vector<8x32xf32>, vector<32x32xf32>, vector<8x32xf32> -> vector<8x32xf32>
    %8 = vector.broadcast %2 : vector<1x32xf32> to vector<8x32xf32>
    %9 = arith.addf %7, %8 : vector<8x32xf32>
    %10 = vector.shape_cast %0 : vector<1x32xf32> to vector<1x32xf32>
    %11 = vector.broadcast %10 : vector<1x32xf32> to vector<8x32xf32>
    %12 = vector.shape_cast %3 : vector<1x32xf32> to vector<1x32xf32>
    %13 = vector.broadcast %12 : vector<1x32xf32> to vector<8x32xf32>
    %14 = vector.shape_cast %4 : vector<1x1xf32> to vector<1x1xf32>
    %15 = vector.broadcast %14 : vector<1x1xf32> to vector<8x1xf32>
    %c0_13 = arith.constant 0 : index
    %c0_14 = arith.constant 0 : index
    %16 = vector.load %arg1[%c0_13, %c0_14] : memref<8x1xf32, #tpu.memory_space<vmem>>, vector<8x1xf32>
    %c0_i32 = arith.constant 0 : i32
    %17 = arith.sitofp %c0_i32 : i32 to f32
    %cst_15 = arith.constant 6.250000e-02 : f32
    %18 = arith.mulf %17, %cst_15 : f32
    %cst_16 = arith.constant 0.000000e+00 : f32
    %19 = arith.addf %cst_16, %18 : f32
    %20 = vector.broadcast %19 : f32 to vector<1x32xf32>
    %21 = arith.mulf %20, %1 : vector<1x32xf32>
    %22 = vector.broadcast %21 : vector<1x32xf32> to vector<8x32xf32>
    %23 = arith.addf %9, %22 : vector<8x32xf32>
    %cst_17 = arith.constant 3.125000e-02 : f32
    %24 = arith.addf %19, %cst_17 : f32
    %25 = vector.broadcast %24 : f32 to vector<1x32xf32>
    %26 = arith.mulf %25, %1 : vector<1x32xf32>
    %27 = vector.broadcast %26 : vector<1x32xf32> to vector<8x32xf32>
    %28 = arith.addf %9, %27 : vector<8x32xf32>
    %cst_18 = arith.constant 6.250000e-02 : f32
    %29 = arith.addf %19, %cst_18 : f32
    %30 = vector.broadcast %29 : f32 to vector<1x32xf32>
    %31 = arith.mulf %30, %1 : vector<1x32xf32>
    %32 = vector.broadcast %31 : vector<1x32xf32> to vector<8x32xf32>
    %33 = arith.addf %9, %32 : vector<8x32xf32>
    %34 = vector.broadcast %16 : vector<8x1xf32> to vector<8x32xf32>
    %35 = arith.mulf %34, %11 : vector<8x32xf32>
    %36 = arith.addf %23, %35 : vector<8x32xf32>
    %37 = math.tanh %36 : vector<8x32xf32>
    %38 = arith.mulf %37, %13 : vector<8x32xf32>
    %cst_19 = arith.constant dense<0.000000e+00> : vector<8xf32>
    %39 = vector.multi_reduction <add>, %38, %cst_19 [1] : vector<8x32xf32> to vector<8xf32>
    %40 = vector.shape_cast %39 : vector<8xf32> to vector<8x1xf32>
    %41 = arith.addf %40, %15 : vector<8x1xf32>
    %cst_20 = arith.constant 3.125000e-02 : f32
    %42 = vector.broadcast %cst_20 : f32 to vector<8x1xf32>
    %43 = arith.mulf %42, %41 : vector<8x1xf32>
    %44 = arith.addf %16, %43 : vector<8x1xf32>
    %45 = vector.broadcast %44 : vector<8x1xf32> to vector<8x32xf32>
    %46 = arith.mulf %45, %11 : vector<8x32xf32>
    %47 = arith.addf %28, %46 : vector<8x32xf32>
    %48 = math.tanh %47 : vector<8x32xf32>
    %49 = arith.mulf %48, %13 : vector<8x32xf32>
    %cst_21 = arith.constant dense<0.000000e+00> : vector<8xf32>
    %50 = vector.multi_reduction <add>, %49, %cst_21 [1] : vector<8x32xf32> to vector<8xf32>
    %51 = vector.shape_cast %50 : vector<8xf32> to vector<8x1xf32>
    %52 = arith.addf %51, %15 : vector<8x1xf32>
    %cst_22 = arith.constant 3.125000e-02 : f32
    %53 = vector.broadcast %cst_22 : f32 to vector<8x1xf32>
    %54 = arith.mulf %53, %52 : vector<8x1xf32>
    %55 = arith.addf %16, %54 : vector<8x1xf32>
    %56 = vector.broadcast %55 : vector<8x1xf32> to vector<8x32xf32>
    %57 = arith.mulf %56, %11 : vector<8x32xf32>
    %58 = arith.addf %28, %57 : vector<8x32xf32>
    %59 = math.tanh %58 : vector<8x32xf32>
    %60 = arith.mulf %59, %13 : vector<8x32xf32>
    %cst_23 = arith.constant dense<0.000000e+00> : vector<8xf32>
    %61 = vector.multi_reduction <add>, %60, %cst_23 [1] : vector<8x32xf32> to vector<8xf32>
    %62 = vector.shape_cast %61 : vector<8xf32> to vector<8x1xf32>
    %63 = arith.addf %62, %15 : vector<8x1xf32>
    %cst_24 = arith.constant 6.250000e-02 : f32
    %64 = vector.broadcast %cst_24 : f32 to vector<8x1xf32>
    %65 = arith.mulf %64, %63 : vector<8x1xf32>
    %66 = arith.addf %16, %65 : vector<8x1xf32>
    %67 = vector.broadcast %66 : vector<8x1xf32> to vector<8x32xf32>
    %68 = arith.mulf %67, %11 : vector<8x32xf32>
    %69 = arith.addf %33, %68 : vector<8x32xf32>
    %70 = math.tanh %69 : vector<8x32xf32>
    %71 = arith.mulf %70, %13 : vector<8x32xf32>
    %cst_25 = arith.constant dense<0.000000e+00> : vector<8xf32>
    %72 = vector.multi_reduction <add>, %71, %cst_25 [1] : vector<8x32xf32> to vector<8xf32>
    %73 = vector.shape_cast %72 : vector<8xf32> to vector<8x1xf32>
    %74 = arith.addf %73, %15 : vector<8x1xf32>
    %75 = arith.addf %52, %63 : vector<8x1xf32>
    %cst_26 = arith.constant 2.000000e+00 : f32
    %76 = vector.broadcast %cst_26 : f32 to vector<8x1xf32>
    %77 = arith.mulf %76, %75 : vector<8x1xf32>
    %78 = arith.addf %41, %77 : vector<8x1xf32>
    %79 = arith.addf %78, %74 : vector<8x1xf32>
    %cst_27 = arith.constant 0.010416667 : f32
    %80 = vector.broadcast %cst_27 : f32 to vector<8x1xf32>
    %81 = arith.mulf %80, %79 : vector<8x1xf32>
    %82 = arith.addf %16, %81 : vector<8x1xf32>
    %c1_i32 = arith.constant 1 : i32
    %83 = arith.sitofp %c1_i32 : i32 to f32
    %cst_28 = arith.constant 6.250000e-02 : f32
    %84 = arith.mulf %83, %cst_28 : f32
    %cst_29 = arith.constant 0.000000e+00 : f32
    %85 = arith.addf %cst_29, %84 : f32
    %86 = vector.broadcast %85 : f32 to vector<1x32xf32>
    %87 = arith.mulf %86, %1 : vector<1x32xf32>
    %88 = vector.broadcast %87 : vector<1x32xf32> to vector<8x32xf32>
    %89 = arith.addf %9, %88 : vector<8x32xf32>
    %cst_30 = arith.constant 3.125000e-02 : f32
    %90 = arith.addf %85, %cst_30 : f32
    %91 = vector.broadcast %90 : f32 to vector<1x32xf32>
    %92 = arith.mulf %91, %1 : vector<1x32xf32>
    %93 = vector.broadcast %92 : vector<1x32xf32> to vector<8x32xf32>
    %94 = arith.addf %9, %93 : vector<8x32xf32>
    %cst_31 = arith.constant 6.250000e-02 : f32
    %95 = arith.addf %85, %cst_31 : f32
    %96 = vector.broadcast %95 : f32 to vector<1x32xf32>
    %97 = arith.mulf %96, %1 : vector<1x32xf32>
    %98 = vector.broadcast %97 : vector<1x32xf32> to vector<8x32xf32>
    %99 = arith.addf %9, %98 : vector<8x32xf32>
    %100 = vector.broadcast %82 : vector<8x1xf32> to vector<8x32xf32>
    %101 = arith.mulf %100, %11 : vector<8x32xf32>
    %102 = arith.addf %89, %101 : vector<8x32xf32>
    %103 = math.tanh %102 : vector<8x32xf32>
    %104 = arith.mulf %103, %13 : vector<8x32xf32>
    %cst_32 = arith.constant dense<0.000000e+00> : vector<8xf32>
    %105 = vector.multi_reduction <add>, %104, %cst_32 [1] : vector<8x32xf32> to vector<8xf32>
    %106 = vector.shape_cast %105 : vector<8xf32> to vector<8x1xf32>
    %107 = arith.addf %106, %15 : vector<8x1xf32>
    %cst_33 = arith.constant 3.125000e-02 : f32
    %108 = vector.broadcast %cst_33 : f32 to vector<8x1xf32>
    %109 = arith.mulf %108, %107 : vector<8x1xf32>
    %110 = arith.addf %82, %109 : vector<8x1xf32>
    %111 = vector.broadcast %110 : vector<8x1xf32> to vector<8x32xf32>
    %112 = arith.mulf %111, %11 : vector<8x32xf32>
    %113 = arith.addf %94, %112 : vector<8x32xf32>
    %114 = math.tanh %113 : vector<8x32xf32>
    %115 = arith.mulf %114, %13 : vector<8x32xf32>
    %cst_34 = arith.constant dense<0.000000e+00> : vector<8xf32>
    %116 = vector.multi_reduction <add>, %115, %cst_34 [1] : vector<8x32xf32> to vector<8xf32>
    %117 = vector.shape_cast %116 : vector<8xf32> to vector<8x1xf32>
    %118 = arith.addf %117, %15 : vector<8x1xf32>
    %cst_35 = arith.constant 3.125000e-02 : f32
    %119 = vector.broadcast %cst_35 : f32 to vector<8x1xf32>
    %120 = arith.mulf %119, %118 : vector<8x1xf32>
    %121 = arith.addf %82, %120 : vector<8x1xf32>
    %122 = vector.broadcast %121 : vector<8x1xf32> to vector<8x32xf32>
    %123 = arith.mulf %122, %11 : vector<8x32xf32>
    %124 = arith.addf %94, %123 : vector<8x32xf32>
    %125 = math.tanh %124 : vector<8x32xf32>
    %126 = arith.mulf %125, %13 : vector<8x32xf32>
    %cst_36 = arith.constant dense<0.000000e+00> : vector<8xf32>
    %127 = vector.multi_reduction <add>, %126, %cst_36 [1] : vector<8x32xf32> to vector<8xf32>
    %128 = vector.shape_cast %127 : vector<8xf32> to vector<8x1xf32>
    %129 = arith.addf %128, %15 : vector<8x1xf32>
    %cst_37 = arith.constant 6.250000e-02 : f32
    %130 = vector.broadcast %cst_37 : f32 to vector<8x1xf32>
    %131 = arith.mulf %130, %129 : vector<8x1xf32>
    %132 = arith.addf %82, %131 : vector<8x1xf32>
    %133 = vector.broadcast %132 : vector<8x1xf32> to vector<8x32xf32>
    %134 = arith.mulf %133, %11 : vector<8x32xf32>
    %135 = arith.addf %99, %134 : vector<8x32xf32>
    %136 = math.tanh %135 : vector<8x32xf32>
    %137 = arith.mulf %136, %13 : vector<8x32xf32>
    %cst_38 = arith.constant dense<0.000000e+00> : vector<8xf32>
    %138 = vector.multi_reduction <add>, %137, %cst_38 [1] : vector<8x32xf32> to vector<8xf32>
    %139 = vector.shape_cast %138 : vector<8xf32> to vector<8x1xf32>
    %140 = arith.addf %139, %15 : vector<8x1xf32>
    %141 = arith.addf %118, %129 : vector<8x1xf32>
    %cst_39 = arith.constant 2.000000e+00 : f32
    %142 = vector.broadcast %cst_39 : f32 to vector<8x1xf32>
    %143 = arith.mulf %142, %141 : vector<8x1xf32>
    %144 = arith.addf %107, %143 : vector<8x1xf32>
    %145 = arith.addf %144, %140 : vector<8x1xf32>
    %cst_40 = arith.constant 0.010416667 : f32
    %146 = vector.broadcast %cst_40 : f32 to vector<8x1xf32>
    %147 = arith.mulf %146, %145 : vector<8x1xf32>
    %148 = arith.addf %82, %147 : vector<8x1xf32>
    %c2_i32 = arith.constant 2 : i32
    %149 = arith.sitofp %c2_i32 : i32 to f32
    %cst_41 = arith.constant 6.250000e-02 : f32
    %150 = arith.mulf %149, %cst_41 : f32
    %cst_42 = arith.constant 0.000000e+00 : f32
    %151 = arith.addf %cst_42, %150 : f32
    %152 = vector.broadcast %151 : f32 to vector<1x32xf32>
    %153 = arith.mulf %152, %1 : vector<1x32xf32>
    %154 = vector.broadcast %153 : vector<1x32xf32> to vector<8x32xf32>
    %155 = arith.addf %9, %154 : vector<8x32xf32>
    %cst_43 = arith.constant 3.125000e-02 : f32
    %156 = arith.addf %151, %cst_43 : f32
    %157 = vector.broadcast %156 : f32 to vector<1x32xf32>
    %158 = arith.mulf %157, %1 : vector<1x32xf32>
    %159 = vector.broadcast %158 : vector<1x32xf32> to vector<8x32xf32>
    %160 = arith.addf %9, %159 : vector<8x32xf32>
    %cst_44 = arith.constant 6.250000e-02 : f32
    %161 = arith.addf %151, %cst_44 : f32
    %162 = vector.broadcast %161 : f32 to vector<1x32xf32>
    %163 = arith.mulf %162, %1 : vector<1x32xf32>
    %164 = vector.broadcast %163 : vector<1x32xf32> to vector<8x32xf32>
    %165 = arith.addf %9, %164 : vector<8x32xf32>
    %166 = vector.broadcast %148 : vector<8x1xf32> to vector<8x32xf32>
    %167 = arith.mulf %166, %11 : vector<8x32xf32>
    %168 = arith.addf %155, %167 : vector<8x32xf32>
    %169 = math.tanh %168 : vector<8x32xf32>
    %170 = arith.mulf %169, %13 : vector<8x32xf32>
    %cst_45 = arith.constant dense<0.000000e+00> : vector<8xf32>
    %171 = vector.multi_reduction <add>, %170, %cst_45 [1] : vector<8x32xf32> to vector<8xf32>
    %172 = vector.shape_cast %171 : vector<8xf32> to vector<8x1xf32>
    %173 = arith.addf %172, %15 : vector<8x1xf32>
    %cst_46 = arith.constant 3.125000e-02 : f32
    %174 = vector.broadcast %cst_46 : f32 to vector<8x1xf32>
    %175 = arith.mulf %174, %173 : vector<8x1xf32>
    %176 = arith.addf %148, %175 : vector<8x1xf32>
    %177 = vector.broadcast %176 : vector<8x1xf32> to vector<8x32xf32>
    %178 = arith.mulf %177, %11 : vector<8x32xf32>
    %179 = arith.addf %160, %178 : vector<8x32xf32>
    %180 = math.tanh %179 : vector<8x32xf32>
    %181 = arith.mulf %180, %13 : vector<8x32xf32>
    %cst_47 = arith.constant dense<0.000000e+00> : vector<8xf32>
    %182 = vector.multi_reduction <add>, %181, %cst_47 [1] : vector<8x32xf32> to vector<8xf32>
    %183 = vector.shape_cast %182 : vector<8xf32> to vector<8x1xf32>
    %184 = arith.addf %183, %15 : vector<8x1xf32>
    %cst_48 = arith.constant 3.125000e-02 : f32
    %185 = vector.broadcast %cst_48 : f32 to vector<8x1xf32>
    %186 = arith.mulf %185, %184 : vector<8x1xf32>
    %187 = arith.addf %148, %186 : vector<8x1xf32>
    %188 = vector.broadcast %187 : vector<8x1xf32> to vector<8x32xf32>
    %189 = arith.mulf %188, %11 : vector<8x32xf32>
    %190 = arith.addf %160, %189 : vector<8x32xf32>
    %191 = math.tanh %190 : vector<8x32xf32>
    %192 = arith.mulf %191, %13 : vector<8x32xf32>
    %cst_49 = arith.constant dense<0.000000e+00> : vector<8xf32>
    %193 = vector.multi_reduction <add>, %192, %cst_49 [1] : vector<8x32xf32> to vector<8xf32>
    %194 = vector.shape_cast %193 : vector<8xf32> to vector<8x1xf32>
    %195 = arith.addf %194, %15 : vector<8x1xf32>
    %cst_50 = arith.constant 6.250000e-02 : f32
    %196 = vector.broadcast %cst_50 : f32 to vector<8x1xf32>
    %197 = arith.mulf %196, %195 : vector<8x1xf32>
    %198 = arith.addf %148, %197 : vector<8x1xf32>
    %199 = vector.broadcast %198 : vector<8x1xf32> to vector<8x32xf32>
    %200 = arith.mulf %199, %11 : vector<8x32xf32>
    %201 = arith.addf %165, %200 : vector<8x32xf32>
    %202 = math.tanh %201 : vector<8x32xf32>
    %203 = arith.mulf %202, %13 : vector<8x32xf32>
    %cst_51 = arith.constant dense<0.000000e+00> : vector<8xf32>
    %204 = vector.multi_reduction <add>, %203, %cst_51 [1] : vector<8x32xf32> to vector<8xf32>
    %205 = vector.shape_cast %204 : vector<8xf32> to vector<8x1xf32>
    %206 = arith.addf %205, %15 : vector<8x1xf32>
    %207 = arith.addf %184, %195 : vector<8x1xf32>
    %cst_52 = arith.constant 2.000000e+00 : f32
    %208 = vector.broadcast %cst_52 : f32 to vector<8x1xf32>
    %209 = arith.mulf %208, %207 : vector<8x1xf32>
    %210 = arith.addf %173, %209 : vector<8x1xf32>
    %211 = arith.addf %210, %206 : vector<8x1xf32>
    %cst_53 = arith.constant 0.010416667 : f32
    %212 = vector.broadcast %cst_53 : f32 to vector<8x1xf32>
    %213 = arith.mulf %212, %211 : vector<8x1xf32>
    %214 = arith.addf %148, %213 : vector<8x1xf32>
    %c3_i32 = arith.constant 3 : i32
    %215 = arith.sitofp %c3_i32 : i32 to f32
    %cst_54 = arith.constant 6.250000e-02 : f32
    %216 = arith.mulf %215, %cst_54 : f32
    %cst_55 = arith.constant 0.000000e+00 : f32
    %217 = arith.addf %cst_55, %216 : f32
    %218 = vector.broadcast %217 : f32 to vector<1x32xf32>
    %219 = arith.mulf %218, %1 : vector<1x32xf32>
    %220 = vector.broadcast %219 : vector<1x32xf32> to vector<8x32xf32>
    %221 = arith.addf %9, %220 : vector<8x32xf32>
    %cst_56 = arith.constant 3.125000e-02 : f32
    %222 = arith.addf %217, %cst_56 : f32
    %223 = vector.broadcast %222 : f32 to vector<1x32xf32>
    %224 = arith.mulf %223, %1 : vector<1x32xf32>
    %225 = vector.broadcast %224 : vector<1x32xf32> to vector<8x32xf32>
    %226 = arith.addf %9, %225 : vector<8x32xf32>
    %cst_57 = arith.constant 6.250000e-02 : f32
    %227 = arith.addf %217, %cst_57 : f32
    %228 = vector.broadcast %227 : f32 to vector<1x32xf32>
    %229 = arith.mulf %228, %1 : vector<1x32xf32>
    %230 = vector.broadcast %229 : vector<1x32xf32> to vector<8x32xf32>
    %231 = arith.addf %9, %230 : vector<8x32xf32>
    %232 = vector.broadcast %214 : vector<8x1xf32> to vector<8x32xf32>
    %233 = arith.mulf %232, %11 : vector<8x32xf32>
    %234 = arith.addf %221, %233 : vector<8x32xf32>
    %235 = math.tanh %234 : vector<8x32xf32>
    %236 = arith.mulf %235, %13 : vector<8x32xf32>
    %cst_58 = arith.constant dense<0.000000e+00> : vector<8xf32>
    %237 = vector.multi_reduction <add>, %236, %cst_58 [1] : vector<8x32xf32> to vector<8xf32>
    %238 = vector.shape_cast %237 : vector<8xf32> to vector<8x1xf32>
    %239 = arith.addf %238, %15 : vector<8x1xf32>
    %cst_59 = arith.constant 3.125000e-02 : f32
    %240 = vector.broadcast %cst_59 : f32 to vector<8x1xf32>
    %241 = arith.mulf %240, %239 : vector<8x1xf32>
    %242 = arith.addf %214, %241 : vector<8x1xf32>
    %243 = vector.broadcast %242 : vector<8x1xf32> to vector<8x32xf32>
    %244 = arith.mulf %243, %11 : vector<8x32xf32>
    %245 = arith.addf %226, %244 : vector<8x32xf32>
    %246 = math.tanh %245 : vector<8x32xf32>
    %247 = arith.mulf %246, %13 : vector<8x32xf32>
    %cst_60 = arith.constant dense<0.000000e+00> : vector<8xf32>
    %248 = vector.multi_reduction <add>, %247, %cst_60 [1] : vector<8x32xf32> to vector<8xf32>
    %249 = vector.shape_cast %248 : vector<8xf32> to vector<8x1xf32>
    %250 = arith.addf %249, %15 : vector<8x1xf32>
    %cst_61 = arith.constant 3.125000e-02 : f32
    %251 = vector.broadcast %cst_61 : f32 to vector<8x1xf32>
    %252 = arith.mulf %251, %250 : vector<8x1xf32>
    %253 = arith.addf %214, %252 : vector<8x1xf32>
    %254 = vector.broadcast %253 : vector<8x1xf32> to vector<8x32xf32>
    %255 = arith.mulf %254, %11 : vector<8x32xf32>
    %256 = arith.addf %226, %255 : vector<8x32xf32>
    %257 = math.tanh %256 : vector<8x32xf32>
    %258 = arith.mulf %257, %13 : vector<8x32xf32>
    %cst_62 = arith.constant dense<0.000000e+00> : vector<8xf32>
    %259 = vector.multi_reduction <add>, %258, %cst_62 [1] : vector<8x32xf32> to vector<8xf32>
    %260 = vector.shape_cast %259 : vector<8xf32> to vector<8x1xf32>
    %261 = arith.addf %260, %15 : vector<8x1xf32>
    %cst_63 = arith.constant 6.250000e-02 : f32
    %262 = vector.broadcast %cst_63 : f32 to vector<8x1xf32>
    %263 = arith.mulf %262, %261 : vector<8x1xf32>
    %264 = arith.addf %214, %263 : vector<8x1xf32>
    %265 = vector.broadcast %264 : vector<8x1xf32> to vector<8x32xf32>
    %266 = arith.mulf %265, %11 : vector<8x32xf32>
    %267 = arith.addf %231, %266 : vector<8x32xf32>
    %268 = math.tanh %267 : vector<8x32xf32>
    %269 = arith.mulf %268, %13 : vector<8x32xf32>
    %cst_64 = arith.constant dense<0.000000e+00> : vector<8xf32>
    %270 = vector.multi_reduction <add>, %269, %cst_64 [1] : vector<8x32xf32> to vector<8xf32>
    %271 = vector.shape_cast %270 : vector<8xf32> to vector<8x1xf32>
    %272 = arith.addf %271, %15 : vector<8x1xf32>
    %273 = arith.addf %250, %261 : vector<8x1xf32>
    %cst_65 = arith.constant 2.000000e+00 : f32
    %274 = vector.broadcast %cst_65 : f32 to vector<8x1xf32>
    %275 = arith.mulf %274, %273 : vector<8x1xf32>
    %276 = arith.addf %239, %275 : vector<8x1xf32>
    %277 = arith.addf %276, %272 : vector<8x1xf32>
    %cst_66 = arith.constant 0.010416667 : f32
    %278 = vector.broadcast %cst_66 : f32 to vector<8x1xf32>
    %279 = arith.mulf %278, %277 : vector<8x1xf32>
    %280 = arith.addf %214, %279 : vector<8x1xf32>
    %c4_i32 = arith.constant 4 : i32
    %281 = arith.sitofp %c4_i32 : i32 to f32
    %cst_67 = arith.constant 6.250000e-02 : f32
    %282 = arith.mulf %281, %cst_67 : f32
    %cst_68 = arith.constant 0.000000e+00 : f32
    %283 = arith.addf %cst_68, %282 : f32
    %284 = vector.broadcast %283 : f32 to vector<1x32xf32>
    %285 = arith.mulf %284, %1 : vector<1x32xf32>
    %286 = vector.broadcast %285 : vector<1x32xf32> to vector<8x32xf32>
    %287 = arith.addf %9, %286 : vector<8x32xf32>
    %cst_69 = arith.constant 3.125000e-02 : f32
    %288 = arith.addf %283, %cst_69 : f32
    %289 = vector.broadcast %288 : f32 to vector<1x32xf32>
    %290 = arith.mulf %289, %1 : vector<1x32xf32>
    %291 = vector.broadcast %290 : vector<1x32xf32> to vector<8x32xf32>
    %292 = arith.addf %9, %291 : vector<8x32xf32>
    %cst_70 = arith.constant 6.250000e-02 : f32
    %293 = arith.addf %283, %cst_70 : f32
    %294 = vector.broadcast %293 : f32 to vector<1x32xf32>
    %295 = arith.mulf %294, %1 : vector<1x32xf32>
    %296 = vector.broadcast %295 : vector<1x32xf32> to vector<8x32xf32>
    %297 = arith.addf %9, %296 : vector<8x32xf32>
    %298 = vector.broadcast %280 : vector<8x1xf32> to vector<8x32xf32>
    %299 = arith.mulf %298, %11 : vector<8x32xf32>
    %300 = arith.addf %287, %299 : vector<8x32xf32>
    %301 = math.tanh %300 : vector<8x32xf32>
    %302 = arith.mulf %301, %13 : vector<8x32xf32>
    %cst_71 = arith.constant dense<0.000000e+00> : vector<8xf32>
    %303 = vector.multi_reduction <add>, %302, %cst_71 [1] : vector<8x32xf32> to vector<8xf32>
    %304 = vector.shape_cast %303 : vector<8xf32> to vector<8x1xf32>
    %305 = arith.addf %304, %15 : vector<8x1xf32>
    %cst_72 = arith.constant 3.125000e-02 : f32
    %306 = vector.broadcast %cst_72 : f32 to vector<8x1xf32>
    %307 = arith.mulf %306, %305 : vector<8x1xf32>
    %308 = arith.addf %280, %307 : vector<8x1xf32>
    %309 = vector.broadcast %308 : vector<8x1xf32> to vector<8x32xf32>
    %310 = arith.mulf %309, %11 : vector<8x32xf32>
    %311 = arith.addf %292, %310 : vector<8x32xf32>
    %312 = math.tanh %311 : vector<8x32xf32>
    %313 = arith.mulf %312, %13 : vector<8x32xf32>
    %cst_73 = arith.constant dense<0.000000e+00> : vector<8xf32>
    %314 = vector.multi_reduction <add>, %313, %cst_73 [1] : vector<8x32xf32> to vector<8xf32>
    %315 = vector.shape_cast %314 : vector<8xf32> to vector<8x1xf32>
    %316 = arith.addf %315, %15 : vector<8x1xf32>
    %cst_74 = arith.constant 3.125000e-02 : f32
    %317 = vector.broadcast %cst_74 : f32 to vector<8x1xf32>
    %318 = arith.mulf %317, %316 : vector<8x1xf32>
    %319 = arith.addf %280, %318 : vector<8x1xf32>
    %320 = vector.broadcast %319 : vector<8x1xf32> to vector<8x32xf32>
    %321 = arith.mulf %320, %11 : vector<8x32xf32>
    %322 = arith.addf %292, %321 : vector<8x32xf32>
    %323 = math.tanh %322 : vector<8x32xf32>
    %324 = arith.mulf %323, %13 : vector<8x32xf32>
    %cst_75 = arith.constant dense<0.000000e+00> : vector<8xf32>
    %325 = vector.multi_reduction <add>, %324, %cst_75 [1] : vector<8x32xf32> to vector<8xf32>
    %326 = vector.shape_cast %325 : vector<8xf32> to vector<8x1xf32>
    %327 = arith.addf %326, %15 : vector<8x1xf32>
    %cst_76 = arith.constant 6.250000e-02 : f32
    %328 = vector.broadcast %cst_76 : f32 to vector<8x1xf32>
    %329 = arith.mulf %328, %327 : vector<8x1xf32>
    %330 = arith.addf %280, %329 : vector<8x1xf32>
    %331 = vector.broadcast %330 : vector<8x1xf32> to vector<8x32xf32>
    %332 = arith.mulf %331, %11 : vector<8x32xf32>
    %333 = arith.addf %297, %332 : vector<8x32xf32>
    %334 = math.tanh %333 : vector<8x32xf32>
    %335 = arith.mulf %334, %13 : vector<8x32xf32>
    %cst_77 = arith.constant dense<0.000000e+00> : vector<8xf32>
    %336 = vector.multi_reduction <add>, %335, %cst_77 [1] : vector<8x32xf32> to vector<8xf32>
    %337 = vector.shape_cast %336 : vector<8xf32> to vector<8x1xf32>
    %338 = arith.addf %337, %15 : vector<8x1xf32>
    %339 = arith.addf %316, %327 : vector<8x1xf32>
    %cst_78 = arith.constant 2.000000e+00 : f32
    %340 = vector.broadcast %cst_78 : f32 to vector<8x1xf32>
    %341 = arith.mulf %340, %339 : vector<8x1xf32>
    %342 = arith.addf %305, %341 : vector<8x1xf32>
    %343 = arith.addf %342, %338 : vector<8x1xf32>
    %cst_79 = arith.constant 0.010416667 : f32
    %344 = vector.broadcast %cst_79 : f32 to vector<8x1xf32>
    %345 = arith.mulf %344, %343 : vector<8x1xf32>
    %346 = arith.addf %280, %345 : vector<8x1xf32>
    %c5_i32 = arith.constant 5 : i32
    %347 = arith.sitofp %c5_i32 : i32 to f32
    %cst_80 = arith.constant 6.250000e-02 : f32
    %348 = arith.mulf %347, %cst_80 : f32
    %cst_81 = arith.constant 0.000000e+00 : f32
    %349 = arith.addf %cst_81, %348 : f32
    %350 = vector.broadcast %349 : f32 to vector<1x32xf32>
    %351 = arith.mulf %350, %1 : vector<1x32xf32>
    %352 = vector.broadcast %351 : vector<1x32xf32> to vector<8x32xf32>
    %353 = arith.addf %9, %352 : vector<8x32xf32>
    %cst_82 = arith.constant 3.125000e-02 : f32
    %354 = arith.addf %349, %cst_82 : f32
    %355 = vector.broadcast %354 : f32 to vector<1x32xf32>
    %356 = arith.mulf %355, %1 : vector<1x32xf32>
    %357 = vector.broadcast %356 : vector<1x32xf32> to vector<8x32xf32>
    %358 = arith.addf %9, %357 : vector<8x32xf32>
    %cst_83 = arith.constant 6.250000e-02 : f32
    %359 = arith.addf %349, %cst_83 : f32
    %360 = vector.broadcast %359 : f32 to vector<1x32xf32>
    %361 = arith.mulf %360, %1 : vector<1x32xf32>
    %362 = vector.broadcast %361 : vector<1x32xf32> to vector<8x32xf32>
    %363 = arith.addf %9, %362 : vector<8x32xf32>
    %364 = vector.broadcast %346 : vector<8x1xf32> to vector<8x32xf32>
    %365 = arith.mulf %364, %11 : vector<8x32xf32>
    %366 = arith.addf %353, %365 : vector<8x32xf32>
    %367 = math.tanh %366 : vector<8x32xf32>
    %368 = arith.mulf %367, %13 : vector<8x32xf32>
    %cst_84 = arith.constant dense<0.000000e+00> : vector<8xf32>
    %369 = vector.multi_reduction <add>, %368, %cst_84 [1] : vector<8x32xf32> to vector<8xf32>
    %370 = vector.shape_cast %369 : vector<8xf32> to vector<8x1xf32>
    %371 = arith.addf %370, %15 : vector<8x1xf32>
    %cst_85 = arith.constant 3.125000e-02 : f32
    %372 = vector.broadcast %cst_85 : f32 to vector<8x1xf32>
    %373 = arith.mulf %372, %371 : vector<8x1xf32>
    %374 = arith.addf %346, %373 : vector<8x1xf32>
    %375 = vector.broadcast %374 : vector<8x1xf32> to vector<8x32xf32>
    %376 = arith.mulf %375, %11 : vector<8x32xf32>
    %377 = arith.addf %358, %376 : vector<8x32xf32>
    %378 = math.tanh %377 : vector<8x32xf32>
    %379 = arith.mulf %378, %13 : vector<8x32xf32>
    %cst_86 = arith.constant dense<0.000000e+00> : vector<8xf32>
    %380 = vector.multi_reduction <add>, %379, %cst_86 [1] : vector<8x32xf32> to vector<8xf32>
    %381 = vector.shape_cast %380 : vector<8xf32> to vector<8x1xf32>
    %382 = arith.addf %381, %15 : vector<8x1xf32>
    %cst_87 = arith.constant 3.125000e-02 : f32
    %383 = vector.broadcast %cst_87 : f32 to vector<8x1xf32>
    %384 = arith.mulf %383, %382 : vector<8x1xf32>
    %385 = arith.addf %346, %384 : vector<8x1xf32>
    %386 = vector.broadcast %385 : vector<8x1xf32> to vector<8x32xf32>
    %387 = arith.mulf %386, %11 : vector<8x32xf32>
    %388 = arith.addf %358, %387 : vector<8x32xf32>
    %389 = math.tanh %388 : vector<8x32xf32>
    %390 = arith.mulf %389, %13 : vector<8x32xf32>
    %cst_88 = arith.constant dense<0.000000e+00> : vector<8xf32>
    %391 = vector.multi_reduction <add>, %390, %cst_88 [1] : vector<8x32xf32> to vector<8xf32>
    %392 = vector.shape_cast %391 : vector<8xf32> to vector<8x1xf32>
    %393 = arith.addf %392, %15 : vector<8x1xf32>
    %cst_89 = arith.constant 6.250000e-02 : f32
    %394 = vector.broadcast %cst_89 : f32 to vector<8x1xf32>
    %395 = arith.mulf %394, %393 : vector<8x1xf32>
    %396 = arith.addf %346, %395 : vector<8x1xf32>
    %397 = vector.broadcast %396 : vector<8x1xf32> to vector<8x32xf32>
    %398 = arith.mulf %397, %11 : vector<8x32xf32>
    %399 = arith.addf %363, %398 : vector<8x32xf32>
    %400 = math.tanh %399 : vector<8x32xf32>
    %401 = arith.mulf %400, %13 : vector<8x32xf32>
    %cst_90 = arith.constant dense<0.000000e+00> : vector<8xf32>
    %402 = vector.multi_reduction <add>, %401, %cst_90 [1] : vector<8x32xf32> to vector<8xf32>
    %403 = vector.shape_cast %402 : vector<8xf32> to vector<8x1xf32>
    %404 = arith.addf %403, %15 : vector<8x1xf32>
    %405 = arith.addf %382, %393 : vector<8x1xf32>
    %cst_91 = arith.constant 2.000000e+00 : f32
    %406 = vector.broadcast %cst_91 : f32 to vector<8x1xf32>
    %407 = arith.mulf %406, %405 : vector<8x1xf32>
    %408 = arith.addf %371, %407 : vector<8x1xf32>
    %409 = arith.addf %408, %404 : vector<8x1xf32>
    %cst_92 = arith.constant 0.010416667 : f32
    %410 = vector.broadcast %cst_92 : f32 to vector<8x1xf32>
    %411 = arith.mulf %410, %409 : vector<8x1xf32>
    %412 = arith.addf %346, %411 : vector<8x1xf32>
    %c6_i32 = arith.constant 6 : i32
    %413 = arith.sitofp %c6_i32 : i32 to f32
    %cst_93 = arith.constant 6.250000e-02 : f32
    %414 = arith.mulf %413, %cst_93 : f32
    %cst_94 = arith.constant 0.000000e+00 : f32
    %415 = arith.addf %cst_94, %414 : f32
    %416 = vector.broadcast %415 : f32 to vector<1x32xf32>
    %417 = arith.mulf %416, %1 : vector<1x32xf32>
    %418 = vector.broadcast %417 : vector<1x32xf32> to vector<8x32xf32>
    %419 = arith.addf %9, %418 : vector<8x32xf32>
    %cst_95 = arith.constant 3.125000e-02 : f32
    %420 = arith.addf %415, %cst_95 : f32
    %421 = vector.broadcast %420 : f32 to vector<1x32xf32>
    %422 = arith.mulf %421, %1 : vector<1x32xf32>
    %423 = vector.broadcast %422 : vector<1x32xf32> to vector<8x32xf32>
    %424 = arith.addf %9, %423 : vector<8x32xf32>
    %cst_96 = arith.constant 6.250000e-02 : f32
    %425 = arith.addf %415, %cst_96 : f32
    %426 = vector.broadcast %425 : f32 to vector<1x32xf32>
    %427 = arith.mulf %426, %1 : vector<1x32xf32>
    %428 = vector.broadcast %427 : vector<1x32xf32> to vector<8x32xf32>
    %429 = arith.addf %9, %428 : vector<8x32xf32>
    %430 = vector.broadcast %412 : vector<8x1xf32> to vector<8x32xf32>
    %431 = arith.mulf %430, %11 : vector<8x32xf32>
    %432 = arith.addf %419, %431 : vector<8x32xf32>
    %433 = math.tanh %432 : vector<8x32xf32>
    %434 = arith.mulf %433, %13 : vector<8x32xf32>
    %cst_97 = arith.constant dense<0.000000e+00> : vector<8xf32>
    %435 = vector.multi_reduction <add>, %434, %cst_97 [1] : vector<8x32xf32> to vector<8xf32>
    %436 = vector.shape_cast %435 : vector<8xf32> to vector<8x1xf32>
    %437 = arith.addf %436, %15 : vector<8x1xf32>
    %cst_98 = arith.constant 3.125000e-02 : f32
    %438 = vector.broadcast %cst_98 : f32 to vector<8x1xf32>
    %439 = arith.mulf %438, %437 : vector<8x1xf32>
    %440 = arith.addf %412, %439 : vector<8x1xf32>
    %441 = vector.broadcast %440 : vector<8x1xf32> to vector<8x32xf32>
    %442 = arith.mulf %441, %11 : vector<8x32xf32>
    %443 = arith.addf %424, %442 : vector<8x32xf32>
    %444 = math.tanh %443 : vector<8x32xf32>
    %445 = arith.mulf %444, %13 : vector<8x32xf32>
    %cst_99 = arith.constant dense<0.000000e+00> : vector<8xf32>
    %446 = vector.multi_reduction <add>, %445, %cst_99 [1] : vector<8x32xf32> to vector<8xf32>
    %447 = vector.shape_cast %446 : vector<8xf32> to vector<8x1xf32>
    %448 = arith.addf %447, %15 : vector<8x1xf32>
    %cst_100 = arith.constant 3.125000e-02 : f32
    %449 = vector.broadcast %cst_100 : f32 to vector<8x1xf32>
    %450 = arith.mulf %449, %448 : vector<8x1xf32>
    %451 = arith.addf %412, %450 : vector<8x1xf32>
    %452 = vector.broadcast %451 : vector<8x1xf32> to vector<8x32xf32>
    %453 = arith.mulf %452, %11 : vector<8x32xf32>
    %454 = arith.addf %424, %453 : vector<8x32xf32>
    %455 = math.tanh %454 : vector<8x32xf32>
    %456 = arith.mulf %455, %13 : vector<8x32xf32>
    %cst_101 = arith.constant dense<0.000000e+00> : vector<8xf32>
    %457 = vector.multi_reduction <add>, %456, %cst_101 [1] : vector<8x32xf32> to vector<8xf32>
    %458 = vector.shape_cast %457 : vector<8xf32> to vector<8x1xf32>
    %459 = arith.addf %458, %15 : vector<8x1xf32>
    %cst_102 = arith.constant 6.250000e-02 : f32
    %460 = vector.broadcast %cst_102 : f32 to vector<8x1xf32>
    %461 = arith.mulf %460, %459 : vector<8x1xf32>
    %462 = arith.addf %412, %461 : vector<8x1xf32>
    %463 = vector.broadcast %462 : vector<8x1xf32> to vector<8x32xf32>
    %464 = arith.mulf %463, %11 : vector<8x32xf32>
    %465 = arith.addf %429, %464 : vector<8x32xf32>
    %466 = math.tanh %465 : vector<8x32xf32>
    %467 = arith.mulf %466, %13 : vector<8x32xf32>
    %cst_103 = arith.constant dense<0.000000e+00> : vector<8xf32>
    %468 = vector.multi_reduction <add>, %467, %cst_103 [1] : vector<8x32xf32> to vector<8xf32>
    %469 = vector.shape_cast %468 : vector<8xf32> to vector<8x1xf32>
    %470 = arith.addf %469, %15 : vector<8x1xf32>
    %471 = arith.addf %448, %459 : vector<8x1xf32>
    %cst_104 = arith.constant 2.000000e+00 : f32
    %472 = vector.broadcast %cst_104 : f32 to vector<8x1xf32>
    %473 = arith.mulf %472, %471 : vector<8x1xf32>
    %474 = arith.addf %437, %473 : vector<8x1xf32>
    %475 = arith.addf %474, %470 : vector<8x1xf32>
    %cst_105 = arith.constant 0.010416667 : f32
    %476 = vector.broadcast %cst_105 : f32 to vector<8x1xf32>
    %477 = arith.mulf %476, %475 : vector<8x1xf32>
    %478 = arith.addf %412, %477 : vector<8x1xf32>
    %c7_i32 = arith.constant 7 : i32
    %479 = arith.sitofp %c7_i32 : i32 to f32
    %cst_106 = arith.constant 6.250000e-02 : f32
    %480 = arith.mulf %479, %cst_106 : f32
    %cst_107 = arith.constant 0.000000e+00 : f32
    %481 = arith.addf %cst_107, %480 : f32
    %482 = vector.broadcast %481 : f32 to vector<1x32xf32>
    %483 = arith.mulf %482, %1 : vector<1x32xf32>
    %484 = vector.broadcast %483 : vector<1x32xf32> to vector<8x32xf32>
    %485 = arith.addf %9, %484 : vector<8x32xf32>
    %cst_108 = arith.constant 3.125000e-02 : f32
    %486 = arith.addf %481, %cst_108 : f32
    %487 = vector.broadcast %486 : f32 to vector<1x32xf32>
    %488 = arith.mulf %487, %1 : vector<1x32xf32>
    %489 = vector.broadcast %488 : vector<1x32xf32> to vector<8x32xf32>
    %490 = arith.addf %9, %489 : vector<8x32xf32>
    %cst_109 = arith.constant 6.250000e-02 : f32
    %491 = arith.addf %481, %cst_109 : f32
    %492 = vector.broadcast %491 : f32 to vector<1x32xf32>
    %493 = arith.mulf %492, %1 : vector<1x32xf32>
    %494 = vector.broadcast %493 : vector<1x32xf32> to vector<8x32xf32>
    %495 = arith.addf %9, %494 : vector<8x32xf32>
    %496 = vector.broadcast %478 : vector<8x1xf32> to vector<8x32xf32>
    %497 = arith.mulf %496, %11 : vector<8x32xf32>
    %498 = arith.addf %485, %497 : vector<8x32xf32>
    %499 = math.tanh %498 : vector<8x32xf32>
    %500 = arith.mulf %499, %13 : vector<8x32xf32>
    %cst_110 = arith.constant dense<0.000000e+00> : vector<8xf32>
    %501 = vector.multi_reduction <add>, %500, %cst_110 [1] : vector<8x32xf32> to vector<8xf32>
    %502 = vector.shape_cast %501 : vector<8xf32> to vector<8x1xf32>
    %503 = arith.addf %502, %15 : vector<8x1xf32>
    %cst_111 = arith.constant 3.125000e-02 : f32
    %504 = vector.broadcast %cst_111 : f32 to vector<8x1xf32>
    %505 = arith.mulf %504, %503 : vector<8x1xf32>
    %506 = arith.addf %478, %505 : vector<8x1xf32>
    %507 = vector.broadcast %506 : vector<8x1xf32> to vector<8x32xf32>
    %508 = arith.mulf %507, %11 : vector<8x32xf32>
    %509 = arith.addf %490, %508 : vector<8x32xf32>
    %510 = math.tanh %509 : vector<8x32xf32>
    %511 = arith.mulf %510, %13 : vector<8x32xf32>
    %cst_112 = arith.constant dense<0.000000e+00> : vector<8xf32>
    %512 = vector.multi_reduction <add>, %511, %cst_112 [1] : vector<8x32xf32> to vector<8xf32>
    %513 = vector.shape_cast %512 : vector<8xf32> to vector<8x1xf32>
    %514 = arith.addf %513, %15 : vector<8x1xf32>
    %cst_113 = arith.constant 3.125000e-02 : f32
    %515 = vector.broadcast %cst_113 : f32 to vector<8x1xf32>
    %516 = arith.mulf %515, %514 : vector<8x1xf32>
    %517 = arith.addf %478, %516 : vector<8x1xf32>
    %518 = vector.broadcast %517 : vector<8x1xf32> to vector<8x32xf32>
    %519 = arith.mulf %518, %11 : vector<8x32xf32>
    %520 = arith.addf %490, %519 : vector<8x32xf32>
    %521 = math.tanh %520 : vector<8x32xf32>
    %522 = arith.mulf %521, %13 : vector<8x32xf32>
    %cst_114 = arith.constant dense<0.000000e+00> : vector<8xf32>
    %523 = vector.multi_reduction <add>, %522, %cst_114 [1] : vector<8x32xf32> to vector<8xf32>
    %524 = vector.shape_cast %523 : vector<8xf32> to vector<8x1xf32>
    %525 = arith.addf %524, %15 : vector<8x1xf32>
    %cst_115 = arith.constant 6.250000e-02 : f32
    %526 = vector.broadcast %cst_115 : f32 to vector<8x1xf32>
    %527 = arith.mulf %526, %525 : vector<8x1xf32>
    %528 = arith.addf %478, %527 : vector<8x1xf32>
    %529 = vector.broadcast %528 : vector<8x1xf32> to vector<8x32xf32>
    %530 = arith.mulf %529, %11 : vector<8x32xf32>
    %531 = arith.addf %495, %530 : vector<8x32xf32>
    %532 = math.tanh %531 : vector<8x32xf32>
    %533 = arith.mulf %532, %13 : vector<8x32xf32>
    %cst_116 = arith.constant dense<0.000000e+00> : vector<8xf32>
    %534 = vector.multi_reduction <add>, %533, %cst_116 [1] : vector<8x32xf32> to vector<8xf32>
    %535 = vector.shape_cast %534 : vector<8xf32> to vector<8x1xf32>
    %536 = arith.addf %535, %15 : vector<8x1xf32>
    %537 = arith.addf %514, %525 : vector<8x1xf32>
    %cst_117 = arith.constant 2.000000e+00 : f32
    %538 = vector.broadcast %cst_117 : f32 to vector<8x1xf32>
    %539 = arith.mulf %538, %537 : vector<8x1xf32>
    %540 = arith.addf %503, %539 : vector<8x1xf32>
    %541 = arith.addf %540, %536 : vector<8x1xf32>
    %cst_118 = arith.constant 0.010416667 : f32
    %542 = vector.broadcast %cst_118 : f32 to vector<8x1xf32>
    %543 = arith.mulf %542, %541 : vector<8x1xf32>
    %544 = arith.addf %478, %543 : vector<8x1xf32>
    %c8_i32 = arith.constant 8 : i32
    %545 = arith.sitofp %c8_i32 : i32 to f32
    %cst_119 = arith.constant 6.250000e-02 : f32
    %546 = arith.mulf %545, %cst_119 : f32
    %cst_120 = arith.constant 0.000000e+00 : f32
    %547 = arith.addf %cst_120, %546 : f32
    %548 = vector.broadcast %547 : f32 to vector<1x32xf32>
    %549 = arith.mulf %548, %1 : vector<1x32xf32>
    %550 = vector.broadcast %549 : vector<1x32xf32> to vector<8x32xf32>
    %551 = arith.addf %9, %550 : vector<8x32xf32>
    %cst_121 = arith.constant 3.125000e-02 : f32
    %552 = arith.addf %547, %cst_121 : f32
    %553 = vector.broadcast %552 : f32 to vector<1x32xf32>
    %554 = arith.mulf %553, %1 : vector<1x32xf32>
    %555 = vector.broadcast %554 : vector<1x32xf32> to vector<8x32xf32>
    %556 = arith.addf %9, %555 : vector<8x32xf32>
    %cst_122 = arith.constant 6.250000e-02 : f32
    %557 = arith.addf %547, %cst_122 : f32
    %558 = vector.broadcast %557 : f32 to vector<1x32xf32>
    %559 = arith.mulf %558, %1 : vector<1x32xf32>
    %560 = vector.broadcast %559 : vector<1x32xf32> to vector<8x32xf32>
    %561 = arith.addf %9, %560 : vector<8x32xf32>
    %562 = vector.broadcast %544 : vector<8x1xf32> to vector<8x32xf32>
    %563 = arith.mulf %562, %11 : vector<8x32xf32>
    %564 = arith.addf %551, %563 : vector<8x32xf32>
    %565 = math.tanh %564 : vector<8x32xf32>
    %566 = arith.mulf %565, %13 : vector<8x32xf32>
    %cst_123 = arith.constant dense<0.000000e+00> : vector<8xf32>
    %567 = vector.multi_reduction <add>, %566, %cst_123 [1] : vector<8x32xf32> to vector<8xf32>
    %568 = vector.shape_cast %567 : vector<8xf32> to vector<8x1xf32>
    %569 = arith.addf %568, %15 : vector<8x1xf32>
    %cst_124 = arith.constant 3.125000e-02 : f32
    %570 = vector.broadcast %cst_124 : f32 to vector<8x1xf32>
    %571 = arith.mulf %570, %569 : vector<8x1xf32>
    %572 = arith.addf %544, %571 : vector<8x1xf32>
    %573 = vector.broadcast %572 : vector<8x1xf32> to vector<8x32xf32>
    %574 = arith.mulf %573, %11 : vector<8x32xf32>
    %575 = arith.addf %556, %574 : vector<8x32xf32>
    %576 = math.tanh %575 : vector<8x32xf32>
    %577 = arith.mulf %576, %13 : vector<8x32xf32>
    %cst_125 = arith.constant dense<0.000000e+00> : vector<8xf32>
    %578 = vector.multi_reduction <add>, %577, %cst_125 [1] : vector<8x32xf32> to vector<8xf32>
    %579 = vector.shape_cast %578 : vector<8xf32> to vector<8x1xf32>
    %580 = arith.addf %579, %15 : vector<8x1xf32>
    %cst_126 = arith.constant 3.125000e-02 : f32
    %581 = vector.broadcast %cst_126 : f32 to vector<8x1xf32>
    %582 = arith.mulf %581, %580 : vector<8x1xf32>
    %583 = arith.addf %544, %582 : vector<8x1xf32>
    %584 = vector.broadcast %583 : vector<8x1xf32> to vector<8x32xf32>
    %585 = arith.mulf %584, %11 : vector<8x32xf32>
    %586 = arith.addf %556, %585 : vector<8x32xf32>
    %587 = math.tanh %586 : vector<8x32xf32>
    %588 = arith.mulf %587, %13 : vector<8x32xf32>
    %cst_127 = arith.constant dense<0.000000e+00> : vector<8xf32>
    %589 = vector.multi_reduction <add>, %588, %cst_127 [1] : vector<8x32xf32> to vector<8xf32>
    %590 = vector.shape_cast %589 : vector<8xf32> to vector<8x1xf32>
    %591 = arith.addf %590, %15 : vector<8x1xf32>
    %cst_128 = arith.constant 6.250000e-02 : f32
    %592 = vector.broadcast %cst_128 : f32 to vector<8x1xf32>
    %593 = arith.mulf %592, %591 : vector<8x1xf32>
    %594 = arith.addf %544, %593 : vector<8x1xf32>
    %595 = vector.broadcast %594 : vector<8x1xf32> to vector<8x32xf32>
    %596 = arith.mulf %595, %11 : vector<8x32xf32>
    %597 = arith.addf %561, %596 : vector<8x32xf32>
    %598 = math.tanh %597 : vector<8x32xf32>
    %599 = arith.mulf %598, %13 : vector<8x32xf32>
    %cst_129 = arith.constant dense<0.000000e+00> : vector<8xf32>
    %600 = vector.multi_reduction <add>, %599, %cst_129 [1] : vector<8x32xf32> to vector<8xf32>
    %601 = vector.shape_cast %600 : vector<8xf32> to vector<8x1xf32>
    %602 = arith.addf %601, %15 : vector<8x1xf32>
    %603 = arith.addf %580, %591 : vector<8x1xf32>
    %cst_130 = arith.constant 2.000000e+00 : f32
    %604 = vector.broadcast %cst_130 : f32 to vector<8x1xf32>
    %605 = arith.mulf %604, %603 : vector<8x1xf32>
    %606 = arith.addf %569, %605 : vector<8x1xf32>
    %607 = arith.addf %606, %602 : vector<8x1xf32>
    %cst_131 = arith.constant 0.010416667 : f32
    %608 = vector.broadcast %cst_131 : f32 to vector<8x1xf32>
    %609 = arith.mulf %608, %607 : vector<8x1xf32>
    %610 = arith.addf %544, %609 : vector<8x1xf32>
    %c9_i32 = arith.constant 9 : i32
    %611 = arith.sitofp %c9_i32 : i32 to f32
    %cst_132 = arith.constant 6.250000e-02 : f32
    %612 = arith.mulf %611, %cst_132 : f32
    %cst_133 = arith.constant 0.000000e+00 : f32
    %613 = arith.addf %cst_133, %612 : f32
    %614 = vector.broadcast %613 : f32 to vector<1x32xf32>
    %615 = arith.mulf %614, %1 : vector<1x32xf32>
    %616 = vector.broadcast %615 : vector<1x32xf32> to vector<8x32xf32>
    %617 = arith.addf %9, %616 : vector<8x32xf32>
    %cst_134 = arith.constant 3.125000e-02 : f32
    %618 = arith.addf %613, %cst_134 : f32
    %619 = vector.broadcast %618 : f32 to vector<1x32xf32>
    %620 = arith.mulf %619, %1 : vector<1x32xf32>
    %621 = vector.broadcast %620 : vector<1x32xf32> to vector<8x32xf32>
    %622 = arith.addf %9, %621 : vector<8x32xf32>
    %cst_135 = arith.constant 6.250000e-02 : f32
    %623 = arith.addf %613, %cst_135 : f32
    %624 = vector.broadcast %623 : f32 to vector<1x32xf32>
    %625 = arith.mulf %624, %1 : vector<1x32xf32>
    %626 = vector.broadcast %625 : vector<1x32xf32> to vector<8x32xf32>
    %627 = arith.addf %9, %626 : vector<8x32xf32>
    %628 = vector.broadcast %610 : vector<8x1xf32> to vector<8x32xf32>
    %629 = arith.mulf %628, %11 : vector<8x32xf32>
    %630 = arith.addf %617, %629 : vector<8x32xf32>
    %631 = math.tanh %630 : vector<8x32xf32>
    %632 = arith.mulf %631, %13 : vector<8x32xf32>
    %cst_136 = arith.constant dense<0.000000e+00> : vector<8xf32>
    %633 = vector.multi_reduction <add>, %632, %cst_136 [1] : vector<8x32xf32> to vector<8xf32>
    %634 = vector.shape_cast %633 : vector<8xf32> to vector<8x1xf32>
    %635 = arith.addf %634, %15 : vector<8x1xf32>
    %cst_137 = arith.constant 3.125000e-02 : f32
    %636 = vector.broadcast %cst_137 : f32 to vector<8x1xf32>
    %637 = arith.mulf %636, %635 : vector<8x1xf32>
    %638 = arith.addf %610, %637 : vector<8x1xf32>
    %639 = vector.broadcast %638 : vector<8x1xf32> to vector<8x32xf32>
    %640 = arith.mulf %639, %11 : vector<8x32xf32>
    %641 = arith.addf %622, %640 : vector<8x32xf32>
    %642 = math.tanh %641 : vector<8x32xf32>
    %643 = arith.mulf %642, %13 : vector<8x32xf32>
    %cst_138 = arith.constant dense<0.000000e+00> : vector<8xf32>
    %644 = vector.multi_reduction <add>, %643, %cst_138 [1] : vector<8x32xf32> to vector<8xf32>
    %645 = vector.shape_cast %644 : vector<8xf32> to vector<8x1xf32>
    %646 = arith.addf %645, %15 : vector<8x1xf32>
    %cst_139 = arith.constant 3.125000e-02 : f32
    %647 = vector.broadcast %cst_139 : f32 to vector<8x1xf32>
    %648 = arith.mulf %647, %646 : vector<8x1xf32>
    %649 = arith.addf %610, %648 : vector<8x1xf32>
    %650 = vector.broadcast %649 : vector<8x1xf32> to vector<8x32xf32>
    %651 = arith.mulf %650, %11 : vector<8x32xf32>
    %652 = arith.addf %622, %651 : vector<8x32xf32>
    %653 = math.tanh %652 : vector<8x32xf32>
    %654 = arith.mulf %653, %13 : vector<8x32xf32>
    %cst_140 = arith.constant dense<0.000000e+00> : vector<8xf32>
    %655 = vector.multi_reduction <add>, %654, %cst_140 [1] : vector<8x32xf32> to vector<8xf32>
    %656 = vector.shape_cast %655 : vector<8xf32> to vector<8x1xf32>
    %657 = arith.addf %656, %15 : vector<8x1xf32>
    %cst_141 = arith.constant 6.250000e-02 : f32
    %658 = vector.broadcast %cst_141 : f32 to vector<8x1xf32>
    %659 = arith.mulf %658, %657 : vector<8x1xf32>
    %660 = arith.addf %610, %659 : vector<8x1xf32>
    %661 = vector.broadcast %660 : vector<8x1xf32> to vector<8x32xf32>
    %662 = arith.mulf %661, %11 : vector<8x32xf32>
    %663 = arith.addf %627, %662 : vector<8x32xf32>
    %664 = math.tanh %663 : vector<8x32xf32>
    %665 = arith.mulf %664, %13 : vector<8x32xf32>
    %cst_142 = arith.constant dense<0.000000e+00> : vector<8xf32>
    %666 = vector.multi_reduction <add>, %665, %cst_142 [1] : vector<8x32xf32> to vector<8xf32>
    %667 = vector.shape_cast %666 : vector<8xf32> to vector<8x1xf32>
    %668 = arith.addf %667, %15 : vector<8x1xf32>
    %669 = arith.addf %646, %657 : vector<8x1xf32>
    %cst_143 = arith.constant 2.000000e+00 : f32
    %670 = vector.broadcast %cst_143 : f32 to vector<8x1xf32>
    %671 = arith.mulf %670, %669 : vector<8x1xf32>
    %672 = arith.addf %635, %671 : vector<8x1xf32>
    %673 = arith.addf %672, %668 : vector<8x1xf32>
    %cst_144 = arith.constant 0.010416667 : f32
    %674 = vector.broadcast %cst_144 : f32 to vector<8x1xf32>
    %675 = arith.mulf %674, %673 : vector<8x1xf32>
    %676 = arith.addf %610, %675 : vector<8x1xf32>
    %c10_i32 = arith.constant 10 : i32
    %677 = arith.sitofp %c10_i32 : i32 to f32
    %cst_145 = arith.constant 6.250000e-02 : f32
    %678 = arith.mulf %677, %cst_145 : f32
    %cst_146 = arith.constant 0.000000e+00 : f32
    %679 = arith.addf %cst_146, %678 : f32
    %680 = vector.broadcast %679 : f32 to vector<1x32xf32>
    %681 = arith.mulf %680, %1 : vector<1x32xf32>
    %682 = vector.broadcast %681 : vector<1x32xf32> to vector<8x32xf32>
    %683 = arith.addf %9, %682 : vector<8x32xf32>
    %cst_147 = arith.constant 3.125000e-02 : f32
    %684 = arith.addf %679, %cst_147 : f32
    %685 = vector.broadcast %684 : f32 to vector<1x32xf32>
    %686 = arith.mulf %685, %1 : vector<1x32xf32>
    %687 = vector.broadcast %686 : vector<1x32xf32> to vector<8x32xf32>
    %688 = arith.addf %9, %687 : vector<8x32xf32>
    %cst_148 = arith.constant 6.250000e-02 : f32
    %689 = arith.addf %679, %cst_148 : f32
    %690 = vector.broadcast %689 : f32 to vector<1x32xf32>
    %691 = arith.mulf %690, %1 : vector<1x32xf32>
    %692 = vector.broadcast %691 : vector<1x32xf32> to vector<8x32xf32>
    %693 = arith.addf %9, %692 : vector<8x32xf32>
    %694 = vector.broadcast %676 : vector<8x1xf32> to vector<8x32xf32>
    %695 = arith.mulf %694, %11 : vector<8x32xf32>
    %696 = arith.addf %683, %695 : vector<8x32xf32>
    %697 = math.tanh %696 : vector<8x32xf32>
    %698 = arith.mulf %697, %13 : vector<8x32xf32>
    %cst_149 = arith.constant dense<0.000000e+00> : vector<8xf32>
    %699 = vector.multi_reduction <add>, %698, %cst_149 [1] : vector<8x32xf32> to vector<8xf32>
    %700 = vector.shape_cast %699 : vector<8xf32> to vector<8x1xf32>
    %701 = arith.addf %700, %15 : vector<8x1xf32>
    %cst_150 = arith.constant 3.125000e-02 : f32
    %702 = vector.broadcast %cst_150 : f32 to vector<8x1xf32>
    %703 = arith.mulf %702, %701 : vector<8x1xf32>
    %704 = arith.addf %676, %703 : vector<8x1xf32>
    %705 = vector.broadcast %704 : vector<8x1xf32> to vector<8x32xf32>
    %706 = arith.mulf %705, %11 : vector<8x32xf32>
    %707 = arith.addf %688, %706 : vector<8x32xf32>
    %708 = math.tanh %707 : vector<8x32xf32>
    %709 = arith.mulf %708, %13 : vector<8x32xf32>
    %cst_151 = arith.constant dense<0.000000e+00> : vector<8xf32>
    %710 = vector.multi_reduction <add>, %709, %cst_151 [1] : vector<8x32xf32> to vector<8xf32>
    %711 = vector.shape_cast %710 : vector<8xf32> to vector<8x1xf32>
    %712 = arith.addf %711, %15 : vector<8x1xf32>
    %cst_152 = arith.constant 3.125000e-02 : f32
    %713 = vector.broadcast %cst_152 : f32 to vector<8x1xf32>
    %714 = arith.mulf %713, %712 : vector<8x1xf32>
    %715 = arith.addf %676, %714 : vector<8x1xf32>
    %716 = vector.broadcast %715 : vector<8x1xf32> to vector<8x32xf32>
    %717 = arith.mulf %716, %11 : vector<8x32xf32>
    %718 = arith.addf %688, %717 : vector<8x32xf32>
    %719 = math.tanh %718 : vector<8x32xf32>
    %720 = arith.mulf %719, %13 : vector<8x32xf32>
    %cst_153 = arith.constant dense<0.000000e+00> : vector<8xf32>
    %721 = vector.multi_reduction <add>, %720, %cst_153 [1] : vector<8x32xf32> to vector<8xf32>
    %722 = vector.shape_cast %721 : vector<8xf32> to vector<8x1xf32>
    %723 = arith.addf %722, %15 : vector<8x1xf32>
    %cst_154 = arith.constant 6.250000e-02 : f32
    %724 = vector.broadcast %cst_154 : f32 to vector<8x1xf32>
    %725 = arith.mulf %724, %723 : vector<8x1xf32>
    %726 = arith.addf %676, %725 : vector<8x1xf32>
    %727 = vector.broadcast %726 : vector<8x1xf32> to vector<8x32xf32>
    %728 = arith.mulf %727, %11 : vector<8x32xf32>
    %729 = arith.addf %693, %728 : vector<8x32xf32>
    %730 = math.tanh %729 : vector<8x32xf32>
    %731 = arith.mulf %730, %13 : vector<8x32xf32>
    %cst_155 = arith.constant dense<0.000000e+00> : vector<8xf32>
    %732 = vector.multi_reduction <add>, %731, %cst_155 [1] : vector<8x32xf32> to vector<8xf32>
    %733 = vector.shape_cast %732 : vector<8xf32> to vector<8x1xf32>
    %734 = arith.addf %733, %15 : vector<8x1xf32>
    %735 = arith.addf %712, %723 : vector<8x1xf32>
    %cst_156 = arith.constant 2.000000e+00 : f32
    %736 = vector.broadcast %cst_156 : f32 to vector<8x1xf32>
    %737 = arith.mulf %736, %735 : vector<8x1xf32>
    %738 = arith.addf %701, %737 : vector<8x1xf32>
    %739 = arith.addf %738, %734 : vector<8x1xf32>
    %cst_157 = arith.constant 0.010416667 : f32
    %740 = vector.broadcast %cst_157 : f32 to vector<8x1xf32>
    %741 = arith.mulf %740, %739 : vector<8x1xf32>
    %742 = arith.addf %676, %741 : vector<8x1xf32>
    %c11_i32 = arith.constant 11 : i32
    %743 = arith.sitofp %c11_i32 : i32 to f32
    %cst_158 = arith.constant 6.250000e-02 : f32
    %744 = arith.mulf %743, %cst_158 : f32
    %cst_159 = arith.constant 0.000000e+00 : f32
    %745 = arith.addf %cst_159, %744 : f32
    %746 = vector.broadcast %745 : f32 to vector<1x32xf32>
    %747 = arith.mulf %746, %1 : vector<1x32xf32>
    %748 = vector.broadcast %747 : vector<1x32xf32> to vector<8x32xf32>
    %749 = arith.addf %9, %748 : vector<8x32xf32>
    %cst_160 = arith.constant 3.125000e-02 : f32
    %750 = arith.addf %745, %cst_160 : f32
    %751 = vector.broadcast %750 : f32 to vector<1x32xf32>
    %752 = arith.mulf %751, %1 : vector<1x32xf32>
    %753 = vector.broadcast %752 : vector<1x32xf32> to vector<8x32xf32>
    %754 = arith.addf %9, %753 : vector<8x32xf32>
    %cst_161 = arith.constant 6.250000e-02 : f32
    %755 = arith.addf %745, %cst_161 : f32
    %756 = vector.broadcast %755 : f32 to vector<1x32xf32>
    %757 = arith.mulf %756, %1 : vector<1x32xf32>
    %758 = vector.broadcast %757 : vector<1x32xf32> to vector<8x32xf32>
    %759 = arith.addf %9, %758 : vector<8x32xf32>
    %760 = vector.broadcast %742 : vector<8x1xf32> to vector<8x32xf32>
    %761 = arith.mulf %760, %11 : vector<8x32xf32>
    %762 = arith.addf %749, %761 : vector<8x32xf32>
    %763 = math.tanh %762 : vector<8x32xf32>
    %764 = arith.mulf %763, %13 : vector<8x32xf32>
    %cst_162 = arith.constant dense<0.000000e+00> : vector<8xf32>
    %765 = vector.multi_reduction <add>, %764, %cst_162 [1] : vector<8x32xf32> to vector<8xf32>
    %766 = vector.shape_cast %765 : vector<8xf32> to vector<8x1xf32>
    %767 = arith.addf %766, %15 : vector<8x1xf32>
    %cst_163 = arith.constant 3.125000e-02 : f32
    %768 = vector.broadcast %cst_163 : f32 to vector<8x1xf32>
    %769 = arith.mulf %768, %767 : vector<8x1xf32>
    %770 = arith.addf %742, %769 : vector<8x1xf32>
    %771 = vector.broadcast %770 : vector<8x1xf32> to vector<8x32xf32>
    %772 = arith.mulf %771, %11 : vector<8x32xf32>
    %773 = arith.addf %754, %772 : vector<8x32xf32>
    %774 = math.tanh %773 : vector<8x32xf32>
    %775 = arith.mulf %774, %13 : vector<8x32xf32>
    %cst_164 = arith.constant dense<0.000000e+00> : vector<8xf32>
    %776 = vector.multi_reduction <add>, %775, %cst_164 [1] : vector<8x32xf32> to vector<8xf32>
    %777 = vector.shape_cast %776 : vector<8xf32> to vector<8x1xf32>
    %778 = arith.addf %777, %15 : vector<8x1xf32>
    %cst_165 = arith.constant 3.125000e-02 : f32
    %779 = vector.broadcast %cst_165 : f32 to vector<8x1xf32>
    %780 = arith.mulf %779, %778 : vector<8x1xf32>
    %781 = arith.addf %742, %780 : vector<8x1xf32>
    %782 = vector.broadcast %781 : vector<8x1xf32> to vector<8x32xf32>
    %783 = arith.mulf %782, %11 : vector<8x32xf32>
    %784 = arith.addf %754, %783 : vector<8x32xf32>
    %785 = math.tanh %784 : vector<8x32xf32>
    %786 = arith.mulf %785, %13 : vector<8x32xf32>
    %cst_166 = arith.constant dense<0.000000e+00> : vector<8xf32>
    %787 = vector.multi_reduction <add>, %786, %cst_166 [1] : vector<8x32xf32> to vector<8xf32>
    %788 = vector.shape_cast %787 : vector<8xf32> to vector<8x1xf32>
    %789 = arith.addf %788, %15 : vector<8x1xf32>
    %cst_167 = arith.constant 6.250000e-02 : f32
    %790 = vector.broadcast %cst_167 : f32 to vector<8x1xf32>
    %791 = arith.mulf %790, %789 : vector<8x1xf32>
    %792 = arith.addf %742, %791 : vector<8x1xf32>
    %793 = vector.broadcast %792 : vector<8x1xf32> to vector<8x32xf32>
    %794 = arith.mulf %793, %11 : vector<8x32xf32>
    %795 = arith.addf %759, %794 : vector<8x32xf32>
    %796 = math.tanh %795 : vector<8x32xf32>
    %797 = arith.mulf %796, %13 : vector<8x32xf32>
    %cst_168 = arith.constant dense<0.000000e+00> : vector<8xf32>
    %798 = vector.multi_reduction <add>, %797, %cst_168 [1] : vector<8x32xf32> to vector<8xf32>
    %799 = vector.shape_cast %798 : vector<8xf32> to vector<8x1xf32>
    %800 = arith.addf %799, %15 : vector<8x1xf32>
    %801 = arith.addf %778, %789 : vector<8x1xf32>
    %cst_169 = arith.constant 2.000000e+00 : f32
    %802 = vector.broadcast %cst_169 : f32 to vector<8x1xf32>
    %803 = arith.mulf %802, %801 : vector<8x1xf32>
    %804 = arith.addf %767, %803 : vector<8x1xf32>
    %805 = arith.addf %804, %800 : vector<8x1xf32>
    %cst_170 = arith.constant 0.010416667 : f32
    %806 = vector.broadcast %cst_170 : f32 to vector<8x1xf32>
    %807 = arith.mulf %806, %805 : vector<8x1xf32>
    %808 = arith.addf %742, %807 : vector<8x1xf32>
    %c12_i32 = arith.constant 12 : i32
    %809 = arith.sitofp %c12_i32 : i32 to f32
    %cst_171 = arith.constant 6.250000e-02 : f32
    %810 = arith.mulf %809, %cst_171 : f32
    %cst_172 = arith.constant 0.000000e+00 : f32
    %811 = arith.addf %cst_172, %810 : f32
    %812 = vector.broadcast %811 : f32 to vector<1x32xf32>
    %813 = arith.mulf %812, %1 : vector<1x32xf32>
    %814 = vector.broadcast %813 : vector<1x32xf32> to vector<8x32xf32>
    %815 = arith.addf %9, %814 : vector<8x32xf32>
    %cst_173 = arith.constant 3.125000e-02 : f32
    %816 = arith.addf %811, %cst_173 : f32
    %817 = vector.broadcast %816 : f32 to vector<1x32xf32>
    %818 = arith.mulf %817, %1 : vector<1x32xf32>
    %819 = vector.broadcast %818 : vector<1x32xf32> to vector<8x32xf32>
    %820 = arith.addf %9, %819 : vector<8x32xf32>
    %cst_174 = arith.constant 6.250000e-02 : f32
    %821 = arith.addf %811, %cst_174 : f32
    %822 = vector.broadcast %821 : f32 to vector<1x32xf32>
    %823 = arith.mulf %822, %1 : vector<1x32xf32>
    %824 = vector.broadcast %823 : vector<1x32xf32> to vector<8x32xf32>
    %825 = arith.addf %9, %824 : vector<8x32xf32>
    %826 = vector.broadcast %808 : vector<8x1xf32> to vector<8x32xf32>
    %827 = arith.mulf %826, %11 : vector<8x32xf32>
    %828 = arith.addf %815, %827 : vector<8x32xf32>
    %829 = math.tanh %828 : vector<8x32xf32>
    %830 = arith.mulf %829, %13 : vector<8x32xf32>
    %cst_175 = arith.constant dense<0.000000e+00> : vector<8xf32>
    %831 = vector.multi_reduction <add>, %830, %cst_175 [1] : vector<8x32xf32> to vector<8xf32>
    %832 = vector.shape_cast %831 : vector<8xf32> to vector<8x1xf32>
    %833 = arith.addf %832, %15 : vector<8x1xf32>
    %cst_176 = arith.constant 3.125000e-02 : f32
    %834 = vector.broadcast %cst_176 : f32 to vector<8x1xf32>
    %835 = arith.mulf %834, %833 : vector<8x1xf32>
    %836 = arith.addf %808, %835 : vector<8x1xf32>
    %837 = vector.broadcast %836 : vector<8x1xf32> to vector<8x32xf32>
    %838 = arith.mulf %837, %11 : vector<8x32xf32>
    %839 = arith.addf %820, %838 : vector<8x32xf32>
    %840 = math.tanh %839 : vector<8x32xf32>
    %841 = arith.mulf %840, %13 : vector<8x32xf32>
    %cst_177 = arith.constant dense<0.000000e+00> : vector<8xf32>
    %842 = vector.multi_reduction <add>, %841, %cst_177 [1] : vector<8x32xf32> to vector<8xf32>
    %843 = vector.shape_cast %842 : vector<8xf32> to vector<8x1xf32>
    %844 = arith.addf %843, %15 : vector<8x1xf32>
    %cst_178 = arith.constant 3.125000e-02 : f32
    %845 = vector.broadcast %cst_178 : f32 to vector<8x1xf32>
    %846 = arith.mulf %845, %844 : vector<8x1xf32>
    %847 = arith.addf %808, %846 : vector<8x1xf32>
    %848 = vector.broadcast %847 : vector<8x1xf32> to vector<8x32xf32>
    %849 = arith.mulf %848, %11 : vector<8x32xf32>
    %850 = arith.addf %820, %849 : vector<8x32xf32>
    %851 = math.tanh %850 : vector<8x32xf32>
    %852 = arith.mulf %851, %13 : vector<8x32xf32>
    %cst_179 = arith.constant dense<0.000000e+00> : vector<8xf32>
    %853 = vector.multi_reduction <add>, %852, %cst_179 [1] : vector<8x32xf32> to vector<8xf32>
    %854 = vector.shape_cast %853 : vector<8xf32> to vector<8x1xf32>
    %855 = arith.addf %854, %15 : vector<8x1xf32>
    %cst_180 = arith.constant 6.250000e-02 : f32
    %856 = vector.broadcast %cst_180 : f32 to vector<8x1xf32>
    %857 = arith.mulf %856, %855 : vector<8x1xf32>
    %858 = arith.addf %808, %857 : vector<8x1xf32>
    %859 = vector.broadcast %858 : vector<8x1xf32> to vector<8x32xf32>
    %860 = arith.mulf %859, %11 : vector<8x32xf32>
    %861 = arith.addf %825, %860 : vector<8x32xf32>
    %862 = math.tanh %861 : vector<8x32xf32>
    %863 = arith.mulf %862, %13 : vector<8x32xf32>
    %cst_181 = arith.constant dense<0.000000e+00> : vector<8xf32>
    %864 = vector.multi_reduction <add>, %863, %cst_181 [1] : vector<8x32xf32> to vector<8xf32>
    %865 = vector.shape_cast %864 : vector<8xf32> to vector<8x1xf32>
    %866 = arith.addf %865, %15 : vector<8x1xf32>
    %867 = arith.addf %844, %855 : vector<8x1xf32>
    %cst_182 = arith.constant 2.000000e+00 : f32
    %868 = vector.broadcast %cst_182 : f32 to vector<8x1xf32>
    %869 = arith.mulf %868, %867 : vector<8x1xf32>
    %870 = arith.addf %833, %869 : vector<8x1xf32>
    %871 = arith.addf %870, %866 : vector<8x1xf32>
    %cst_183 = arith.constant 0.010416667 : f32
    %872 = vector.broadcast %cst_183 : f32 to vector<8x1xf32>
    %873 = arith.mulf %872, %871 : vector<8x1xf32>
    %874 = arith.addf %808, %873 : vector<8x1xf32>
    %c13_i32 = arith.constant 13 : i32
    %875 = arith.sitofp %c13_i32 : i32 to f32
    %cst_184 = arith.constant 6.250000e-02 : f32
    %876 = arith.mulf %875, %cst_184 : f32
    %cst_185 = arith.constant 0.000000e+00 : f32
    %877 = arith.addf %cst_185, %876 : f32
    %878 = vector.broadcast %877 : f32 to vector<1x32xf32>
    %879 = arith.mulf %878, %1 : vector<1x32xf32>
    %880 = vector.broadcast %879 : vector<1x32xf32> to vector<8x32xf32>
    %881 = arith.addf %9, %880 : vector<8x32xf32>
    %cst_186 = arith.constant 3.125000e-02 : f32
    %882 = arith.addf %877, %cst_186 : f32
    %883 = vector.broadcast %882 : f32 to vector<1x32xf32>
    %884 = arith.mulf %883, %1 : vector<1x32xf32>
    %885 = vector.broadcast %884 : vector<1x32xf32> to vector<8x32xf32>
    %886 = arith.addf %9, %885 : vector<8x32xf32>
    %cst_187 = arith.constant 6.250000e-02 : f32
    %887 = arith.addf %877, %cst_187 : f32
    %888 = vector.broadcast %887 : f32 to vector<1x32xf32>
    %889 = arith.mulf %888, %1 : vector<1x32xf32>
    %890 = vector.broadcast %889 : vector<1x32xf32> to vector<8x32xf32>
    %891 = arith.addf %9, %890 : vector<8x32xf32>
    %892 = vector.broadcast %874 : vector<8x1xf32> to vector<8x32xf32>
    %893 = arith.mulf %892, %11 : vector<8x32xf32>
    %894 = arith.addf %881, %893 : vector<8x32xf32>
    %895 = math.tanh %894 : vector<8x32xf32>
    %896 = arith.mulf %895, %13 : vector<8x32xf32>
    %cst_188 = arith.constant dense<0.000000e+00> : vector<8xf32>
    %897 = vector.multi_reduction <add>, %896, %cst_188 [1] : vector<8x32xf32> to vector<8xf32>
    %898 = vector.shape_cast %897 : vector<8xf32> to vector<8x1xf32>
    %899 = arith.addf %898, %15 : vector<8x1xf32>
    %cst_189 = arith.constant 3.125000e-02 : f32
    %900 = vector.broadcast %cst_189 : f32 to vector<8x1xf32>
    %901 = arith.mulf %900, %899 : vector<8x1xf32>
    %902 = arith.addf %874, %901 : vector<8x1xf32>
    %903 = vector.broadcast %902 : vector<8x1xf32> to vector<8x32xf32>
    %904 = arith.mulf %903, %11 : vector<8x32xf32>
    %905 = arith.addf %886, %904 : vector<8x32xf32>
    %906 = math.tanh %905 : vector<8x32xf32>
    %907 = arith.mulf %906, %13 : vector<8x32xf32>
    %cst_190 = arith.constant dense<0.000000e+00> : vector<8xf32>
    %908 = vector.multi_reduction <add>, %907, %cst_190 [1] : vector<8x32xf32> to vector<8xf32>
    %909 = vector.shape_cast %908 : vector<8xf32> to vector<8x1xf32>
    %910 = arith.addf %909, %15 : vector<8x1xf32>
    %cst_191 = arith.constant 3.125000e-02 : f32
    %911 = vector.broadcast %cst_191 : f32 to vector<8x1xf32>
    %912 = arith.mulf %911, %910 : vector<8x1xf32>
    %913 = arith.addf %874, %912 : vector<8x1xf32>
    %914 = vector.broadcast %913 : vector<8x1xf32> to vector<8x32xf32>
    %915 = arith.mulf %914, %11 : vector<8x32xf32>
    %916 = arith.addf %886, %915 : vector<8x32xf32>
    %917 = math.tanh %916 : vector<8x32xf32>
    %918 = arith.mulf %917, %13 : vector<8x32xf32>
    %cst_192 = arith.constant dense<0.000000e+00> : vector<8xf32>
    %919 = vector.multi_reduction <add>, %918, %cst_192 [1] : vector<8x32xf32> to vector<8xf32>
    %920 = vector.shape_cast %919 : vector<8xf32> to vector<8x1xf32>
    %921 = arith.addf %920, %15 : vector<8x1xf32>
    %cst_193 = arith.constant 6.250000e-02 : f32
    %922 = vector.broadcast %cst_193 : f32 to vector<8x1xf32>
    %923 = arith.mulf %922, %921 : vector<8x1xf32>
    %924 = arith.addf %874, %923 : vector<8x1xf32>
    %925 = vector.broadcast %924 : vector<8x1xf32> to vector<8x32xf32>
    %926 = arith.mulf %925, %11 : vector<8x32xf32>
    %927 = arith.addf %891, %926 : vector<8x32xf32>
    %928 = math.tanh %927 : vector<8x32xf32>
    %929 = arith.mulf %928, %13 : vector<8x32xf32>
    %cst_194 = arith.constant dense<0.000000e+00> : vector<8xf32>
    %930 = vector.multi_reduction <add>, %929, %cst_194 [1] : vector<8x32xf32> to vector<8xf32>
    %931 = vector.shape_cast %930 : vector<8xf32> to vector<8x1xf32>
    %932 = arith.addf %931, %15 : vector<8x1xf32>
    %933 = arith.addf %910, %921 : vector<8x1xf32>
    %cst_195 = arith.constant 2.000000e+00 : f32
    %934 = vector.broadcast %cst_195 : f32 to vector<8x1xf32>
    %935 = arith.mulf %934, %933 : vector<8x1xf32>
    %936 = arith.addf %899, %935 : vector<8x1xf32>
    %937 = arith.addf %936, %932 : vector<8x1xf32>
    %cst_196 = arith.constant 0.010416667 : f32
    %938 = vector.broadcast %cst_196 : f32 to vector<8x1xf32>
    %939 = arith.mulf %938, %937 : vector<8x1xf32>
    %940 = arith.addf %874, %939 : vector<8x1xf32>
    %c14_i32 = arith.constant 14 : i32
    %941 = arith.sitofp %c14_i32 : i32 to f32
    %cst_197 = arith.constant 6.250000e-02 : f32
    %942 = arith.mulf %941, %cst_197 : f32
    %cst_198 = arith.constant 0.000000e+00 : f32
    %943 = arith.addf %cst_198, %942 : f32
    %944 = vector.broadcast %943 : f32 to vector<1x32xf32>
    %945 = arith.mulf %944, %1 : vector<1x32xf32>
    %946 = vector.broadcast %945 : vector<1x32xf32> to vector<8x32xf32>
    %947 = arith.addf %9, %946 : vector<8x32xf32>
    %cst_199 = arith.constant 3.125000e-02 : f32
    %948 = arith.addf %943, %cst_199 : f32
    %949 = vector.broadcast %948 : f32 to vector<1x32xf32>
    %950 = arith.mulf %949, %1 : vector<1x32xf32>
    %951 = vector.broadcast %950 : vector<1x32xf32> to vector<8x32xf32>
    %952 = arith.addf %9, %951 : vector<8x32xf32>
    %cst_200 = arith.constant 6.250000e-02 : f32
    %953 = arith.addf %943, %cst_200 : f32
    %954 = vector.broadcast %953 : f32 to vector<1x32xf32>
    %955 = arith.mulf %954, %1 : vector<1x32xf32>
    %956 = vector.broadcast %955 : vector<1x32xf32> to vector<8x32xf32>
    %957 = arith.addf %9, %956 : vector<8x32xf32>
    %958 = vector.broadcast %940 : vector<8x1xf32> to vector<8x32xf32>
    %959 = arith.mulf %958, %11 : vector<8x32xf32>
    %960 = arith.addf %947, %959 : vector<8x32xf32>
    %961 = math.tanh %960 : vector<8x32xf32>
    %962 = arith.mulf %961, %13 : vector<8x32xf32>
    %cst_201 = arith.constant dense<0.000000e+00> : vector<8xf32>
    %963 = vector.multi_reduction <add>, %962, %cst_201 [1] : vector<8x32xf32> to vector<8xf32>
    %964 = vector.shape_cast %963 : vector<8xf32> to vector<8x1xf32>
    %965 = arith.addf %964, %15 : vector<8x1xf32>
    %cst_202 = arith.constant 3.125000e-02 : f32
    %966 = vector.broadcast %cst_202 : f32 to vector<8x1xf32>
    %967 = arith.mulf %966, %965 : vector<8x1xf32>
    %968 = arith.addf %940, %967 : vector<8x1xf32>
    %969 = vector.broadcast %968 : vector<8x1xf32> to vector<8x32xf32>
    %970 = arith.mulf %969, %11 : vector<8x32xf32>
    %971 = arith.addf %952, %970 : vector<8x32xf32>
    %972 = math.tanh %971 : vector<8x32xf32>
    %973 = arith.mulf %972, %13 : vector<8x32xf32>
    %cst_203 = arith.constant dense<0.000000e+00> : vector<8xf32>
    %974 = vector.multi_reduction <add>, %973, %cst_203 [1] : vector<8x32xf32> to vector<8xf32>
    %975 = vector.shape_cast %974 : vector<8xf32> to vector<8x1xf32>
    %976 = arith.addf %975, %15 : vector<8x1xf32>
    %cst_204 = arith.constant 3.125000e-02 : f32
    %977 = vector.broadcast %cst_204 : f32 to vector<8x1xf32>
    %978 = arith.mulf %977, %976 : vector<8x1xf32>
    %979 = arith.addf %940, %978 : vector<8x1xf32>
    %980 = vector.broadcast %979 : vector<8x1xf32> to vector<8x32xf32>
    %981 = arith.mulf %980, %11 : vector<8x32xf32>
    %982 = arith.addf %952, %981 : vector<8x32xf32>
    %983 = math.tanh %982 : vector<8x32xf32>
    %984 = arith.mulf %983, %13 : vector<8x32xf32>
    %cst_205 = arith.constant dense<0.000000e+00> : vector<8xf32>
    %985 = vector.multi_reduction <add>, %984, %cst_205 [1] : vector<8x32xf32> to vector<8xf32>
    %986 = vector.shape_cast %985 : vector<8xf32> to vector<8x1xf32>
    %987 = arith.addf %986, %15 : vector<8x1xf32>
    %cst_206 = arith.constant 6.250000e-02 : f32
    %988 = vector.broadcast %cst_206 : f32 to vector<8x1xf32>
    %989 = arith.mulf %988, %987 : vector<8x1xf32>
    %990 = arith.addf %940, %989 : vector<8x1xf32>
    %991 = vector.broadcast %990 : vector<8x1xf32> to vector<8x32xf32>
    %992 = arith.mulf %991, %11 : vector<8x32xf32>
    %993 = arith.addf %957, %992 : vector<8x32xf32>
    %994 = math.tanh %993 : vector<8x32xf32>
    %995 = arith.mulf %994, %13 : vector<8x32xf32>
    %cst_207 = arith.constant dense<0.000000e+00> : vector<8xf32>
    %996 = vector.multi_reduction <add>, %995, %cst_207 [1] : vector<8x32xf32> to vector<8xf32>
    %997 = vector.shape_cast %996 : vector<8xf32> to vector<8x1xf32>
    %998 = arith.addf %997, %15 : vector<8x1xf32>
    %999 = arith.addf %976, %987 : vector<8x1xf32>
    %cst_208 = arith.constant 2.000000e+00 : f32
    %1000 = vector.broadcast %cst_208 : f32 to vector<8x1xf32>
    %1001 = arith.mulf %1000, %999 : vector<8x1xf32>
    %1002 = arith.addf %965, %1001 : vector<8x1xf32>
    %1003 = arith.addf %1002, %998 : vector<8x1xf32>
    %cst_209 = arith.constant 0.010416667 : f32
    %1004 = vector.broadcast %cst_209 : f32 to vector<8x1xf32>
    %1005 = arith.mulf %1004, %1003 : vector<8x1xf32>
    %1006 = arith.addf %940, %1005 : vector<8x1xf32>
    %c15_i32 = arith.constant 15 : i32
    %1007 = arith.sitofp %c15_i32 : i32 to f32
    %cst_210 = arith.constant 6.250000e-02 : f32
    %1008 = arith.mulf %1007, %cst_210 : f32
    %cst_211 = arith.constant 0.000000e+00 : f32
    %1009 = arith.addf %cst_211, %1008 : f32
    %1010 = vector.broadcast %1009 : f32 to vector<1x32xf32>
    %1011 = arith.mulf %1010, %1 : vector<1x32xf32>
    %1012 = vector.broadcast %1011 : vector<1x32xf32> to vector<8x32xf32>
    %1013 = arith.addf %9, %1012 : vector<8x32xf32>
    %cst_212 = arith.constant 3.125000e-02 : f32
    %1014 = arith.addf %1009, %cst_212 : f32
    %1015 = vector.broadcast %1014 : f32 to vector<1x32xf32>
    %1016 = arith.mulf %1015, %1 : vector<1x32xf32>
    %1017 = vector.broadcast %1016 : vector<1x32xf32> to vector<8x32xf32>
    %1018 = arith.addf %9, %1017 : vector<8x32xf32>
    %cst_213 = arith.constant 6.250000e-02 : f32
    %1019 = arith.addf %1009, %cst_213 : f32
    %1020 = vector.broadcast %1019 : f32 to vector<1x32xf32>
    %1021 = arith.mulf %1020, %1 : vector<1x32xf32>
    %1022 = vector.broadcast %1021 : vector<1x32xf32> to vector<8x32xf32>
    %1023 = arith.addf %9, %1022 : vector<8x32xf32>
    %1024 = vector.broadcast %1006 : vector<8x1xf32> to vector<8x32xf32>
    %1025 = arith.mulf %1024, %11 : vector<8x32xf32>
    %1026 = arith.addf %1013, %1025 : vector<8x32xf32>
    %1027 = math.tanh %1026 : vector<8x32xf32>
    %1028 = arith.mulf %1027, %13 : vector<8x32xf32>
    %cst_214 = arith.constant dense<0.000000e+00> : vector<8xf32>
    %1029 = vector.multi_reduction <add>, %1028, %cst_214 [1] : vector<8x32xf32> to vector<8xf32>
    %1030 = vector.shape_cast %1029 : vector<8xf32> to vector<8x1xf32>
    %1031 = arith.addf %1030, %15 : vector<8x1xf32>
    %cst_215 = arith.constant 3.125000e-02 : f32
    %1032 = vector.broadcast %cst_215 : f32 to vector<8x1xf32>
    %1033 = arith.mulf %1032, %1031 : vector<8x1xf32>
    %1034 = arith.addf %1006, %1033 : vector<8x1xf32>
    %1035 = vector.broadcast %1034 : vector<8x1xf32> to vector<8x32xf32>
    %1036 = arith.mulf %1035, %11 : vector<8x32xf32>
    %1037 = arith.addf %1018, %1036 : vector<8x32xf32>
    %1038 = math.tanh %1037 : vector<8x32xf32>
    %1039 = arith.mulf %1038, %13 : vector<8x32xf32>
    %cst_216 = arith.constant dense<0.000000e+00> : vector<8xf32>
    %1040 = vector.multi_reduction <add>, %1039, %cst_216 [1] : vector<8x32xf32> to vector<8xf32>
    %1041 = vector.shape_cast %1040 : vector<8xf32> to vector<8x1xf32>
    %1042 = arith.addf %1041, %15 : vector<8x1xf32>
    %cst_217 = arith.constant 3.125000e-02 : f32
    %1043 = vector.broadcast %cst_217 : f32 to vector<8x1xf32>
    %1044 = arith.mulf %1043, %1042 : vector<8x1xf32>
    %1045 = arith.addf %1006, %1044 : vector<8x1xf32>
    %1046 = vector.broadcast %1045 : vector<8x1xf32> to vector<8x32xf32>
    %1047 = arith.mulf %1046, %11 : vector<8x32xf32>
    %1048 = arith.addf %1018, %1047 : vector<8x32xf32>
    %1049 = math.tanh %1048 : vector<8x32xf32>
    %1050 = arith.mulf %1049, %13 : vector<8x32xf32>
    %cst_218 = arith.constant dense<0.000000e+00> : vector<8xf32>
    %1051 = vector.multi_reduction <add>, %1050, %cst_218 [1] : vector<8x32xf32> to vector<8xf32>
    %1052 = vector.shape_cast %1051 : vector<8xf32> to vector<8x1xf32>
    %1053 = arith.addf %1052, %15 : vector<8x1xf32>
    %cst_219 = arith.constant 6.250000e-02 : f32
    %1054 = vector.broadcast %cst_219 : f32 to vector<8x1xf32>
    %1055 = arith.mulf %1054, %1053 : vector<8x1xf32>
    %1056 = arith.addf %1006, %1055 : vector<8x1xf32>
    %1057 = vector.broadcast %1056 : vector<8x1xf32> to vector<8x32xf32>
    %1058 = arith.mulf %1057, %11 : vector<8x32xf32>
    %1059 = arith.addf %1023, %1058 : vector<8x32xf32>
    %1060 = math.tanh %1059 : vector<8x32xf32>
    %1061 = arith.mulf %1060, %13 : vector<8x32xf32>
    %cst_220 = arith.constant dense<0.000000e+00> : vector<8xf32>
    %1062 = vector.multi_reduction <add>, %1061, %cst_220 [1] : vector<8x32xf32> to vector<8xf32>
    %1063 = vector.shape_cast %1062 : vector<8xf32> to vector<8x1xf32>
    %1064 = arith.addf %1063, %15 : vector<8x1xf32>
    %1065 = arith.addf %1042, %1053 : vector<8x1xf32>
    %cst_221 = arith.constant 2.000000e+00 : f32
    %1066 = vector.broadcast %cst_221 : f32 to vector<8x1xf32>
    %1067 = arith.mulf %1066, %1065 : vector<8x1xf32>
    %1068 = arith.addf %1031, %1067 : vector<8x1xf32>
    %1069 = arith.addf %1068, %1064 : vector<8x1xf32>
    %cst_222 = arith.constant 0.010416667 : f32
    %1070 = vector.broadcast %cst_222 : f32 to vector<8x1xf32>
    %1071 = arith.mulf %1070, %1069 : vector<8x1xf32>
    %1072 = arith.addf %1006, %1071 : vector<8x1xf32>
    %c16_i32 = arith.constant 16 : i32
    %c0_223 = arith.constant 0 : index
    %c0_224 = arith.constant 0 : index
    %1073 = vector.load %arg9[%c0_223, %c0_224] : memref<8x1xf32, #tpu.memory_space<vmem>>, vector<8x1xf32>
    tpu.vector_store %arg9[%c0_223, %c0_224], %1072 {strides = array<i32>} : memref<8x1xf32, #tpu.memory_space<vmem>>, vector<8x1xf32>,
    return
  }
  func.func @transform_0(%arg0: i32) -> (i32, i32) {
    %c0_i32 = arith.constant 0 : i32
    %c0_i32_0 = arith.constant 0 : i32
    return %arg0, %c0_i32 : i32, i32
  }
  func.func @transform_1(%arg0: i32) -> (i32, i32) {
    %c0_i32 = arith.constant 0 : i32
    %c0_i32_0 = arith.constant 0 : i32
    return %arg0, %c0_i32 : i32, i32
  }
  func.func @transform_2(%arg0: i32) -> (i32, i32) {
    %c0_i32 = arith.constant 0 : i32
    %c0_i32_0 = arith.constant 0 : i32
    %c0_i32_1 = arith.constant 0 : i32
    return %c0_i32, %c0_i32_0 : i32, i32
  }
  func.func @transform_3(%arg0: i32) -> (i32, i32) {
    %c0_i32 = arith.constant 0 : i32
    %c0_i32_0 = arith.constant 0 : i32
    %c0_i32_1 = arith.constant 0 : i32
    return %c0_i32, %c0_i32_0 : i32, i32
  }
  func.func @transform_4(%arg0: i32) -> (i32, i32) {
    %c0_i32 = arith.constant 0 : i32
    %c0_i32_0 = arith.constant 0 : i32
    %c0_i32_1 = arith.constant 0 : i32
    return %c0_i32, %c0_i32_0 : i32, i32
  }
  func.func @transform_5(%arg0: i32) -> (i32, i32) {
    %c0_i32 = arith.constant 0 : i32
    %c0_i32_0 = arith.constant 0 : i32
    %c0_i32_1 = arith.constant 0 : i32
    return %c0_i32, %c0_i32_0 : i32, i32
  }
  func.func @transform_6(%arg0: i32) -> (i32, i32) {
    %c0_i32 = arith.constant 0 : i32
    %c0_i32_0 = arith.constant 0 : i32
    %c0_i32_1 = arith.constant 0 : i32
    return %c0_i32, %c0_i32_0 : i32, i32
  }
  func.func @transform_7(%arg0: i32) -> (i32, i32) {
    %c0_i32 = arith.constant 0 : i32
    %c0_i32_0 = arith.constant 0 : i32
    %c0_i32_1 = arith.constant 0 : i32
    return %c0_i32, %c0_i32_0 : i32, i32
  }
  func.func @transform_8(%arg0: i32) -> (i32, i32) {
    %c0_i32 = arith.constant 0 : i32
    %c0_i32_0 = arith.constant 0 : i32
    return %arg0, %c0_i32 : i32, i32
  }
}

</mosaic_0001>

<bundles_post_ra>
// kernel: tpu_custom_call.1
= control target key start
LH: loop header
LB: loop body
LE: loop exit
PB: predicated region body
PF: predicated region fallthrough
CT: control target
= control target key end

     0   :  { %s2249_s0 = inlined_call_operand.vmem [shape: f32[8,1], index: 0, kind: input, shape index: {}]   ;;  %s2250_s1 = inlined_call_operand.vmem [shape: f32[8,32], index: 1, kind: input, shape index: {}]   ;;  %s2251_s2 = inlined_call_operand.vmem [shape: f32[1,32], index: 2, kind: input, shape index: {}]   ;;  %s2252_s3 = inlined_call_operand.vmem [shape: f32[1,32], index: 3, kind: input, shape index: {}]   ;;  %s2253_s4 = inlined_call_operand.hbm [shape: f32[32,32], index: 4, kind: input, shape index: {}]   ;;  %s2254_s5 = inlined_call_operand.vmem [shape: f32[1,32], index: 5, kind: input, shape index: {}]   ;;  %s2255_s6 = inlined_call_operand.vmem [shape: f32[1,32], index: 6, kind: input, shape index: {}]   ;;  %s2256_s7 = inlined_call_operand.<no memory space> [shape: f32[1,1], index: 7, kind: input, shape index: {}]   ;;  %s2257_s8 = inlined_call_operand.vmem [shape: f32[8,1], index: 8, kind: output, shape index: {}]  }
   0x1   :  { %v13_v0 = vstv %s2256_s7 }
   0x2   :  { %14 = vst [vmem:[#allocation2] sm:$0x1] %v13_v0 }
   0x3   :  { %15 = vsyncpa [#allocation4], 0  ;;  %s1630_s29 = smov [#allocation3]  }
   0x4   :  { %s29_s30 = sshll.u32 %s1630_s29, 4  ;;  %s30_s30 = int_to_ptr.vmem [resolvable:$true] %s29_s30 }
   0x5   :  { %s1616_s9 = scalar_lea.vmem %s30_s30, 512  ;;  %p1621_p1 = scmp.lt.s32.totalorder %s30_s30, %s30_s30 }
   0x6   :  { %p1617_p0 = scmp.ne.s32.totalorder %s30_s30, %s1616_s9  ;;  %p1622_p2 = scmp.lt.s32.totalorder %s1616_s9, %s1616_s9 }
   0x8   :  { %p1623_p3 = por %p1622_p2, %p1621_p1 }
   0xa   :  { %p1624_p4 = pnand %p1623_p3, %p1617_p0 }
   0xc   :  { %1627 = shalt.err (!%p1624_p4)
}
   0xd   :  { %s1631_s10 = smov 128   ;;  %s1632_s11 = smov 8  }
   0xe   :  { %35 = dma.hbm_to_vmem [thread:$0]  %s2253_s4, 512, %s30_s30, [#allocation4], %s1631_s10, %s1631_s10, %s1632_s11  }
   0xf   :  { %1628 = dma.done.wait [#allocation4], 512  }
  0x10   :  { %1629 = vsyncadd [#allocation4], 4294966784  ;;  %v1633_v1 = vmov 0.0   ;;  %vm1634_vm0 = vmmov 0   ;;  %v1635_v2 = vmov 0   ;;  %v54_v3 = vld [vmem:[#allocation3 + $0x18] sm:$0xff]  ;;  %v156_v9 = vlaneseq }
  0x11   :  { %1458 = vmatprep.subr.mxu0 %v1633_v1  ;;  %1466 = vmatprep.mubr.msk.f32.mxu0 %vm1634_vm0, %v1633_v1  ;;  %v53_v4 = vld [vmem:[#allocation3 + $0x10] sm:$0xff]  ;;  %v52_v5 = vld [vmem:[#allocation3 + $0x8] sm:$0xff]  ;;  %v1690_v6 = vld [vmem:[%s2249_s0] sm:$0xff]  ;;  %vm61_vm1 = vcmask 261120   ;;  %vm1441_vm2 = vcmask 7168  }
  0x12   :  { %1475 = vset.pattern.permute.xlu0 %v1635_v2  ;;  %1476 = vset.pattern.permute.xlu1 %v1635_v2  ;;  %v51_v7 = vld [vmem:[#allocation3] sm:$0xff]  ;;  %v1700_v10 = vld [vmem:[%s2252_s3] sm:$0x1]  ;;  %v157_v11 = vshrl.u32 %v156_v9, 7 }
  0x13   :  { %1459 = vmatpush3.msra.mxu0 %v54_v3  ;;  %180 = vperm.xlu0 %1475, %v1690_v6   ;;  %v50_v8 = vld [vmem:[%s2250_s1] sm:$0xff]  ;;  %v1705_v13 = vmul.f32 0.03125, %v1700_v10  ;;  %v1708_v14 = vmul.f32 0.0625, %v1700_v10  ;;  %v1711_v15 = vmul.f32 0.09375, %v1700_v10  ;;  %v1714_v16 = vmul.f32 0.125, %v1700_v10 }
  0x14   :  { %1460 = vmatprep.subr.mxu0 %v1633_v1  ;;  %v1702_v12 = vsub.s32 0, %v157_v11  ;;  %v1717_v17 = vmul.f32 0.15625, %v1700_v10  ;;  %v1720_v18 = vmul.f32 0.1875, %v1700_v10  ;;  %v1727_v21 = vmul.f32 0.21875, %v1700_v10 }
  0x15   :  { %1461 = vmatpush3.msra.mxu0 %v53_v4  ;;  %v1740_v27 = vmul.f32 0.25, %v1700_v10  ;;  %v1743_v28 = vmul.f32 0.28125, %v1700_v10  ;;  %v1746_v29 = vmul.f32 0.3125, %v1700_v10  ;;  %v1749_v30 = vmul.f32 0.34375, %v1700_v10 }
  0x16   :  { %1462 = vmatprep.subr.mxu0 %v1633_v1  ;;  %v167_v19 = vrot.slane %v1705_v13, %v1702_v12  ;;  %v175_v20 = vrot.slane %v1708_v14, %v1702_v12  ;;  %v247_v22 = vrot.slane %v1711_v15, %v1702_v12  ;;  %v255_v23 = vrot.slane %v1714_v16, %v1702_v12 }
  0x17   :  { %1463 = vmatpush3.msra.mxu0 %v52_v5  ;;  %v327_v24 = vrot.slane %v1717_v17, %v1702_v12  ;;  %v335_v25 = vrot.slane %v1720_v18, %v1702_v12  ;;  %v407_v26 = vrot.slane %v1727_v21, %v1702_v12  ;;  %v1752_v31 = vmul.f32 0.375, %v1700_v10 }
  0x18   :  { %1464 = vmatprep.subr.mxu0 %v1633_v1  ;;  %v1755_v32 = vmul.f32 0.40625, %v1700_v10  ;;  %v1758_v33 = vmul.f32 0.4375, %v1700_v10  ;;  %v415_v34 = vrot.slane %v1740_v27, %v1702_v12  ;;  %v487_v35 = vrot.slane %v1743_v28, %v1702_v12 }
  0x19   :  { %1465 = vmatpush3.msra.mxu0 %v51_v7  ;;  %v495_v36 = vrot.slane %v1746_v29, %v1702_v12  ;;  %v1767_v37 = vmul.f32 0.46875, %v1700_v10  ;;  %v567_v38 = vrot.slane %v1749_v30, %v1702_v12  ;;  %v575_v39 = vrot.slane %v1752_v31, %v1702_v12  ;;  %v1817_v30 = vld [vmem:[%s2251_s2] ss:$0 sm:$0xff] }
  0x1a   :  { %1467 = vmatmul.mubr.msk.f32.vlgmr.msra.gmra.mxu0 %vm61_vm1, %v50_v8  ;;  %v647_v40 = vrot.slane %v1755_v32, %v1702_v12  ;;  %v655_v41 = vrot.slane %v1758_v33, %v1702_v12  ;;  %v730_v43 = vmul.f32 0.5, %v1700_v10  ;;  %v802_v44 = vmul.f32 0.53125, %v1700_v10  ;;  %v1448_v31 = vld [vmem:[%s2254_s5] ss:$0 sm:$0xff] }
  0x1b   :  { %v727_v42 = vrot.slane %v1767_v37, %v1702_v12  ;;  %v810_v45 = vmul.f32 0.5625, %v1700_v10  ;;  %v882_v46 = vmul.f32 0.59375, %v1700_v10  ;;  %v890_v47 = vmul.f32 0.625, %v1700_v10 }
  0x1c   :  { %v962_v48 = vmul.f32 0.65625, %v1700_v10  ;;  %v970_v49 = vmul.f32 0.6875, %v1700_v10  ;;  %v735_v50 = vrot.slane %v730_v43, %v1702_v12  ;;  %v807_v51 = vrot.slane %v802_v44, %v1702_v12 }
  0x1d   :  { %v815_v52 = vrot.slane %v810_v45, %v1702_v12  ;;  %v1042_v53 = vmul.f32 0.71875, %v1700_v10  ;;  %v887_v54 = vrot.slane %v882_v46, %v1702_v12  ;;  %v895_v55 = vrot.slane %v890_v47, %v1702_v12 }
  0x1e   :  { %v967_v56 = vrot.slane %v962_v48, %v1702_v12  ;;  %v975_v57 = vrot.slane %v970_v49, %v1702_v12  ;;  %v1050_v59 = vmul.f32 0.75, %v1700_v10  ;;  %v1122_v60 = vmul.f32 0.78125, %v1700_v10 }
  0x1f   :  { %v1047_v58 = vrot.slane %v1042_v53, %v1702_v12  ;;  %v1130_v61 = vmul.f32 0.8125, %v1700_v10  ;;  %v1202_v62 = vmul.f32 0.84375, %v1700_v10  ;;  %v1210_v63 = vmul.f32 0.875, %v1700_v10 }
  0x20   :  { %v1282_v0 = vmul.f32 0.90625, %v1700_v10  ;;  %v1290_v1 = vmul.f32 0.9375, %v1700_v10  ;;  %v1055_v2 = vrot.slane %v1050_v59, %v1702_v12  ;;  %v1127_v3 = vrot.slane %v1122_v60, %v1702_v12  ;;  %v1914_v60 = vld [vmem:[#allocation2] ss:$0 sm:$0xff] }
  0x21   :  { %v1135_v4 = vrot.slane %v1130_v61, %v1702_v12  ;;  %v1362_v5 = vmul.f32 0.96875, %v1700_v10  ;;  %v1207_v7 = vrot.slane %v1202_v62, %v1702_v12  ;;  %v1215_v8 = vrot.slane %v1210_v63, %v1702_v12 }
  0x22   :  { %v1287_v9 = vrot.slane %v1282_v0, %v1702_v12  ;;  %v1295_v11 = vrot.slane %v1290_v1, %v1702_v12  ;;  %v1374_v28 = vrot.slane %v1700_v10, %v1702_v12  ;;  %v154_v29 = vmul.f32 0.0, %v1700_v10 }
  0x23   :  { %v1367_v27 = vrot.slane %v1362_v5, %v1702_v12 }
  0x24   :  { %v159_v33 = vrot.slane %v154_v29, %v1702_v12 }
  0x8e   :  { %v181_v32 = vpop.permute.xlu0 %180 }
  0x8f   :  { %v183_v44 = vmul.f32 %v1817_v30, %v181_v32 }
  0xda   :  { %v131_v37 = vpop.f32.mrf.mxu0 }
  0xdb   :  { %v132_v43 = vadd.f32 %v1448_v31, %v131_v37 }
  0xdc   :  { %v1468_v45 = vpop.f32.mrf.mxu0 }
  0xdd   :  { %v161_v46 = vadd.f32 %v159_v33, %v132_v43  ;;  %v169_v10 = vadd.f32 %v167_v19, %v132_v43  ;;  %v1830_v47 = vadd.f32 %v175_v20, %v132_v43  ;;  %v1835_v48 = vadd.f32 %v247_v22, %v132_v43 }
  0xde   :  { %v1840_v49 = vadd.f32 %v255_v23, %v132_v43  ;;  %v1845_v13 = vadd.f32 %v327_v24, %v132_v43  ;;  %v1850_v14 = vadd.f32 %v335_v25, %v132_v43  ;;  %v1855_v15 = vadd.f32 %v407_v26, %v132_v43 }
  0xdf   :  { %v184_v19 = vadd.f32 %v183_v44, %v161_v46  ;;  %v1857_v20 = vadd.f32 %v415_v34, %v132_v43  ;;  %v1859_v16 = vadd.f32 %v487_v35, %v132_v43  ;;  %v1861_v22 = vadd.f32 %v495_v36, %v132_v43 }
  0xe0   :  { %v1863_v17 = vadd.f32 %v567_v38, %v132_v43  ;;  %v1865_v23 = vadd.f32 %v575_v39, %v132_v43  ;;  %v1867_v24 = vadd.f32 %v647_v40, %v132_v43  ;;  %v1869_v18 = vadd.f32 %v655_v41, %v132_v43 }
  0xe1   :  { %1477 = vtanh.f32 %v184_v19  ;;  %v1871_v25 = vadd.f32 %v727_v42, %v132_v43  ;;  %v1873_v12 = vadd.f32 %v735_v50, %v132_v43  ;;  %v1875_v21 = vadd.f32 %v807_v51, %v132_v43 }
  0xe2   :  { %v1877_v26 = vadd.f32 %v815_v52, %v132_v43  ;;  %v1879_v34 = vadd.f32 %v887_v54, %v132_v43  ;;  %v1881_v35 = vadd.f32 %v895_v55, %v132_v43  ;;  %v1883_v36 = vadd.f32 %v967_v56, %v132_v43  ;;  %v1910_v56 = vld [vmem:[%s2255_s6] ss:$0 sm:$0xff] }
  0xe3   :  { %v1885_v38 = vadd.f32 %v975_v57, %v132_v43  ;;  %v1887_v39 = vadd.f32 %v1047_v58, %v132_v43  ;;  %v1889_v40 = vadd.f32 %v1055_v2, %v132_v43  ;;  %v1891_v41 = vadd.f32 %v1127_v3, %v132_v43 }
  0xe4   :  { %v1893_v42 = vadd.f32 %v1135_v4, %v132_v43  ;;  %v1895_v50 = vadd.f32 %v1207_v7, %v132_v43  ;;  %v1897_v51 = vadd.f32 %v1215_v8, %v132_v43  ;;  %v1899_v52 = vadd.f32 %v1287_v9, %v132_v43 }
  0xe5   :  { %v1901_v53 = vadd.f32 %v1295_v11, %v132_v43  ;;  %v1903_v54 = vadd.f32 %v1367_v27, %v132_v43  ;;  %v1905_v55 = vadd.f32 %v1374_v28, %v132_v43 }
  0xee   :  { %v1478_v57 = vpop.eup %1477 }
  0xef   :  { %v186_v58 = vmul.f32 %v1478_v57, %v1910_v56 }
  0xf1   :  { %v187_v59 = vsel %vm61_vm1, %v186_v58, 0.0 }
  0xf2   :  { %188 = vadd.xlane.f32.xlu0 %v187_v59 }
 0x17b   :  { %v189_v61 = vpop.xlane.xlu0 %188 }
 0x17c   :  { %v190_v62 = vadd.f32 %v1914_v60, %v189_v61 }
 0x17e   :  { %v191_v63 = vmul.f32 0.03125, %v190_v62 }
 0x180   :  { %v192_v0 = vadd.f32 %v191_v63, %v1690_v6 }
 0x182   :  { %195 = vperm.xlu1 %1476, %v192_v0  }
 0x1fd   :  { %v196_v1 = vpop.permute.xlu1 %195 }
 0x1fe   :  { %v198_v2 = vmul.f32 %v1817_v30, %v196_v1 }
 0x200   :  { %v199_v3 = vadd.f32 %v198_v2, %v169_v10 }
 0x202   :  { %1479 = vtanh.f32 %v199_v3 }
 0x20f   :  { %v1480_v4 = vpop.eup %1479 }
 0x210   :  { %v201_v5 = vmul.f32 %v1480_v4, %v1910_v56 }
 0x212   :  { %v202_v7 = vsel %vm61_vm1, %v201_v5, 0.0 }
 0x213   :  { %203 = vadd.xlane.f32.xlu1 %v202_v7 }
 0x29c   :  { %v204_v8 = vpop.xlane.xlu1 %203 }
 0x29d   :  { %v205_v9 = vadd.f32 %v1914_v60, %v204_v8 }
 0x29f   :  { %v206_v11 = vmul.f32 0.03125, %v205_v9 }
 0x2a1   :  { %v207_v27 = vadd.f32 %v206_v11, %v1690_v6 }
 0x2a3   :  { %210 = vperm.xlu0 %1475, %v207_v27  }
 0x31e   :  { %v211_v28 = vpop.permute.xlu0 %210 }
 0x31f   :  { %v213_v29 = vmul.f32 %v1817_v30, %v211_v28 }
 0x321   :  { %v214_v31 = vadd.f32 %v213_v29, %v169_v10 }
 0x323   :  { %1481 = vtanh.f32 %v214_v31 }
 0x330   :  { %v1482_v32 = vpop.eup %1481 }
 0x331   :  { %v216_v33 = vmul.f32 %v1482_v32, %v1910_v56 }
 0x333   :  { %v217_v37 = vsel %vm61_vm1, %v216_v33, 0.0 }
 0x334   :  { %218 = vadd.xlane.f32.xlu1 %v217_v37 }
 0x3bd   :  { %v219_v43 = vpop.xlane.xlu1 %218 }
 0x3be   :  { %v220_v44 = vadd.f32 %v1914_v60, %v219_v43 }
 0x3c0   :  { %v221_v45 = vmul.f32 0.0625, %v220_v44  ;;  %v236_v63 = vadd.f32 %v220_v44, %v205_v9 }
 0x3c2   :  { %v222_v46 = vadd.f32 %v221_v45, %v1690_v6  ;;  %v237_v0 = vmul.f32 2.0, %v236_v63 }
 0x3c4   :  { %225 = vperm.xlu1 %1476, %v222_v46   ;;  %v238_v2 = vadd.f32 %v237_v0, %v190_v62 }
 0x43f   :  { %v226_v19 = vpop.permute.xlu1 %225 }
 0x440   :  { %v228_v57 = vmul.f32 %v1817_v30, %v226_v19 }
 0x442   :  { %v229_v58 = vadd.f32 %v228_v57, %v1830_v47 }
 0x444   :  { %1483 = vtanh.f32 %v229_v58 }
 0x451   :  { %v1484_v10 = vpop.eup %1483 }
 0x452   :  { %v231_v59 = vmul.f32 %v1484_v10, %v1910_v56 }
 0x454   :  { %v232_v61 = vsel %vm61_vm1, %v231_v59, 0.0 }
 0x455   :  { %233 = vadd.xlane.f32.xlu0 %v232_v61 }
 0x4de   :  { %v234_v1 = vpop.xlane.xlu0 %233 }
 0x4df   :  { %v235_v3 = vadd.f32 %v1914_v60, %v234_v1 }
 0x4e1   :  { %v239_v4 = vadd.f32 %v238_v2, %v235_v3 }
 0x4e3   :  { %v240_v5 = vmul.f32 0.010416667, %v239_v4 }
 0x4e5   :  { %v241_v7 = vadd.f32 %v240_v5, %v1690_v6 }
 0x4e7   :  { %260 = vperm.xlu1 %1476, %v241_v7  }
 0x562   :  { %v261_v8 = vpop.permute.xlu1 %260 }
 0x563   :  { %v263_v11 = vmul.f32 %v1817_v30, %v261_v8 }
 0x565   :  { %v264_v27 = vadd.f32 %v263_v11, %v1830_v47 }
 0x567   :  { %1485 = vtanh.f32 %v264_v27 }
 0x574   :  { %v1486_v28 = vpop.eup %1485 }
 0x575   :  { %v266_v29 = vmul.f32 %v1486_v28, %v1910_v56 }
 0x577   :  { %v267_v9 = vsel %vm61_vm1, %v266_v29, 0.0 }
 0x578   :  { %268 = vadd.xlane.f32.xlu1 %v267_v9 }
 0x601   :  { %v269_v62 = vpop.xlane.xlu1 %268 }
 0x602   :  { %v270_v31 = vadd.f32 %v1914_v60, %v269_v62 }
 0x604   :  { %v271_v32 = vmul.f32 0.03125, %v270_v31 }
 0x606   :  { %v272_v33 = vadd.f32 %v271_v32, %v241_v7 }
 0x608   :  { %275 = vperm.xlu0 %1475, %v272_v33  }
 0x683   :  { %v276_v6 = vpop.permute.xlu0 %275 }
 0x684   :  { %v278_v37 = vmul.f32 %v1817_v30, %v276_v6 }
 0x686   :  { %v279_v43 = vadd.f32 %v278_v37, %v1835_v48 }
 0x688   :  { %1487 = vtanh.f32 %v279_v43 }
 0x695   :  { %v1488_v47 = vpop.eup %1487 }
 0x696   :  { %v281_v44 = vmul.f32 %v1488_v47, %v1910_v56 }
 0x698   :  { %v282_v45 = vsel %vm61_vm1, %v281_v44, 0.0 }
 0x699   :  { %283 = vadd.xlane.f32.xlu1 %v282_v45 }
 0x722   :  { %v284_v46 = vpop.xlane.xlu1 %283 }
 0x723   :  { %v285_v19 = vadd.f32 %v1914_v60, %v284_v46 }
 0x725   :  { %v286_v57 = vmul.f32 0.03125, %v285_v19 }
 0x727   :  { %v287_v58 = vadd.f32 %v286_v57, %v241_v7 }
 0x729   :  { %290 = vperm.xlu1 %1476, %v287_v58  }
 0x7a4   :  { %v291_v10 = vpop.permute.xlu1 %290 }
 0x7a5   :  { %v293_v59 = vmul.f32 %v1817_v30, %v291_v10 }
 0x7a7   :  { %v294_v61 = vadd.f32 %v293_v59, %v1835_v48 }
 0x7a9   :  { %1489 = vtanh.f32 %v294_v61 }
 0x7b6   :  { %v1490_v63 = vpop.eup %1489 }
 0x7b7   :  { %v296_v0 = vmul.f32 %v1490_v63, %v1910_v56 }
 0x7b9   :  { %v297_v1 = vsel %vm61_vm1, %v296_v0, 0.0 }
 0x7ba   :  { %298 = vadd.xlane.f32.xlu0 %v297_v1 }
 0x843   :  { %v299_v2 = vpop.xlane.xlu0 %298 }
 0x844   :  { %v300_v3 = vadd.f32 %v1914_v60, %v299_v2 }
 0x846   :  { %v301_v4 = vmul.f32 0.0625, %v300_v3  ;;  %v316_v9 = vadd.f32 %v300_v3, %v285_v19 }
 0x848   :  { %v302_v5 = vadd.f32 %v301_v4, %v241_v7  ;;  %v317_v62 = vmul.f32 2.0, %v316_v9 }
 0x84a   :  { %305 = vperm.xlu1 %1476, %v302_v5   ;;  %v318_v33 = vadd.f32 %v317_v62, %v270_v31 }
 0x8c5   :  { %v306_v8 = vpop.permute.xlu1 %305 }
 0x8c6   :  { %v308_v11 = vmul.f32 %v1817_v30, %v306_v8 }
 0x8c8   :  { %v309_v27 = vadd.f32 %v308_v11, %v1840_v49 }
 0x8ca   :  { %1491 = vtanh.f32 %v309_v27 }
 0x8d7   :  { %v1492_v48 = vpop.eup %1491 }
 0x8d8   :  { %v311_v28 = vmul.f32 %v1492_v48, %v1910_v56 }
 0x8da   :  { %v312_v29 = vsel %vm61_vm1, %v311_v28, 0.0 }
 0x8db   :  { %313 = vadd.xlane.f32.xlu1 %v312_v29 }
 0x964   :  { %v314_v32 = vpop.xlane.xlu1 %313 }
 0x965   :  { %v315_v6 = vadd.f32 %v1914_v60, %v314_v32 }
 0x967   :  { %v319_v37 = vadd.f32 %v318_v33, %v315_v6 }
 0x969   :  { %v320_v43 = vmul.f32 0.010416667, %v319_v37 }
 0x96b   :  { %v321_v47 = vadd.f32 %v320_v43, %v241_v7 }
 0x96d   :  { %340 = vperm.xlu0 %1475, %v321_v47  }
 0x9e8   :  { %v341_v44 = vpop.permute.xlu0 %340 }
 0x9e9   :  { %v343_v45 = vmul.f32 %v1817_v30, %v341_v44 }
 0x9eb   :  { %v344_v46 = vadd.f32 %v343_v45, %v1840_v49 }
 0x9ed   :  { %1493 = vtanh.f32 %v344_v46 }
 0x9fa   :  { %v1494_v57 = vpop.eup %1493 }
 0x9fb   :  { %v346_v58 = vmul.f32 %v1494_v57, %v1910_v56 }
 0x9fd   :  { %v347_v19 = vsel %vm61_vm1, %v346_v58, 0.0 }
 0x9fe   :  { %348 = vadd.xlane.f32.xlu1 %v347_v19 }
 0xa87   :  { %v349_v10 = vpop.xlane.xlu1 %348 }
 0xa88   :  { %v350_v31 = vadd.f32 %v1914_v60, %v349_v10 }
 0xa8a   :  { %v351_v59 = vmul.f32 0.03125, %v350_v31 }
 0xa8c   :  { %v352_v61 = vadd.f32 %v351_v59, %v321_v47 }
 0xa8e   :  { %355 = vperm.xlu0 %1475, %v352_v61  }
 0xb09   :  { %v356_v7 = vpop.permute.xlu0 %355 }
 0xb0a   :  { %v358_v63 = vmul.f32 %v1817_v30, %v356_v7 }
 0xb0c   :  { %v359_v0 = vadd.f32 %v358_v63, %v1845_v13 }
 0xb0e   :  { %1495 = vtanh.f32 %v359_v0 }
 0xb1b   :  { %v1496_v49 = vpop.eup %1495 }
 0xb1c   :  { %v361_v1 = vmul.f32 %v1496_v49, %v1910_v56 }
 0xb1e   :  { %v362_v2 = vsel %vm61_vm1, %v361_v1, 0.0 }
 0xb1f   :  { %363 = vadd.xlane.f32.xlu1 %v362_v2 }
 0xba8   :  { %v364_v3 = vpop.xlane.xlu1 %363 }
 0xba9   :  { %v365_v4 = vadd.f32 %v1914_v60, %v364_v3 }
 0xbab   :  { %v366_v5 = vmul.f32 0.03125, %v365_v4 }
 0xbad   :  { %v367_v8 = vadd.f32 %v366_v5, %v321_v47 }
 0xbaf   :  { %370 = vperm.xlu0 %1475, %v367_v8  }
 0xc2a   :  { %v371_v11 = vpop.permute.xlu0 %370 }
 0xc2b   :  { %v373_v27 = vmul.f32 %v1817_v30, %v371_v11 }
 0xc2d   :  { %v374_v48 = vadd.f32 %v373_v27, %v1845_v13 }
 0xc2f   :  { %1497 = vtanh.f32 %v374_v48 }
 0xc3c   :  { %v1498_v28 = vpop.eup %1497 }
 0xc3d   :  { %v376_v29 = vmul.f32 %v1498_v28, %v1910_v56 }
 0xc3f   :  { %v377_v9 = vsel %vm61_vm1, %v376_v29, 0.0 }
 0xc40   :  { %378 = vadd.xlane.f32.xlu1 %v377_v9 }
 0xcc9   :  { %v379_v62 = vpop.xlane.xlu1 %378 }
 0xcca   :  { %v380_v32 = vadd.f32 %v1914_v60, %v379_v62 }
 0xccc   :  { %v381_v33 = vmul.f32 0.0625, %v380_v32  ;;  %v396_v57 = vadd.f32 %v380_v32, %v365_v4 }
 0xcce   :  { %v382_v6 = vadd.f32 %v381_v33, %v321_v47  ;;  %v397_v58 = vmul.f32 2.0, %v396_v57 }
 0xcd0   :  { %385 = vperm.xlu0 %1475, %v382_v6   ;;  %v398_v10 = vadd.f32 %v397_v58, %v350_v31 }
 0xd4b   :  { %v386_v37 = vpop.permute.xlu0 %385 }
 0xd4c   :  { %v388_v43 = vmul.f32 %v1817_v30, %v386_v37 }
 0xd4e   :  { %v389_v44 = vadd.f32 %v388_v43, %v1850_v14 }
 0xd50   :  { %1499 = vtanh.f32 %v389_v44 }
 0xd5d   :  { %v1500_v13 = vpop.eup %1499 }
 0xd5e   :  { %v391_v45 = vmul.f32 %v1500_v13, %v1910_v56 }
 0xd60   :  { %v392_v46 = vsel %vm61_vm1, %v391_v45, 0.0 }
 0xd61   :  { %393 = vadd.xlane.f32.xlu1 %v392_v46 }
 0xdea   :  { %v394_v19 = vpop.xlane.xlu1 %393 }
 0xdeb   :  { %v395_v59 = vadd.f32 %v1914_v60, %v394_v19 }
 0xded   :  { %v399_v61 = vadd.f32 %v398_v10, %v395_v59 }
 0xdef   :  { %v400_v7 = vmul.f32 0.010416667, %v399_v61 }
 0xdf1   :  { %v401_v63 = vadd.f32 %v400_v7, %v321_v47 }
 0xdf3   :  { %420 = vperm.xlu0 %1475, %v401_v63  }
 0xe6e   :  { %v421_v0 = vpop.permute.xlu0 %420 }
 0xe6f   :  { %v423_v49 = vmul.f32 %v1817_v30, %v421_v0 }
 0xe71   :  { %v424_v1 = vadd.f32 %v423_v49, %v1850_v14 }
 0xe73   :  { %1501 = vtanh.f32 %v424_v1 }
 0xe80   :  { %v1502_v2 = vpop.eup %1501 }
 0xe81   :  { %v426_v3 = vmul.f32 %v1502_v2, %v1910_v56 }
 0xe83   :  { %v427_v4 = vsel %vm61_vm1, %v426_v3, 0.0 }
 0xe84   :  { %428 = vadd.xlane.f32.xlu1 %v427_v4 }
 0xf0d   :  { %v429_v5 = vpop.xlane.xlu1 %428 }
 0xf0e   :  { %v430_v31 = vadd.f32 %v1914_v60, %v429_v5 }
 0xf10   :  { %v431_v8 = vmul.f32 0.03125, %v430_v31 }
 0xf12   :  { %v432_v11 = vadd.f32 %v431_v8, %v401_v63 }
 0xf14   :  { %435 = vperm.xlu0 %1475, %v432_v11  }
 0xf8f   :  { %v436_v47 = vpop.permute.xlu0 %435 }
 0xf90   :  { %v438_v27 = vmul.f32 %v1817_v30, %v436_v47 }
 0xf92   :  { %v439_v48 = vadd.f32 %v438_v27, %v1855_v15 }
 0xf94   :  { %1503 = vtanh.f32 %v439_v48 }
 0xfa1   :  { %v1504_v14 = vpop.eup %1503 }
 0xfa2   :  { %v441_v28 = vmul.f32 %v1504_v14, %v1910_v56 }
 0xfa4   :  { %v442_v29 = vsel %vm61_vm1, %v441_v28, 0.0 }
 0xfa5   :  { %443 = vadd.xlane.f32.xlu1 %v442_v29 }
0x102e   :  { %v444_v9 = vpop.xlane.xlu1 %443 }
0x102f   :  { %v445_v62 = vadd.f32 %v1914_v60, %v444_v9 }
0x1031   :  { %v446_v32 = vmul.f32 0.03125, %v445_v62 }
0x1033   :  { %v447_v33 = vadd.f32 %v446_v32, %v401_v63 }
0x1035   :  { %450 = vperm.xlu0 %1475, %v447_v33  }
0x10b0   :  { %v451_v6 = vpop.permute.xlu0 %450 }
0x10b1   :  { %v453_v37 = vmul.f32 %v1817_v30, %v451_v6 }
0x10b3   :  { %v454_v43 = vadd.f32 %v453_v37, %v1855_v15 }
0x10b5   :  { %1505 = vtanh.f32 %v454_v43 }
0x10c2   :  { %v1506_v44 = vpop.eup %1505 }
0x10c3   :  { %v456_v13 = vmul.f32 %v1506_v44, %v1910_v56 }
0x10c5   :  { %v457_v45 = vsel %vm61_vm1, %v456_v13, 0.0 }
0x10c6   :  { %458 = vadd.xlane.f32.xlu1 %v457_v45 }
0x114f   :  { %v459_v46 = vpop.xlane.xlu1 %458 }
0x1150   :  { %v460_v57 = vadd.f32 %v1914_v60, %v459_v46 }
0x1152   :  { %v461_v58 = vmul.f32 0.0625, %v460_v57  ;;  %v476_v49 = vadd.f32 %v460_v57, %v445_v62 }
0x1154   :  { %v462_v19 = vadd.f32 %v461_v58, %v401_v63  ;;  %v477_v1 = vmul.f32 2.0, %v476_v49 }
0x1156   :  { %465 = vperm.xlu0 %1475, %v462_v19   ;;  %v478_v3 = vadd.f32 %v477_v1, %v430_v31 }
0x11d1   :  { %v466_v10 = vpop.permute.xlu0 %465 }
0x11d2   :  { %v468_v59 = vmul.f32 %v1817_v30, %v466_v10 }
0x11d4   :  { %v469_v61 = vadd.f32 %v468_v59, %v1857_v20 }
0x11d6   :  { %1507 = vtanh.f32 %v469_v61 }
0x11e3   :  { %v1508_v15 = vpop.eup %1507 }
0x11e4   :  { %v471_v7 = vmul.f32 %v1508_v15, %v1910_v56 }
0x11e6   :  { %v472_v0 = vsel %vm61_vm1, %v471_v7, 0.0 }
0x11e7   :  { %473 = vadd.xlane.f32.xlu1 %v472_v0 }
0x1270   :  { %v474_v2 = vpop.xlane.xlu1 %473 }
0x1271   :  { %v475_v4 = vadd.f32 %v1914_v60, %v474_v2 }
0x1273   :  { %v479_v5 = vadd.f32 %v478_v3, %v475_v4 }
0x1275   :  { %v480_v8 = vmul.f32 0.010416667, %v479_v5 }
0x1277   :  { %v481_v11 = vadd.f32 %v480_v8, %v401_v63 }
0x1279   :  { %500 = vperm.xlu0 %1475, %v481_v11  }
0x12f4   :  { %v501_v47 = vpop.permute.xlu0 %500 }
0x12f5   :  { %v503_v27 = vmul.f32 %v1817_v30, %v501_v47 }
0x12f7   :  { %v504_v48 = vadd.f32 %v503_v27, %v1857_v20 }
0x12f9   :  { %1509 = vtanh.f32 %v504_v48 }
0x1306   :  { %v1510_v14 = vpop.eup %1509 }
0x1307   :  { %v506_v28 = vmul.f32 %v1510_v14, %v1910_v56 }
0x1309   :  { %v507_v29 = vsel %vm61_vm1, %v506_v28, 0.0 }
0x130a   :  { %508 = vadd.xlane.f32.xlu1 %v507_v29 }
0x1393   :  { %v509_v9 = vpop.xlane.xlu1 %508 }
0x1394   :  { %v510_v31 = vadd.f32 %v1914_v60, %v509_v9 }
0x1396   :  { %v511_v62 = vmul.f32 0.03125, %v510_v31 }
0x1398   :  { %v512_v32 = vadd.f32 %v511_v62, %v481_v11 }
0x139a   :  { %515 = vperm.xlu0 %1475, %v512_v32  }
0x1415   :  { %v516_v63 = vpop.permute.xlu0 %515 }
0x1416   :  { %v518_v33 = vmul.f32 %v1817_v30, %v516_v63 }
0x1418   :  { %v519_v6 = vadd.f32 %v518_v33, %v1859_v16 }
0x141a   :  { %1511 = vtanh.f32 %v519_v6 }
0x1427   :  { %v1512_v20 = vpop.eup %1511 }
0x1428   :  { %v521_v37 = vmul.f32 %v1512_v20, %v1910_v56 }
0x142a   :  { %v522_v43 = vsel %vm61_vm1, %v521_v37, 0.0 }
0x142b   :  { %523 = vadd.xlane.f32.xlu1 %v522_v43 }
0x14b4   :  { %v524_v44 = vpop.xlane.xlu1 %523 }
0x14b5   :  { %v525_v13 = vadd.f32 %v1914_v60, %v524_v44 }
0x14b7   :  { %v526_v45 = vmul.f32 0.03125, %v525_v13 }
0x14b9   :  { %v527_v46 = vadd.f32 %v526_v45, %v481_v11 }
0x14bb   :  { %530 = vperm.xlu0 %1475, %v527_v46  }
0x1536   :  { %v531_v57 = vpop.permute.xlu0 %530 }
0x1537   :  { %v533_v58 = vmul.f32 %v1817_v30, %v531_v57 }
0x1539   :  { %v534_v19 = vadd.f32 %v533_v58, %v1859_v16 }
0x153b   :  { %1513 = vtanh.f32 %v534_v19 }
0x1548   :  { %v1514_v10 = vpop.eup %1513 }
0x1549   :  { %v536_v59 = vmul.f32 %v1514_v10, %v1910_v56 }
0x154b   :  { %v537_v61 = vsel %vm61_vm1, %v536_v59, 0.0 }
0x154c   :  { %538 = vadd.xlane.f32.xlu1 %v537_v61 }
0x15d5   :  { %v539_v15 = vpop.xlane.xlu1 %538 }
0x15d6   :  { %v540_v7 = vadd.f32 %v1914_v60, %v539_v15 }
0x15d8   :  { %v541_v0 = vmul.f32 0.0625, %v540_v7  ;;  %v556_v8 = vadd.f32 %v540_v7, %v525_v13 }
0x15da   :  { %v542_v49 = vadd.f32 %v541_v0, %v481_v11  ;;  %v557_v47 = vmul.f32 2.0, %v556_v8 }
0x15dc   :  { %545 = vperm.xlu0 %1475, %v542_v49   ;;  %v558_v48 = vadd.f32 %v557_v47, %v510_v31 }
0x1657   :  { %v546_v1 = vpop.permute.xlu0 %545 }
0x1658   :  { %v548_v2 = vmul.f32 %v1817_v30, %v546_v1 }
0x165a   :  { %v549_v3 = vadd.f32 %v548_v2, %v1861_v22 }
0x165c   :  { %1515 = vtanh.f32 %v549_v3 }
0x1669   :  { %v1516_v16 = vpop.eup %1515 }
0x166a   :  { %v551_v4 = vmul.f32 %v1516_v16, %v1910_v56 }
0x166c   :  { %v552_v5 = vsel %vm61_vm1, %v551_v4, 0.0 }
0x166d   :  { %553 = vadd.xlane.f32.xlu1 %v552_v5 }
0x16f6   :  { %v554_v27 = vpop.xlane.xlu1 %553 }
0x16f7   :  { %v555_v14 = vadd.f32 %v1914_v60, %v554_v27 }
0x16f9   :  { %v559_v28 = vadd.f32 %v558_v48, %v555_v14 }
0x16fb   :  { %v560_v29 = vmul.f32 0.010416667, %v559_v28 }
0x16fd   :  { %v561_v9 = vadd.f32 %v560_v29, %v481_v11 }
0x16ff   :  { %580 = vperm.xlu0 %1475, %v561_v9  }
0x177a   :  { %v581_v62 = vpop.permute.xlu0 %580 }
0x177b   :  { %v583_v32 = vmul.f32 %v1817_v30, %v581_v62 }
0x177d   :  { %v584_v63 = vadd.f32 %v583_v32, %v1861_v22 }
0x177f   :  { %1517 = vtanh.f32 %v584_v63 }
0x178c   :  { %v1518_v33 = vpop.eup %1517 }
0x178d   :  { %v586_v6 = vmul.f32 %v1518_v33, %v1910_v56 }
0x178f   :  { %v587_v20 = vsel %vm61_vm1, %v586_v6, 0.0 }
0x1790   :  { %588 = vadd.xlane.f32.xlu1 %v587_v20 }
0x1819   :  { %v589_v37 = vpop.xlane.xlu1 %588 }
0x181a   :  { %v590_v31 = vadd.f32 %v1914_v60, %v589_v37 }
0x181c   :  { %v591_v43 = vmul.f32 0.03125, %v590_v31 }
0x181e   :  { %v592_v44 = vadd.f32 %v591_v43, %v561_v9 }
0x1820   :  { %595 = vperm.xlu0 %1475, %v592_v44  }
0x189b   :  { %v596_v11 = vpop.permute.xlu0 %595 }
0x189c   :  { %v598_v13 = vmul.f32 %v1817_v30, %v596_v11 }
0x189e   :  { %v599_v45 = vadd.f32 %v598_v13, %v1863_v17 }
0x18a0   :  { %1519 = vtanh.f32 %v599_v45 }
0x18ad   :  { %v1520_v22 = vpop.eup %1519 }
0x18ae   :  { %v601_v46 = vmul.f32 %v1520_v22, %v1910_v56 }
0x18b0   :  { %v602_v57 = vsel %vm61_vm1, %v601_v46, 0.0 }
0x18b1   :  { %603 = vadd.xlane.f32.xlu1 %v602_v57 }
0x193a   :  { %v604_v58 = vpop.xlane.xlu1 %603 }
0x193b   :  { %v605_v19 = vadd.f32 %v1914_v60, %v604_v58 }
0x193d   :  { %v606_v10 = vmul.f32 0.03125, %v605_v19 }
0x193f   :  { %v607_v59 = vadd.f32 %v606_v10, %v561_v9 }
0x1941   :  { %610 = vperm.xlu0 %1475, %v607_v59  }
0x19bc   :  { %v611_v61 = vpop.permute.xlu0 %610 }
0x19bd   :  { %v613_v15 = vmul.f32 %v1817_v30, %v611_v61 }
0x19bf   :  { %v614_v7 = vadd.f32 %v613_v15, %v1863_v17 }
0x19c1   :  { %1521 = vtanh.f32 %v614_v7 }
0x19ce   :  { %v1522_v0 = vpop.eup %1521 }
0x19cf   :  { %v616_v49 = vmul.f32 %v1522_v0, %v1910_v56 }
0x19d1   :  { %v617_v1 = vsel %vm61_vm1, %v616_v49, 0.0 }
0x19d2   :  { %618 = vadd.xlane.f32.xlu1 %v617_v1 }
0x1a5b   :  { %v619_v2 = vpop.xlane.xlu1 %618 }
0x1a5c   :  { %v620_v3 = vadd.f32 %v1914_v60, %v619_v2 }
0x1a5e   :  { %v621_v16 = vmul.f32 0.0625, %v620_v3  ;;  %v636_v14 = vadd.f32 %v620_v3, %v605_v19 }
0x1a60   :  { %v622_v4 = vadd.f32 %v621_v16, %v561_v9  ;;  %v637_v28 = vmul.f32 2.0, %v636_v14 }
0x1a62   :  { %625 = vperm.xlu0 %1475, %v622_v4   ;;  %v638_v62 = vadd.f32 %v637_v28, %v590_v31 }
0x1add   :  { %v626_v5 = vpop.permute.xlu0 %625 }
0x1ade   :  { %v628_v8 = vmul.f32 %v1817_v30, %v626_v5 }
0x1ae0   :  { %v629_v47 = vadd.f32 %v628_v8, %v1865_v23 }
0x1ae2   :  { %1523 = vtanh.f32 %v629_v47 }
0x1aef   :  { %v1524_v17 = vpop.eup %1523 }
0x1af0   :  { %v631_v27 = vmul.f32 %v1524_v17, %v1910_v56 }
0x1af2   :  { %v632_v48 = vsel %vm61_vm1, %v631_v27, 0.0 }
0x1af3   :  { %633 = vadd.xlane.f32.xlu1 %v632_v48 }
0x1b7c   :  { %v634_v29 = vpop.xlane.xlu1 %633 }
0x1b7d   :  { %v635_v32 = vadd.f32 %v1914_v60, %v634_v29 }
0x1b7f   :  { %v639_v63 = vadd.f32 %v638_v62, %v635_v32 }
0x1b81   :  { %v640_v33 = vmul.f32 0.010416667, %v639_v63 }
0x1b83   :  { %v641_v6 = vadd.f32 %v640_v33, %v561_v9 }
0x1b85   :  { %660 = vperm.xlu0 %1475, %v641_v6  }
0x1c00   :  { %v661_v20 = vpop.permute.xlu0 %660 }
0x1c01   :  { %v663_v37 = vmul.f32 %v1817_v30, %v661_v20 }
0x1c03   :  { %v664_v43 = vadd.f32 %v663_v37, %v1865_v23 }
0x1c05   :  { %1525 = vtanh.f32 %v664_v43 }
0x1c12   :  { %v1526_v44 = vpop.eup %1525 }
0x1c13   :  { %v666_v11 = vmul.f32 %v1526_v44, %v1910_v56 }
0x1c15   :  { %v667_v13 = vsel %vm61_vm1, %v666_v11, 0.0 }
0x1c16   :  { %668 = vadd.xlane.f32.xlu1 %v667_v13 }
0x1c9f   :  { %v669_v45 = vpop.xlane.xlu1 %668 }
0x1ca0   :  { %v670_v31 = vadd.f32 %v1914_v60, %v669_v45 }
0x1ca2   :  { %v671_v22 = vmul.f32 0.03125, %v670_v31 }
0x1ca4   :  { %v672_v46 = vadd.f32 %v671_v22, %v641_v6 }
0x1ca6   :  { %675 = vperm.xlu0 %1475, %v672_v46  }
0x1d21   :  { %v676_v9 = vpop.permute.xlu0 %675 }
0x1d22   :  { %v678_v57 = vmul.f32 %v1817_v30, %v676_v9 }
0x1d24   :  { %v679_v58 = vadd.f32 %v678_v57, %v1867_v24 }
0x1d26   :  { %1527 = vtanh.f32 %v679_v58 }
0x1d33   :  { %v1528_v23 = vpop.eup %1527 }
0x1d34   :  { %v681_v19 = vmul.f32 %v1528_v23, %v1910_v56 }
0x1d36   :  { %v682_v10 = vsel %vm61_vm1, %v681_v19, 0.0 }
0x1d37   :  { %683 = vadd.xlane.f32.xlu1 %v682_v10 }
0x1dc0   :  { %v684_v59 = vpop.xlane.xlu1 %683 }
0x1dc1   :  { %v685_v61 = vadd.f32 %v1914_v60, %v684_v59 }
0x1dc3   :  { %v686_v15 = vmul.f32 0.03125, %v685_v61 }
0x1dc5   :  { %v687_v7 = vadd.f32 %v686_v15, %v641_v6 }
0x1dc7   :  { %690 = vperm.xlu0 %1475, %v687_v7  }
0x1e42   :  { %v691_v0 = vpop.permute.xlu0 %690 }
0x1e43   :  { %v693_v49 = vmul.f32 %v1817_v30, %v691_v0 }
0x1e45   :  { %v694_v1 = vadd.f32 %v693_v49, %v1867_v24 }
0x1e47   :  { %1529 = vtanh.f32 %v694_v1 }
0x1e54   :  { %v1530_v2 = vpop.eup %1529 }
0x1e55   :  { %v696_v3 = vmul.f32 %v1530_v2, %v1910_v56 }
0x1e57   :  { %v697_v16 = vsel %vm61_vm1, %v696_v3, 0.0 }
0x1e58   :  { %698 = vadd.xlane.f32.xlu1 %v697_v16 }
0x1ee1   :  { %v699_v4 = vpop.xlane.xlu1 %698 }
0x1ee2   :  { %v700_v5 = vadd.f32 %v1914_v60, %v699_v4 }
0x1ee4   :  { %v701_v8 = vmul.f32 0.0625, %v700_v5  ;;  %v716_v29 = vadd.f32 %v700_v5, %v685_v61 }
0x1ee6   :  { %v702_v47 = vadd.f32 %v701_v8, %v641_v6  ;;  %v717_v62 = vmul.f32 2.0, %v716_v29 }
0x1ee8   :  { %705 = vperm.xlu0 %1475, %v702_v47   ;;  %v718_v63 = vadd.f32 %v717_v62, %v670_v31 }
0x1f63   :  { %v706_v17 = vpop.permute.xlu0 %705 }
0x1f64   :  { %v708_v27 = vmul.f32 %v1817_v30, %v706_v17 }
0x1f66   :  { %v709_v48 = vadd.f32 %v708_v27, %v1869_v18 }
0x1f68   :  { %1531 = vtanh.f32 %v709_v48 }
0x1f75   :  { %v1532_v24 = vpop.eup %1531 }
0x1f76   :  { %v711_v14 = vmul.f32 %v1532_v24, %v1910_v56 }
0x1f78   :  { %v712_v28 = vsel %vm61_vm1, %v711_v14, 0.0 }
0x1f79   :  { %713 = vadd.xlane.f32.xlu1 %v712_v28 }
0x2002   :  { %v714_v32 = vpop.xlane.xlu1 %713 }
0x2003   :  { %v715_v33 = vadd.f32 %v1914_v60, %v714_v32 }
0x2005   :  { %v719_v20 = vadd.f32 %v718_v63, %v715_v33 }
0x2007   :  { %v720_v37 = vmul.f32 0.010416667, %v719_v20 }
0x2009   :  { %v721_v43 = vadd.f32 %v720_v37, %v641_v6 }
0x200b   :  { %740 = vperm.xlu0 %1475, %v721_v43  }
0x2086   :  { %v741_v44 = vpop.permute.xlu0 %740 }
0x2087   :  { %v743_v11 = vmul.f32 %v1817_v30, %v741_v44 }
0x2089   :  { %v744_v13 = vadd.f32 %v743_v11, %v1869_v18 }
0x208b   :  { %1533 = vtanh.f32 %v744_v13 }
0x2098   :  { %v1534_v45 = vpop.eup %1533 }
0x2099   :  { %v746_v22 = vmul.f32 %v1534_v45, %v1910_v56 }
0x209b   :  { %v747_v46 = vsel %vm61_vm1, %v746_v22, 0.0 }
0x209c   :  { %748 = vadd.xlane.f32.xlu1 %v747_v46 }
0x2125   :  { %v749_v9 = vpop.xlane.xlu1 %748 }
0x2126   :  { %v750_v31 = vadd.f32 %v1914_v60, %v749_v9 }
0x2128   :  { %v751_v57 = vmul.f32 0.03125, %v750_v31 }
0x212a   :  { %v752_v58 = vadd.f32 %v751_v57, %v721_v43 }
0x212c   :  { %755 = vperm.xlu0 %1475, %v752_v58  }
0x21a7   :  { %v756_v6 = vpop.permute.xlu0 %755 }
0x21a8   :  { %v758_v23 = vmul.f32 %v1817_v30, %v756_v6 }
0x21aa   :  { %v759_v19 = vadd.f32 %v758_v23, %v1871_v25 }
0x21ac   :  { %1535 = vtanh.f32 %v759_v19 }
0x21b9   :  { %v1536_v18 = vpop.eup %1535 }
0x21ba   :  { %v761_v10 = vmul.f32 %v1536_v18, %v1910_v56 }
0x21bc   :  { %v762_v59 = vsel %vm61_vm1, %v761_v10, 0.0 }
0x21bd   :  { %763 = vadd.xlane.f32.xlu1 %v762_v59 }
0x2246   :  { %v764_v61 = vpop.xlane.xlu1 %763 }
0x2247   :  { %v765_v15 = vadd.f32 %v1914_v60, %v764_v61 }
0x2249   :  { %v766_v7 = vmul.f32 0.03125, %v765_v15 }
0x224b   :  { %v767_v0 = vadd.f32 %v766_v7, %v721_v43 }
0x224d   :  { %770 = vperm.xlu0 %1475, %v767_v0  }
0x22c8   :  { %v771_v49 = vpop.permute.xlu0 %770 }
0x22c9   :  { %v773_v1 = vmul.f32 %v1817_v30, %v771_v49 }
0x22cb   :  { %v774_v2 = vadd.f32 %v773_v1, %v1871_v25 }
0x22cd   :  { %1537 = vtanh.f32 %v774_v2 }
0x22da   :  { %v1538_v3 = vpop.eup %1537 }
0x22db   :  { %v776_v16 = vmul.f32 %v1538_v3, %v1910_v56 }
0x22dd   :  { %v777_v4 = vsel %vm61_vm1, %v776_v16, 0.0 }
0x22de   :  { %778 = vadd.xlane.f32.xlu1 %v777_v4 }
0x2367   :  { %v779_v5 = vpop.xlane.xlu1 %778 }
0x2368   :  { %v780_v8 = vadd.f32 %v1914_v60, %v779_v5 }
0x236a   :  { %v781_v47 = vmul.f32 0.0625, %v780_v8  ;;  %v796_v29 = vadd.f32 %v780_v8, %v765_v15 }
0x236c   :  { %v782_v17 = vadd.f32 %v781_v47, %v721_v43  ;;  %v797_v62 = vmul.f32 2.0, %v796_v29 }
0x236e   :  { %785 = vperm.xlu0 %1475, %v782_v17   ;;  %v798_v63 = vadd.f32 %v797_v62, %v750_v31 }
0x23e9   :  { %v786_v27 = vpop.permute.xlu0 %785 }
0x23ea   :  { %v788_v48 = vmul.f32 %v1817_v30, %v786_v27 }
0x23ec   :  { %v789_v24 = vadd.f32 %v788_v48, %v1873_v12 }
0x23ee   :  { %1539 = vtanh.f32 %v789_v24 }
0x23fb   :  { %v1540_v25 = vpop.eup %1539 }
0x23fc   :  { %v791_v14 = vmul.f32 %v1540_v25, %v1910_v56 }
0x23fe   :  { %v792_v28 = vsel %vm61_vm1, %v791_v14, 0.0 }
0x23ff   :  { %793 = vadd.xlane.f32.xlu1 %v792_v28 }
0x2488   :  { %v794_v32 = vpop.xlane.xlu1 %793 }
0x2489   :  { %v795_v33 = vadd.f32 %v1914_v60, %v794_v32 }
0x248b   :  { %v799_v20 = vadd.f32 %v798_v63, %v795_v33 }
0x248d   :  { %v800_v37 = vmul.f32 0.010416667, %v799_v20 }
0x248f   :  { %v801_v44 = vadd.f32 %v800_v37, %v721_v43 }
0x2491   :  { %820 = vperm.xlu0 %1475, %v801_v44  }
0x250c   :  { %v821_v11 = vpop.permute.xlu0 %820 }
0x250d   :  { %v823_v13 = vmul.f32 %v1817_v30, %v821_v11 }
0x250f   :  { %v824_v45 = vadd.f32 %v823_v13, %v1873_v12 }
0x2511   :  { %1541 = vtanh.f32 %v824_v45 }
0x251e   :  { %v1542_v22 = vpop.eup %1541 }
0x251f   :  { %v826_v46 = vmul.f32 %v1542_v22, %v1910_v56 }
0x2521   :  { %v827_v9 = vsel %vm61_vm1, %v826_v46, 0.0 }
0x2522   :  { %828 = vadd.xlane.f32.xlu1 %v827_v9 }
0x25ab   :  { %v829_v57 = vpop.xlane.xlu1 %828 }
0x25ac   :  { %v830_v31 = vadd.f32 %v1914_v60, %v829_v57 }
0x25ae   :  { %v831_v58 = vmul.f32 0.03125, %v830_v31 }
0x25b0   :  { %v832_v6 = vadd.f32 %v831_v58, %v801_v44 }
0x25b2   :  { %835 = vperm.xlu0 %1475, %v832_v6  }
0x262d   :  { %v836_v43 = vpop.permute.xlu0 %835 }
0x262e   :  { %v838_v23 = vmul.f32 %v1817_v30, %v836_v43  ;;  %v2087_v30 = vld [vmem:[%s2251_s2] ss:$0 sm:$0xff] }
0x2630   :  { %v839_v19 = vadd.f32 %v838_v23, %v1875_v21 }
0x2632   :  { %1543 = vtanh.f32 %v839_v19 }
0x263f   :  { %v1544_v12 = vpop.eup %1543 }
0x2640   :  { %v841_v18 = vmul.f32 %v1544_v12, %v1910_v56  ;;  %v2113_v12 = vld [vmem:[#allocation2] ss:$0 sm:$0xff] }
0x2642   :  { %v842_v10 = vsel %vm61_vm1, %v841_v18, 0.0 }
0x2643   :  { %843 = vadd.xlane.f32.xlu1 %v842_v10 }
0x26cc   :  { %v844_v59 = vpop.xlane.xlu1 %843 }
0x26cd   :  { %v845_v61 = vadd.f32 %v1914_v60, %v844_v59 }
0x26cf   :  { %v846_v15 = vmul.f32 0.03125, %v845_v61 }
0x26d1   :  { %v847_v7 = vadd.f32 %v846_v15, %v801_v44 }
0x26d3   :  { %850 = vperm.xlu0 %1475, %v847_v7  }
0x274e   :  { %v851_v0 = vpop.permute.xlu0 %850 }
0x274f   :  { %v853_v49 = vmul.f32 %v2087_v30, %v851_v0 }
0x2751   :  { %v854_v1 = vadd.f32 %v853_v49, %v1875_v21 }
0x2753   :  { %1545 = vtanh.f32 %v854_v1 }
0x2760   :  { %v1546_v2 = vpop.eup %1545 }
0x2761   :  { %v856_v3 = vmul.f32 %v1546_v2, %v1910_v56 }
0x2763   :  { %v857_v16 = vsel %vm61_vm1, %v856_v3, 0.0 }
0x2764   :  { %858 = vadd.xlane.f32.xlu1 %v857_v16 }
0x27ed   :  { %v859_v4 = vpop.xlane.xlu1 %858 }
0x27ee   :  { %v860_v5 = vadd.f32 %v1914_v60, %v859_v4 }
0x27f0   :  { %v861_v8 = vmul.f32 0.0625, %v860_v5  ;;  %v876_v14 = vadd.f32 %v860_v5, %v845_v61 }
0x27f2   :  { %v862_v47 = vadd.f32 %v861_v8, %v801_v44  ;;  %v877_v28 = vmul.f32 2.0, %v876_v14 }
0x27f4   :  { %865 = vperm.xlu0 %1475, %v862_v47   ;;  %v878_v62 = vadd.f32 %v877_v28, %v830_v31 }
0x286f   :  { %v866_v17 = vpop.permute.xlu0 %865 }
0x2870   :  { %v868_v27 = vmul.f32 %v2087_v30, %v866_v17 }
0x2872   :  { %v869_v48 = vadd.f32 %v868_v27, %v1877_v26 }
0x2874   :  { %1547 = vtanh.f32 %v869_v48 }
0x2881   :  { %v1548_v21 = vpop.eup %1547 }
0x2882   :  { %v871_v24 = vmul.f32 %v1548_v21, %v1910_v56 }
0x2884   :  { %v872_v25 = vsel %vm61_vm1, %v871_v24, 0.0 }
0x2885   :  { %873 = vadd.xlane.f32.xlu1 %v872_v25 }
0x290e   :  { %v874_v29 = vpop.xlane.xlu1 %873 }
0x290f   :  { %v875_v32 = vadd.f32 %v1914_v60, %v874_v29 }
0x2911   :  { %v879_v63 = vadd.f32 %v878_v62, %v875_v32 }
0x2913   :  { %v880_v33 = vmul.f32 0.010416667, %v879_v63 }
0x2915   :  { %v881_v20 = vadd.f32 %v880_v33, %v801_v44 }
0x2917   :  { %900 = vperm.xlu0 %1475, %v881_v20  }
0x2992   :  { %v901_v37 = vpop.permute.xlu0 %900 }
0x2993   :  { %v903_v11 = vmul.f32 %v2087_v30, %v901_v37 }
0x2995   :  { %v904_v13 = vadd.f32 %v903_v11, %v1877_v26 }
0x2997   :  { %1549 = vtanh.f32 %v904_v13 }
0x29a4   :  { %v1550_v45 = vpop.eup %1549 }
0x29a5   :  { %v906_v22 = vmul.f32 %v1550_v45, %v1910_v56  ;;  %v2109_v56 = vld [vmem:[%s2255_s6] ss:$0 sm:$0xff] }
0x29a7   :  { %v907_v46 = vsel %vm61_vm1, %v906_v22, 0.0 }
0x29a8   :  { %908 = vadd.xlane.f32.xlu1 %v907_v46 }
0x2a31   :  { %v909_v9 = vpop.xlane.xlu1 %908 }
0x2a32   :  { %v910_v57 = vadd.f32 %v1914_v60, %v909_v9 }
0x2a34   :  { %v911_v31 = vmul.f32 0.03125, %v910_v57 }
0x2a36   :  { %v912_v58 = vadd.f32 %v911_v31, %v881_v20 }
0x2a38   :  { %915 = vperm.xlu0 %1475, %v912_v58  }
0x2ab3   :  { %v916_v44 = vpop.permute.xlu0 %915 }
0x2ab4   :  { %v918_v6 = vmul.f32 %v2087_v30, %v916_v44 }
0x2ab6   :  { %v919_v43 = vadd.f32 %v918_v6, %v1879_v34 }
0x2ab8   :  { %1551 = vtanh.f32 %v919_v43 }
0x2ac5   :  { %v1552_v26 = vpop.eup %1551 }
0x2ac6   :  { %v921_v23 = vmul.f32 %v2109_v56, %v1552_v26 }
0x2ac8   :  { %v922_v19 = vsel %vm61_vm1, %v921_v23, 0.0 }
0x2ac9   :  { %923 = vadd.xlane.f32.xlu1 %v922_v19 }
0x2b52   :  { %v924_v60 = vpop.xlane.xlu1 %923 }
0x2b53   :  { %v925_v18 = vadd.f32 %v2113_v12, %v924_v60 }
0x2b55   :  { %v926_v10 = vmul.f32 0.03125, %v925_v18 }
0x2b57   :  { %v927_v59 = vadd.f32 %v926_v10, %v881_v20 }
0x2b59   :  { %930 = vperm.xlu0 %1475, %v927_v59  }
0x2bd4   :  { %v931_v61 = vpop.permute.xlu0 %930 }
0x2bd5   :  { %v933_v15 = vmul.f32 %v2087_v30, %v931_v61 }
0x2bd7   :  { %v934_v7 = vadd.f32 %v933_v15, %v1879_v34 }
0x2bd9   :  { %1553 = vtanh.f32 %v934_v7 }
0x2be6   :  { %v1554_v0 = vpop.eup %1553 }
0x2be7   :  { %v936_v49 = vmul.f32 %v2109_v56, %v1554_v0 }
0x2be9   :  { %v937_v1 = vsel %vm61_vm1, %v936_v49, 0.0 }
0x2bea   :  { %938 = vadd.xlane.f32.xlu1 %v937_v1 }
0x2c73   :  { %v939_v2 = vpop.xlane.xlu1 %938 }
0x2c74   :  { %v940_v3 = vadd.f32 %v2113_v12, %v939_v2 }
0x2c76   :  { %v941_v16 = vmul.f32 0.0625, %v940_v3  ;;  %v956_v48 = vadd.f32 %v940_v3, %v925_v18 }
0x2c78   :  { %v942_v4 = vadd.f32 %v941_v16, %v881_v20  ;;  %v957_v21 = vmul.f32 2.0, %v956_v48 }
0x2c7a   :  { %945 = vperm.xlu0 %1475, %v942_v4   ;;  %v958_v25 = vadd.f32 %v957_v21, %v910_v57 }
0x2cf5   :  { %v946_v5 = vpop.permute.xlu0 %945 }
0x2cf6   :  { %v948_v8 = vmul.f32 %v2087_v30, %v946_v5 }
0x2cf8   :  { %v949_v47 = vadd.f32 %v948_v8, %v1881_v35 }
0x2cfa   :  { %1555 = vtanh.f32 %v949_v47 }
0x2d07   :  { %v1556_v34 = vpop.eup %1555 }
0x2d08   :  { %v951_v17 = vmul.f32 %v2109_v56, %v1556_v34 }
0x2d0a   :  { %v952_v27 = vsel %vm61_vm1, %v951_v17, 0.0 }
0x2d0b   :  { %953 = vadd.xlane.f32.xlu1 %v952_v27 }
0x2d94   :  { %v954_v24 = vpop.xlane.xlu1 %953 }
0x2d95   :  { %v955_v14 = vadd.f32 %v2113_v12, %v954_v24 }
0x2d97   :  { %v959_v28 = vadd.f32 %v958_v25, %v955_v14 }
0x2d99   :  { %v960_v29 = vmul.f32 0.010416667, %v959_v28 }
0x2d9b   :  { %v961_v62 = vadd.f32 %v960_v29, %v881_v20 }
0x2d9d   :  { %980 = vperm.xlu0 %1475, %v961_v62  }
0x2e18   :  { %v981_v32 = vpop.permute.xlu0 %980 }
0x2e19   :  { %v983_v63 = vmul.f32 %v2087_v30, %v981_v32 }
0x2e1b   :  { %v984_v33 = vadd.f32 %v983_v63, %v1881_v35 }
0x2e1d   :  { %1557 = vtanh.f32 %v984_v33 }
0x2e2a   :  { %v1558_v37 = vpop.eup %1557 }
0x2e2b   :  { %v986_v11 = vmul.f32 %v2109_v56, %v1558_v37 }
0x2e2d   :  { %v987_v13 = vsel %vm61_vm1, %v986_v11, 0.0 }
0x2e2e   :  { %988 = vadd.xlane.f32.xlu1 %v987_v13 }
0x2eb7   :  { %v989_v45 = vpop.xlane.xlu1 %988 }
0x2eb8   :  { %v990_v22 = vadd.f32 %v2113_v12, %v989_v45 }
0x2eba   :  { %v991_v46 = vmul.f32 0.03125, %v990_v22 }
0x2ebc   :  { %v992_v9 = vadd.f32 %v991_v46, %v961_v62 }
0x2ebe   :  { %995 = vperm.xlu0 %1475, %v992_v9  }
0x2f39   :  { %v996_v20 = vpop.permute.xlu0 %995 }
0x2f3a   :  { %v998_v57 = vmul.f32 %v2087_v30, %v996_v20 }
0x2f3c   :  { %v999_v31 = vadd.f32 %v998_v57, %v1883_v36 }
0x2f3e   :  { %1559 = vtanh.f32 %v999_v31 }
0x2f4b   :  { %v1560_v35 = vpop.eup %1559 }
0x2f4c   :  { %v1001_v58 = vmul.f32 %v2109_v56, %v1560_v35 }
0x2f4e   :  { %v1002_v44 = vsel %vm61_vm1, %v1001_v58, 0.0 }
0x2f4f   :  { %1003 = vadd.xlane.f32.xlu1 %v1002_v44 }
0x2fd8   :  { %v1004_v6 = vpop.xlane.xlu1 %1003 }
0x2fd9   :  { %v1005_v43 = vadd.f32 %v2113_v12, %v1004_v6 }
0x2fdb   :  { %v1006_v26 = vmul.f32 0.03125, %v1005_v43 }
0x2fdd   :  { %v1007_v23 = vadd.f32 %v1006_v26, %v961_v62 }
0x2fdf   :  { %1010 = vperm.xlu0 %1475, %v1007_v23  }
0x305a   :  { %v1011_v19 = vpop.permute.xlu0 %1010 }
0x305b   :  { %v1013_v60 = vmul.f32 %v2087_v30, %v1011_v19 }
0x305d   :  { %v1014_v18 = vadd.f32 %v1013_v60, %v1883_v36 }
0x305f   :  { %1561 = vtanh.f32 %v1014_v18 }
0x306c   :  { %v1562_v10 = vpop.eup %1561 }
0x306d   :  { %v1016_v59 = vmul.f32 %v2109_v56, %v1562_v10 }
0x306f   :  { %v1017_v61 = vsel %vm61_vm1, %v1016_v59, 0.0 }
0x3070   :  { %1018 = vadd.xlane.f32.xlu1 %v1017_v61 }
0x30f9   :  { %v1019_v15 = vpop.xlane.xlu1 %1018 }
0x30fa   :  { %v1020_v7 = vadd.f32 %v2113_v12, %v1019_v15 }
0x30fc   :  { %v1021_v0 = vmul.f32 0.0625, %v1020_v7  ;;  %v1036_v5 = vadd.f32 %v1020_v7, %v1005_v43 }
0x30fe   :  { %v1022_v49 = vadd.f32 %v1021_v0, %v961_v62  ;;  %v1037_v8 = vmul.f32 2.0, %v1036_v5 }
0x3100   :  { %1025 = vperm.xlu0 %1475, %v1022_v49   ;;  %v1038_v34 = vadd.f32 %v1037_v8, %v990_v22 }
0x317b   :  { %v1026_v1 = vpop.permute.xlu0 %1025 }
0x317c   :  { %v1028_v2 = vmul.f32 %v2087_v30, %v1026_v1 }
0x317e   :  { %v1029_v3 = vadd.f32 %v1028_v2, %v1885_v38 }
0x3180   :  { %1563 = vtanh.f32 %v1029_v3 }
0x318d   :  { %v1564_v36 = vpop.eup %1563 }
0x318e   :  { %v1031_v16 = vmul.f32 %v2109_v56, %v1564_v36 }
0x3190   :  { %v1032_v4 = vsel %vm61_vm1, %v1031_v16, 0.0 }
0x3191   :  { %1033 = vadd.xlane.f32.xlu1 %v1032_v4 }
0x321a   :  { %v1034_v47 = vpop.xlane.xlu1 %1033 }
0x321b   :  { %v1035_v17 = vadd.f32 %v2113_v12, %v1034_v47 }
0x321d   :  { %v1039_v27 = vadd.f32 %v1038_v34, %v1035_v17 }
0x321f   :  { %v1040_v48 = vmul.f32 0.010416667, %v1039_v27 }
0x3221   :  { %v1041_v21 = vadd.f32 %v1040_v48, %v961_v62 }
0x3223   :  { %1060 = vperm.xlu0 %1475, %v1041_v21  }
0x329e   :  { %v1061_v24 = vpop.permute.xlu0 %1060 }
0x329f   :  { %v1063_v25 = vmul.f32 %v2087_v30, %v1061_v24 }
0x32a1   :  { %v1064_v14 = vadd.f32 %v1063_v25, %v1885_v38 }
0x32a3   :  { %1565 = vtanh.f32 %v1064_v14 }
0x32b0   :  { %v1566_v28 = vpop.eup %1565 }
0x32b1   :  { %v1066_v29 = vmul.f32 %v2109_v56, %v1566_v28 }
0x32b3   :  { %v1067_v32 = vsel %vm61_vm1, %v1066_v29, 0.0 }
0x32b4   :  { %1068 = vadd.xlane.f32.xlu1 %v1067_v32 }
0x333d   :  { %v1069_v63 = vpop.xlane.xlu1 %1068 }
0x333e   :  { %v1070_v33 = vadd.f32 %v2113_v12, %v1069_v63 }
0x3340   :  { %v1071_v37 = vmul.f32 0.03125, %v1070_v33 }
0x3342   :  { %v1072_v11 = vadd.f32 %v1071_v37, %v1041_v21 }
0x3344   :  { %1075 = vperm.xlu0 %1475, %v1072_v11  }
0x33bf   :  { %v1076_v62 = vpop.permute.xlu0 %1075 }
0x33c0   :  { %v1078_v13 = vmul.f32 %v2087_v30, %v1076_v62 }
0x33c2   :  { %v1079_v45 = vadd.f32 %v1078_v13, %v1887_v39 }
0x33c4   :  { %1567 = vtanh.f32 %v1079_v45 }
0x33d1   :  { %v1568_v38 = vpop.eup %1567 }
0x33d2   :  { %v1081_v22 = vmul.f32 %v2109_v56, %v1568_v38 }
0x33d4   :  { %v1082_v46 = vsel %vm61_vm1, %v1081_v22, 0.0 }
0x33d5   :  { %1083 = vadd.xlane.f32.xlu1 %v1082_v46 }
0x345e   :  { %v1084_v9 = vpop.xlane.xlu1 %1083 }
0x345f   :  { %v1085_v20 = vadd.f32 %v2113_v12, %v1084_v9 }
0x3461   :  { %v1086_v57 = vmul.f32 0.03125, %v1085_v20 }
0x3463   :  { %v1087_v31 = vadd.f32 %v1086_v57, %v1041_v21 }
0x3465   :  { %1090 = vperm.xlu0 %1475, %v1087_v31  }
0x34e0   :  { %v1091_v35 = vpop.permute.xlu0 %1090 }
0x34e1   :  { %v1093_v58 = vmul.f32 %v2087_v30, %v1091_v35 }
0x34e3   :  { %v1094_v44 = vadd.f32 %v1093_v58, %v1887_v39 }
0x34e5   :  { %1569 = vtanh.f32 %v1094_v44 }
0x34f2   :  { %v1570_v6 = vpop.eup %1569 }
0x34f3   :  { %v1096_v43 = vmul.f32 %v2109_v56, %v1570_v6 }
0x34f5   :  { %v1097_v26 = vsel %vm61_vm1, %v1096_v43, 0.0 }
0x34f6   :  { %1098 = vadd.xlane.f32.xlu1 %v1097_v26 }
0x357f   :  { %v1099_v23 = vpop.xlane.xlu1 %1098 }
0x3580   :  { %v1100_v19 = vadd.f32 %v2113_v12, %v1099_v23 }
0x3582   :  { %v1101_v60 = vmul.f32 0.0625, %v1100_v19  ;;  %v1116_v0 = vadd.f32 %v1100_v19, %v1085_v20 }
0x3584   :  { %v1102_v18 = vadd.f32 %v1101_v60, %v1041_v21  ;;  %v1117_v49 = vmul.f32 2.0, %v1116_v0 }
0x3586   :  { %1105 = vperm.xlu0 %1475, %v1102_v18   ;;  %v1118_v2 = vadd.f32 %v1117_v49, %v1070_v33 }
0x3601   :  { %v1106_v10 = vpop.permute.xlu0 %1105 }
0x3602   :  { %v1108_v59 = vmul.f32 %v2087_v30, %v1106_v10 }
0x3604   :  { %v1109_v61 = vadd.f32 %v1108_v59, %v1889_v40 }
0x3606   :  { %1571 = vtanh.f32 %v1109_v61 }
0x3613   :  { %v1572_v39 = vpop.eup %1571 }
0x3614   :  { %v1111_v15 = vmul.f32 %v2109_v56, %v1572_v39 }
0x3616   :  { %v1112_v7 = vsel %vm61_vm1, %v1111_v15, 0.0 }
0x3617   :  { %1113 = vadd.xlane.f32.xlu1 %v1112_v7 }
0x36a0   :  { %v1114_v1 = vpop.xlane.xlu1 %1113 }
0x36a1   :  { %v1115_v3 = vadd.f32 %v2113_v12, %v1114_v1 }
0x36a3   :  { %v1119_v36 = vadd.f32 %v1118_v2, %v1115_v3 }
0x36a5   :  { %v1120_v16 = vmul.f32 0.010416667, %v1119_v36 }
0x36a7   :  { %v1121_v4 = vadd.f32 %v1120_v16, %v1041_v21 }
0x36a9   :  { %1140 = vperm.xlu0 %1475, %v1121_v4  }
0x3724   :  { %v1141_v5 = vpop.permute.xlu0 %1140 }
0x3725   :  { %v1143_v8 = vmul.f32 %v2087_v30, %v1141_v5 }
0x3727   :  { %v1144_v47 = vadd.f32 %v1143_v8, %v1889_v40 }
0x3729   :  { %1573 = vtanh.f32 %v1144_v47 }
0x3736   :  { %v1574_v34 = vpop.eup %1573 }
0x3737   :  { %v1146_v17 = vmul.f32 %v2109_v56, %v1574_v34 }
0x3739   :  { %v1147_v27 = vsel %vm61_vm1, %v1146_v17, 0.0 }
0x373a   :  { %1148 = vadd.xlane.f32.xlu1 %v1147_v27 }
0x37c3   :  { %v1149_v48 = vpop.xlane.xlu1 %1148 }
0x37c4   :  { %v1150_v24 = vadd.f32 %v2113_v12, %v1149_v48 }
0x37c6   :  { %v1151_v25 = vmul.f32 0.03125, %v1150_v24 }
0x37c8   :  { %v1152_v14 = vadd.f32 %v1151_v25, %v1121_v4 }
0x37ca   :  { %1155 = vperm.xlu0 %1475, %v1152_v14  }
0x3845   :  { %v1156_v21 = vpop.permute.xlu0 %1155 }
0x3846   :  { %v1158_v28 = vmul.f32 %v2087_v30, %v1156_v21 }
0x3848   :  { %v1159_v29 = vadd.f32 %v1158_v28, %v1891_v41 }
0x384a   :  { %1575 = vtanh.f32 %v1159_v29 }
0x3857   :  { %v1576_v40 = vpop.eup %1575 }
0x3858   :  { %v1161_v32 = vmul.f32 %v2109_v56, %v1576_v40 }
0x385a   :  { %v1162_v63 = vsel %vm61_vm1, %v1161_v32, 0.0 }
0x385b   :  { %1163 = vadd.xlane.f32.xlu1 %v1162_v63 }
0x38e4   :  { %v1164_v33 = vpop.xlane.xlu1 %1163 }
0x38e5   :  { %v1165_v37 = vadd.f32 %v2113_v12, %v1164_v33 }
0x38e7   :  { %v1166_v11 = vmul.f32 0.03125, %v1165_v37 }
0x38e9   :  { %v1167_v62 = vadd.f32 %v1166_v11, %v1121_v4 }
0x38eb   :  { %1170 = vperm.xlu0 %1475, %v1167_v62  }
0x3966   :  { %v1171_v13 = vpop.permute.xlu0 %1170 }
0x3967   :  { %v1173_v45 = vmul.f32 %v2087_v30, %v1171_v13 }
0x3969   :  { %v1174_v38 = vadd.f32 %v1173_v45, %v1891_v41 }
0x396b   :  { %1577 = vtanh.f32 %v1174_v38 }
0x3978   :  { %v1578_v22 = vpop.eup %1577 }
0x3979   :  { %v1176_v46 = vmul.f32 %v2109_v56, %v1578_v22 }
0x397b   :  { %v1177_v9 = vsel %vm61_vm1, %v1176_v46, 0.0 }
0x397c   :  { %1178 = vadd.xlane.f32.xlu1 %v1177_v9 }
0x3a05   :  { %v1179_v20 = vpop.xlane.xlu1 %1178 }
0x3a06   :  { %v1180_v57 = vadd.f32 %v2113_v12, %v1179_v20 }
0x3a08   :  { %v1181_v31 = vmul.f32 0.0625, %v1180_v57  ;;  %v1196_v23 = vadd.f32 %v1180_v57, %v1165_v37 }
0x3a0a   :  { %v1182_v35 = vadd.f32 %v1181_v31, %v1121_v4  ;;  %v1197_v19 = vmul.f32 2.0, %v1196_v23 }
0x3a0c   :  { %1185 = vperm.xlu0 %1475, %v1182_v35   ;;  %v1198_v18 = vadd.f32 %v1197_v19, %v1150_v24 }
0x3a87   :  { %v1186_v58 = vpop.permute.xlu0 %1185 }
0x3a88   :  { %v1188_v44 = vmul.f32 %v2087_v30, %v1186_v58 }
0x3a8a   :  { %v1189_v6 = vadd.f32 %v1188_v44, %v1893_v42 }
0x3a8c   :  { %1579 = vtanh.f32 %v1189_v6 }
0x3a99   :  { %v1580_v41 = vpop.eup %1579 }
0x3a9a   :  { %v1191_v43 = vmul.f32 %v2109_v56, %v1580_v41 }
0x3a9c   :  { %v1192_v26 = vsel %vm61_vm1, %v1191_v43, 0.0 }
0x3a9d   :  { %1193 = vadd.xlane.f32.xlu1 %v1192_v26 }
0x3b26   :  { %v1194_v60 = vpop.xlane.xlu1 %1193 }
0x3b27   :  { %v1195_v10 = vadd.f32 %v2113_v12, %v1194_v60 }
0x3b29   :  { %v1199_v59 = vadd.f32 %v1198_v18, %v1195_v10 }
0x3b2b   :  { %v1200_v61 = vmul.f32 0.010416667, %v1199_v59 }
0x3b2d   :  { %v1201_v39 = vadd.f32 %v1200_v61, %v1121_v4 }
0x3b2f   :  { %1220 = vperm.xlu0 %1475, %v1201_v39  }
0x3baa   :  { %v1221_v15 = vpop.permute.xlu0 %1220 }
0x3bab   :  { %v1223_v7 = vmul.f32 %v2087_v30, %v1221_v15 }
0x3bad   :  { %v1224_v0 = vadd.f32 %v1223_v7, %v1893_v42 }
0x3baf   :  { %1581 = vtanh.f32 %v1224_v0 }
0x3bbc   :  { %v1582_v49 = vpop.eup %1581 }
0x3bbd   :  { %v1226_v1 = vmul.f32 %v2109_v56, %v1582_v49 }
0x3bbf   :  { %v1227_v2 = vsel %vm61_vm1, %v1226_v1, 0.0 }
0x3bc0   :  { %1228 = vadd.xlane.f32.xlu1 %v1227_v2 }
0x3c49   :  { %v1229_v3 = vpop.xlane.xlu1 %1228 }
0x3c4a   :  { %v1230_v36 = vadd.f32 %v2113_v12, %v1229_v3 }
0x3c4c   :  { %v1231_v16 = vmul.f32 0.03125, %v1230_v36 }
0x3c4e   :  { %v1232_v5 = vadd.f32 %v1231_v16, %v1201_v39 }
0x3c50   :  { %1235 = vperm.xlu0 %1475, %v1232_v5  }
0x3ccb   :  { %v1236_v4 = vpop.permute.xlu0 %1235 }
0x3ccc   :  { %v1238_v8 = vmul.f32 %v2087_v30, %v1236_v4 }
0x3cce   :  { %v1239_v47 = vadd.f32 %v1238_v8, %v1895_v50 }
0x3cd0   :  { %1583 = vtanh.f32 %v1239_v47 }
0x3cdd   :  { %v1584_v42 = vpop.eup %1583 }
0x3cde   :  { %v1241_v34 = vmul.f32 %v2109_v56, %v1584_v42 }
0x3ce0   :  { %v1242_v17 = vsel %vm61_vm1, %v1241_v34, 0.0 }
0x3ce1   :  { %1243 = vadd.xlane.f32.xlu1 %v1242_v17 }
0x3d6a   :  { %v1244_v27 = vpop.xlane.xlu1 %1243 }
0x3d6b   :  { %v1245_v48 = vadd.f32 %v2113_v12, %v1244_v27 }
0x3d6d   :  { %v1246_v24 = vmul.f32 0.03125, %v1245_v48 }
0x3d6f   :  { %v1247_v25 = vadd.f32 %v1246_v24, %v1201_v39 }
0x3d71   :  { %1250 = vperm.xlu0 %1475, %v1247_v25  }
0x3dec   :  { %v1251_v14 = vpop.permute.xlu0 %1250 }
0x3ded   :  { %v1253_v21 = vmul.f32 %v2087_v30, %v1251_v14 }
0x3def   :  { %v1254_v28 = vadd.f32 %v1253_v21, %v1895_v50 }
0x3df1   :  { %1585 = vtanh.f32 %v1254_v28 }
0x3dfe   :  { %v1586_v29 = vpop.eup %1585 }
0x3dff   :  { %v1256_v40 = vmul.f32 %v2109_v56, %v1586_v29 }
0x3e01   :  { %v1257_v32 = vsel %vm61_vm1, %v1256_v40, 0.0 }
0x3e02   :  { %1258 = vadd.xlane.f32.xlu1 %v1257_v32 }
0x3e8b   :  { %v1259_v63 = vpop.xlane.xlu1 %1258 }
0x3e8c   :  { %v1260_v33 = vadd.f32 %v2113_v12, %v1259_v63 }
0x3e8e   :  { %v1261_v37 = vmul.f32 0.0625, %v1260_v33  ;;  %v1276_v46 = vadd.f32 %v1260_v33, %v1245_v48 }
0x3e90   :  { %v1262_v11 = vadd.f32 %v1261_v37, %v1201_v39  ;;  %v1277_v9 = vmul.f32 2.0, %v1276_v46 }
0x3e92   :  { %1265 = vperm.xlu0 %1475, %v1262_v11   ;;  %v1278_v57 = vadd.f32 %v1277_v9, %v1230_v36 }
0x3f0d   :  { %v1266_v62 = vpop.permute.xlu0 %1265 }
0x3f0e   :  { %v1268_v13 = vmul.f32 %v2087_v30, %v1266_v62 }
0x3f10   :  { %v1269_v45 = vadd.f32 %v1268_v13, %v1897_v51 }
0x3f12   :  { %1587 = vtanh.f32 %v1269_v45 }
0x3f1f   :  { %v1588_v50 = vpop.eup %1587 }
0x3f20   :  { %v1271_v38 = vmul.f32 %v2109_v56, %v1588_v50 }
0x3f22   :  { %v1272_v22 = vsel %vm61_vm1, %v1271_v38, 0.0 }
0x3f23   :  { %1273 = vadd.xlane.f32.xlu1 %v1272_v22 }
0x3fac   :  { %v1274_v20 = vpop.xlane.xlu1 %1273 }
0x3fad   :  { %v1275_v31 = vadd.f32 %v2113_v12, %v1274_v20 }
0x3faf   :  { %v1279_v35 = vadd.f32 %v1278_v57, %v1275_v31 }
0x3fb1   :  { %v1280_v58 = vmul.f32 0.010416667, %v1279_v35 }
0x3fb3   :  { %v1281_v44 = vadd.f32 %v1280_v58, %v1201_v39 }
0x3fb5   :  { %1300 = vperm.xlu0 %1475, %v1281_v44  }
0x4030   :  { %v1301_v6 = vpop.permute.xlu0 %1300 }
0x4031   :  { %v1303_v41 = vmul.f32 %v2087_v30, %v1301_v6 }
0x4033   :  { %v1304_v43 = vadd.f32 %v1303_v41, %v1897_v51 }
0x4035   :  { %1589 = vtanh.f32 %v1304_v43 }
0x4042   :  { %v1590_v26 = vpop.eup %1589 }
0x4043   :  { %v1306_v23 = vmul.f32 %v2109_v56, %v1590_v26 }
0x4045   :  { %v1307_v19 = vsel %vm61_vm1, %v1306_v23, 0.0 }
0x4046   :  { %1308 = vadd.xlane.f32.xlu1 %v1307_v19 }
0x40cf   :  { %v1309_v60 = vpop.xlane.xlu1 %1308 }
0x40d0   :  { %v1310_v18 = vadd.f32 %v2113_v12, %v1309_v60 }
0x40d2   :  { %v1311_v10 = vmul.f32 0.03125, %v1310_v18 }
0x40d4   :  { %v1312_v59 = vadd.f32 %v1311_v10, %v1281_v44 }
0x40d6   :  { %1315 = vperm.xlu0 %1475, %v1312_v59  }
0x4151   :  { %v1316_v61 = vpop.permute.xlu0 %1315 }
0x4152   :  { %v1318_v39 = vmul.f32 %v2087_v30, %v1316_v61 }
0x4154   :  { %v1319_v15 = vadd.f32 %v1318_v39, %v1899_v52 }
0x4156   :  { %1591 = vtanh.f32 %v1319_v15 }
0x4163   :  { %v1592_v51 = vpop.eup %1591 }
0x4164   :  { %v1321_v7 = vmul.f32 %v2109_v56, %v1592_v51 }
0x4166   :  { %v1322_v0 = vsel %vm61_vm1, %v1321_v7, 0.0 }
0x4167   :  { %1323 = vadd.xlane.f32.xlu1 %v1322_v0 }
0x41f0   :  { %v1324_v49 = vpop.xlane.xlu1 %1323 }
0x41f1   :  { %v1325_v1 = vadd.f32 %v2113_v12, %v1324_v49 }
0x41f3   :  { %v1326_v2 = vmul.f32 0.03125, %v1325_v1 }
0x41f5   :  { %v1327_v3 = vadd.f32 %v1326_v2, %v1281_v44 }
0x41f7   :  { %1330 = vperm.xlu0 %1475, %v1327_v3  }
0x4272   :  { %v1331_v36 = vpop.permute.xlu0 %1330 }
0x4273   :  { %v1333_v16 = vmul.f32 %v2087_v30, %v1331_v36 }
0x4275   :  { %v1334_v5 = vadd.f32 %v1333_v16, %v1899_v52 }
0x4277   :  { %1593 = vtanh.f32 %v1334_v5 }
0x4284   :  { %v1594_v4 = vpop.eup %1593 }
0x4285   :  { %v1336_v8 = vmul.f32 %v2109_v56, %v1594_v4 }
0x4287   :  { %v1337_v47 = vsel %vm61_vm1, %v1336_v8, 0.0 }
0x4288   :  { %1338 = vadd.xlane.f32.xlu1 %v1337_v47 }
0x4311   :  { %v1339_v42 = vpop.xlane.xlu1 %1338 }
0x4312   :  { %v1340_v34 = vadd.f32 %v2113_v12, %v1339_v42 }
0x4314   :  { %v1341_v17 = vmul.f32 0.0625, %v1340_v34  ;;  %v1356_v28 = vadd.f32 %v1340_v34, %v1325_v1 }
0x4316   :  { %v1342_v27 = vadd.f32 %v1341_v17, %v1281_v44  ;;  %v1357_v29 = vmul.f32 2.0, %v1356_v28 }
0x4318   :  { %1345 = vperm.xlu0 %1475, %v1342_v27   ;;  %v1358_v32 = vadd.f32 %v1357_v29, %v1310_v18 }
0x4393   :  { %v1346_v48 = vpop.permute.xlu0 %1345 }
0x4394   :  { %v1348_v24 = vmul.f32 %v2087_v30, %v1346_v48 }
0x4396   :  { %v1349_v25 = vadd.f32 %v1348_v24, %v1901_v53 }
0x4398   :  { %1595 = vtanh.f32 %v1349_v25 }
0x43a5   :  { %v1596_v52 = vpop.eup %1595 }
0x43a6   :  { %v1351_v14 = vmul.f32 %v2109_v56, %v1596_v52 }
0x43a8   :  { %v1352_v21 = vsel %vm61_vm1, %v1351_v14, 0.0 }
0x43a9   :  { %1353 = vadd.xlane.f32.xlu1 %v1352_v21 }
0x4432   :  { %v1354_v40 = vpop.xlane.xlu1 %1353 }
0x4433   :  { %v1355_v63 = vadd.f32 %v2113_v12, %v1354_v40 }
0x4435   :  { %v1359_v33 = vadd.f32 %v1358_v32, %v1355_v63 }
0x4437   :  { %v1360_v37 = vmul.f32 0.010416667, %v1359_v33 }
0x4439   :  { %v1361_v11 = vadd.f32 %v1360_v37, %v1281_v44 }
0x443b   :  { %1379 = vperm.xlu0 %1475, %v1361_v11  }
0x44b6   :  { %v1380_v62 = vpop.permute.xlu0 %1379 }
0x44b7   :  { %v1382_v13 = vmul.f32 %v2087_v30, %v1380_v62 }
0x44b9   :  { %v1383_v45 = vadd.f32 %v1382_v13, %v1901_v53 }
0x44bb   :  { %1597 = vtanh.f32 %v1383_v45 }
0x44c8   :  { %v1598_v50 = vpop.eup %1597 }
0x44c9   :  { %v1385_v38 = vmul.f32 %v2109_v56, %v1598_v50 }
0x44cb   :  { %v1386_v22 = vsel %vm61_vm1, %v1385_v38, 0.0 }
0x44cc   :  { %1387 = vadd.xlane.f32.xlu1 %v1386_v22 }
0x4555   :  { %v1388_v46 = vpop.xlane.xlu1 %1387 }
0x4556   :  { %v1389_v9 = vadd.f32 %v2113_v12, %v1388_v46 }
0x4558   :  { %v1390_v20 = vmul.f32 0.03125, %v1389_v9 }
0x455a   :  { %v1391_v57 = vadd.f32 %v1390_v20, %v1361_v11 }
0x455c   :  { %1394 = vperm.xlu0 %1475, %v1391_v57  }
0x45d7   :  { %v1395_v31 = vpop.permute.xlu0 %1394 }
0x45d8   :  { %v1397_v35 = vmul.f32 %v2087_v30, %v1395_v31 }
0x45da   :  { %v1398_v58 = vadd.f32 %v1397_v35, %v1903_v54 }
0x45dc   :  { %1599 = vtanh.f32 %v1398_v58 }
0x45e9   :  { %v1600_v53 = vpop.eup %1599 }
0x45ea   :  { %v1400_v44 = vmul.f32 %v2109_v56, %v1600_v53 }
0x45ec   :  { %v1401_v6 = vsel %vm61_vm1, %v1400_v44, 0.0 }
0x45ed   :  { %1402 = vadd.xlane.f32.xlu1 %v1401_v6 }
0x4676   :  { %v1403_v41 = vpop.xlane.xlu1 %1402 }
0x4677   :  { %v1404_v43 = vadd.f32 %v2113_v12, %v1403_v41 }
0x4679   :  { %v1405_v26 = vmul.f32 0.03125, %v1404_v43 }
0x467b   :  { %v1406_v23 = vadd.f32 %v1405_v26, %v1361_v11 }
0x467d   :  { %1409 = vperm.xlu0 %1475, %v1406_v23  }
0x46f8   :  { %v1410_v19 = vpop.permute.xlu0 %1409 }
0x46f9   :  { %v1412_v60 = vmul.f32 %v2087_v30, %v1410_v19 }
0x46fb   :  { %v1413_v18 = vadd.f32 %v1412_v60, %v1903_v54 }
0x46fd   :  { %1601 = vtanh.f32 %v1413_v18 }
0x470a   :  { %v1602_v10 = vpop.eup %1601 }
0x470b   :  { %v1415_v59 = vmul.f32 %v2109_v56, %v1602_v10 }
0x470d   :  { %v1416_v61 = vsel %vm61_vm1, %v1415_v59, 0.0 }
0x470e   :  { %1417 = vadd.xlane.f32.xlu1 %v1416_v61 }
0x4797   :  { %v1418_v39 = vpop.xlane.xlu1 %1417 }
0x4798   :  { %v1419_v15 = vadd.f32 %v2113_v12, %v1418_v39 }
0x479a   :  { %v1420_v51 = vmul.f32 0.0625, %v1419_v15  ;;  %v1435_v36 = vadd.f32 %v1419_v15, %v1404_v43 }
0x479c   :  { %v1421_v7 = vadd.f32 %v1420_v51, %v1361_v11  ;;  %v1436_v16 = vmul.f32 2.0, %v1435_v36 }
0x479e   :  { %1424 = vperm.xlu0 %1475, %v1421_v7   ;;  %v1437_v4 = vadd.f32 %v1436_v16, %v1389_v9 }
0x4819   :  { %v1425_v0 = vpop.permute.xlu0 %1424 }
0x481a   :  { %v1427_v49 = vmul.f32 %v2087_v30, %v1425_v0 }
0x481c   :  { %v1428_v1 = vadd.f32 %v1427_v49, %v1905_v55 }
0x481e   :  { %1603 = vtanh.f32 %v1428_v1 }
0x482b   :  { %v1604_v54 = vpop.eup %1603 }
0x482c   :  { %v1430_v2 = vmul.f32 %v2109_v56, %v1604_v54 }
0x482e   :  { %v1431_v3 = vsel %vm61_vm1, %v1430_v2, 0.0 }
0x482f   :  { %1432 = vadd.xlane.f32.xlu1 %v1431_v3 }
0x48b8   :  { %v1433_v5 = vpop.xlane.xlu1 %1432 }
0x48b9   :  { %v1434_v8 = vadd.f32 %v2113_v12, %v1433_v5 }
0x48bb   :  { %v1438_v47 = vadd.f32 %v1437_v4, %v1434_v8 }
0x48bd   :  { %v1439_v42 = vmul.f32 0.010416667, %v1438_v47 }
0x48bf   :  { %v1440_v34 = vadd.f32 %v1439_v42, %v1361_v11 }
0x48c1   :  { %1442 = vst.msk [vmem:[%s2257_s8] sm:$0xff] %vm1441_vm2, %v1440_v34 }
0x48c2   :  { %1447 = vsyncpa [#allocation4], 1 }

</bundles_post_ra>
